<compile_context>
chip_gen: v7x
topology: tpu7x:2x2x1
jax: 0.10.0
libtpu: 0.0.40
codegen_flags: <defaults>
</compile_context>

<pallas_src>
import jax
import jax.numpy as jnp
from jax.experimental import pallas as pl
from jax.experimental.pallas import tpu as pltpu

N_STEPS = 20           # ceil((1.0 - 0.0) / 0.05)
DT = 1.0 / N_STEPS     # 0.05
EPS = 1e-5
LEAKY_SLOPE = 0.01


def cnf_kernel(x_ref, pk_ref, w2_ref, b3_ref, out_ref):
    B = x_ref.shape[0]

    # Packed parameter slab (8, 32):
    #   row 0,1 : W1[0:2]  (state part of cat([x, t]))
    #   row 2,3 : gamma1, beta1
    #   row 4,5 : gamma2, beta2
    #   row 6,7 : W3[:,0], W3[:,1]
    pk = pk_ref[...]
    # hoist constant broadcasts out of the (unrolled) loop
    w1r0 = jnp.broadcast_to(pk[0:1, :], (B, 32))
    w1r1 = jnp.broadcast_to(pk[1:2, :], (B, 32))
    g1, be1 = pk[2:3, :], pk[3:4, :]
    g2, be2 = pk[4:5, :], pk[5:6, :]
    w3c0 = jnp.broadcast_to(pk[6:7, :], (B, 32))
    w3c1 = jnp.broadcast_to(pk[7:8, :], (B, 32))
    w2 = w2_ref[...]                                   # (32, 32)
    b3 = b3_ref[...]                                   # (1, 2)
    b3c0 = jnp.broadcast_to(b3[0:1, 0:1], (B, 1))
    b3c1 = jnp.broadcast_to(b3[0:1, 1:2], (B, 1))

    def batchnorm(h, gamma, beta):
        # training-mode BN, biased variance; one-pass stats so the two sublane
        # reductions issue back-to-back; gamma folded into the scale.
        mu = jnp.mean(h, axis=0, keepdims=True)
        ms = jnp.mean(h * h, axis=0, keepdims=True)
        scale = jax.lax.rsqrt(ms - mu * mu + EPS) * gamma
        return h * scale + (beta - mu * scale)

    def leaky_relu(h):
        return jnp.maximum(h, LEAKY_SLOPE * h)

    def odef(z0, z1):
        # Layer 1: cat([z, t]) @ W1 + b1.  The `t*W1[2] + b1` term is constant
        # across the batch -> cancels exactly in training-mode BN -> dropped.
        # K=2 contraction as two VPU broadcast-FMAs (no MXU round-trip).
        h1 = z0 * w1r0 + z1 * w1r1
        h1 = leaky_relu(batchnorm(h1, g1, be1))
        # Layer 2: b2 also cancels inside BN.  32x32 matmul stays on the MXU.
        h2 = jnp.dot(h1, w2, preferred_element_type=jnp.float32)
        h2 = leaky_relu(batchnorm(h2, g2, be2))
        # Layer 3: N=2 projection as two lane reductions instead of an MXU matmul.
        dz0 = jnp.sum(h2 * w3c0, axis=-1, keepdims=True) + b3c0
        dz1 = jnp.sum(h2 * w3c1, axis=-1, keepdims=True) + b3c1
        return dz0, dz1

    x = x_ref[...]                                     # (B, 2)
    z_init = (x[:, 0:1], x[:, 1:2])

    def euler_step(_, carry):
        z0, z1 = carry
        dz0, dz1 = odef(z0, z1)
        return (z0 + DT * dz0, z1 + DT * dz1)

    # autonomous vector field -> step index unused; fully unroll the fixed loop.
    z0, z1 = jax.lax.fori_loop(0, N_STEPS, euler_step, z_init, unroll=True)

    # softmax over the 2 classes on the two column vectors (no lane reduction,
    # exact exp / divide path -- no approximate reciprocal).
    m = jnp.maximum(z0, z1)
    e0 = jnp.exp(z0 - m)
    e1 = jnp.exp(z1 - m)
    inv = 1.0 / (e0 + e1)
    out_ref[:, 0:1] = e0 * inv
    out_ref[:, 1:2] = e1 * inv


def pack_params(params):
    """Pack the 11 tiny parameter arrays into 3 inputs.

    b1, b2 and the time column W1[2] are dropped: they are constant across the
    batch axis, so they cancel exactly inside training-mode BatchNorm.
    """
    w1, b1, g1, be1, w2, b2, g2, be2, w3, b3 = params
    packed = jnp.concatenate([w1[0:2, :], g1, be1, g2, be2, w3.T], axis=0)  # (8, 32)
    return packed, w2, b3


def cnf_transform(x, params):
    """x: (B, 2) float32.  Returns softmax class probabilities (B, 2)."""
    packed, w2, b3 = pack_params(params)
    vmem = pl.BlockSpec(memory_space=pltpu.MemorySpace.VMEM)
    return pl.pallas_call(
        cnf_kernel,
        out_shape=jax.ShapeDtypeStruct(x.shape, jnp.float32),
        in_specs=[vmem, vmem, vmem, vmem],
        out_specs=vmem,
    )(x, packed, w2, b3)


def init_params(key):
    """Deterministic init matching PyTorch defaults (Linear: U(-k,k), k=1/sqrt(fan_in);
    BatchNorm1d: gamma=1, beta=0). Weights stored as (in, out)."""
    def linear(key, fan_in, fan_out):
        kw, kb = jax.random.split(key)
        k = 1.0 / jnp.sqrt(float(fan_in))
        w = jax.random.uniform(kw, (fan_in, fan_out), jnp.float32, -k, k)
        b = jax.random.uniform(kb, (1, fan_out), jnp.float32, -k, k)
        return w, b

    k1, k2, k3 = jax.random.split(key, 3)
    w1, b1 = linear(k1, 3, 32)
    w2, b2 = linear(k2, 32, 32)
    w3, b3 = linear(k3, 32, 2)
    g1 = jnp.ones((1, 32), jnp.float32); be1 = jnp.zeros((1, 32), jnp.float32)
    g2 = jnp.ones((1, 32), jnp.float32); be2 = jnp.zeros((1, 32), jnp.float32)
    return (w1, b1, g1, be1, w2, b2, g2, be2, w3, b3)


def cnf_transform_ref(x, params):
    """Pure-JAX reference faithful to the PyTorch module (keeps t, b1, b2)."""
    w1, b1, g1, be1, w2, b2, g2, be2, w3, b3 = params

    def bn(h, gamma, beta):
        mu = jnp.mean(h, axis=0, keepdims=True)
        var = jnp.mean((h - mu) ** 2, axis=0, keepdims=True)
        return (h - mu) / jnp.sqrt(var + EPS) * gamma + beta

    def leaky(h):
        return jnp.where(h > 0, h, LEAKY_SLOPE * h)

    def odef(t, z):
        inp = jnp.concatenate([z, jnp.full((z.shape[0], 1), t, jnp.float32)], -1)
        h1 = leaky(bn(inp @ w1 + b1, g1, be1))
        h2 = leaky(bn(h1 @ w2 + b2, g2, be2))
        return h2 @ w3 + b3

    z = x
    for i in range(N_STEPS):
        z = z + DT * odef(i * DT, z)
    return jax.nn.softmax(z, axis=-1)


if __name__ == "__main__":
    key = jax.random.PRNGKey(0)
    kx, kp = jax.random.split(key)

    B = 8  # batch size (BatchNorm1d needs B > 1)
    x = jax.random.normal(kx, (B, 2), jnp.float32)   # state dimension is 2
    params = init_params(kp)

    out = cnf_transform(x, params)
    out = jax.block_until_ready(out)

    ref = cnf_transform_ref(x, params)
    assert out.shape == (B, 2)
    assert jnp.allclose(jnp.sum(out, axis=-1), 1.0, atol=1e-5)
    assert jnp.allclose(out, ref, atol=1e-5, rtol=1e-5)

    print("KERNEL_OK")
</pallas_src>

<mosaic_0001>
module attributes {stable_mosaic.version = 11 : i64} {
  func.func @cnf_kernel(%arg0: memref<8x2xf32, #tpu.memory_space<vmem>>, %arg1: memref<8x32xf32, #tpu.memory_space<vmem>>, %arg2: memref<32x32xf32, #tpu.memory_space<vmem>>, %arg3: memref<1x2xf32, #tpu.memory_space<vmem>>, %arg4: memref<8x2xf32, #tpu.memory_space<vmem>>) attributes {dimension_semantics = [], scalar_prefetch = 0 : i64, scratch_operands = 0 : i64, tpu.core_type = #tpu.core_type<tc>} {
    %c0 = arith.constant 0 : index
    %c0_0 = arith.constant 0 : index
    %0 = vector.load %arg1[%c0, %c0_0] : memref<8x32xf32, #tpu.memory_space<vmem>>, vector<8x32xf32>
    %1 = vector.extract_strided_slice %0 {offsets = [0, 0], sizes = [1, 32], strides = [1, 1]} : vector<8x32xf32> to vector<1x32xf32>
    %2 = vector.shape_cast %1 : vector<1x32xf32> to vector<1x32xf32>
    %3 = vector.broadcast %2 : vector<1x32xf32> to vector<8x32xf32>
    %4 = vector.extract_strided_slice %0 {offsets = [1, 0], sizes = [1, 32], strides = [1, 1]} : vector<8x32xf32> to vector<1x32xf32>
    %5 = vector.shape_cast %4 : vector<1x32xf32> to vector<1x32xf32>
    %6 = vector.broadcast %5 : vector<1x32xf32> to vector<8x32xf32>
    %7 = vector.extract_strided_slice %0 {offsets = [2, 0], sizes = [1, 32], strides = [1, 1]} : vector<8x32xf32> to vector<1x32xf32>
    %8 = vector.extract_strided_slice %0 {offsets = [3, 0], sizes = [1, 32], strides = [1, 1]} : vector<8x32xf32> to vector<1x32xf32>
    %9 = vector.extract_strided_slice %0 {offsets = [4, 0], sizes = [1, 32], strides = [1, 1]} : vector<8x32xf32> to vector<1x32xf32>
    %10 = vector.extract_strided_slice %0 {offsets = [5, 0], sizes = [1, 32], strides = [1, 1]} : vector<8x32xf32> to vector<1x32xf32>
    %11 = vector.extract_strided_slice %0 {offsets = [6, 0], sizes = [1, 32], strides = [1, 1]} : vector<8x32xf32> to vector<1x32xf32>
    %12 = vector.shape_cast %11 : vector<1x32xf32> to vector<1x32xf32>
    %13 = vector.broadcast %12 : vector<1x32xf32> to vector<8x32xf32>
    %14 = vector.extract_strided_slice %0 {offsets = [7, 0], sizes = [1, 32], strides = [1, 1]} : vector<8x32xf32> to vector<1x32xf32>
    %15 = vector.shape_cast %14 : vector<1x32xf32> to vector<1x32xf32>
    %16 = vector.broadcast %15 : vector<1x32xf32> to vector<8x32xf32>
    %c0_1 = arith.constant 0 : index
    %c0_2 = arith.constant 0 : index
    %17 = vector.load %arg2[%c0_1, %c0_2] : memref<32x32xf32, #tpu.memory_space<vmem>>, vector<32x32xf32>
    %c0_3 = arith.constant 0 : index
    %c0_4 = arith.constant 0 : index
    %18 = vector.load %arg3[%c0_3, %c0_4] : memref<1x2xf32, #tpu.memory_space<vmem>>, vector<1x2xf32>
    %19 = vector.extract_strided_slice %18 {offsets = [0, 0], sizes = [1, 1], strides = [1, 1]} : vector<1x2xf32> to vector<1x1xf32>
    %20 = vector.shape_cast %19 : vector<1x1xf32> to vector<1x1xf32>
    %21 = vector.broadcast %20 : vector<1x1xf32> to vector<8x1xf32>
    %22 = vector.extract_strided_slice %18 {offsets = [0, 1], sizes = [1, 1], strides = [1, 1]} : vector<1x2xf32> to vector<1x1xf32>
    %23 = vector.shape_cast %22 : vector<1x1xf32> to vector<1x1xf32>
    %24 = vector.broadcast %23 : vector<1x1xf32> to vector<8x1xf32>
    %c0_5 = arith.constant 0 : index
    %c0_6 = arith.constant 0 : index
    %25 = vector.load %arg0[%c0_5, %c0_6] : memref<8x2xf32, #tpu.memory_space<vmem>>, vector<8x2xf32>
    %26 = vector.extract_strided_slice %25 {offsets = [0, 0], sizes = [8, 1], strides = [1, 1]} : vector<8x2xf32> to vector<8x1xf32>
    %27 = vector.extract_strided_slice %25 {offsets = [0, 1], sizes = [8, 1], strides = [1, 1]} : vector<8x2xf32> to vector<8x1xf32>
    %c0_i32 = arith.constant 0 : i32
    %28 = vector.broadcast %26 : vector<8x1xf32> to vector<8x32xf32>
    %29 = arith.mulf %28, %3 : vector<8x32xf32>
    %30 = vector.broadcast %27 : vector<8x1xf32> to vector<8x32xf32>
    %31 = arith.mulf %30, %6 : vector<8x32xf32>
    %32 = arith.addf %29, %31 : vector<8x32xf32>
    %cst = arith.constant dense<0.000000e+00> : vector<32xf32>
    %33 = vector.multi_reduction <add>, %32, %cst [0] : vector<8x32xf32> to vector<32xf32>
    %34 = vector.shape_cast %33 : vector<32xf32> to vector<1x32xf32>
    %cst_7 = arith.constant 8.000000e+00 : f32
    %35 = vector.broadcast %cst_7 : f32 to vector<1x32xf32>
    %36 = arith.divf %34, %35 : vector<1x32xf32>
    %37 = arith.mulf %32, %32 : vector<8x32xf32>
    %cst_8 = arith.constant dense<0.000000e+00> : vector<32xf32>
    %38 = vector.multi_reduction <add>, %37, %cst_8 [0] : vector<8x32xf32> to vector<32xf32>
    %39 = vector.shape_cast %38 : vector<32xf32> to vector<1x32xf32>
    %cst_9 = arith.constant 8.000000e+00 : f32
    %40 = vector.broadcast %cst_9 : f32 to vector<1x32xf32>
    %41 = arith.divf %39, %40 : vector<1x32xf32>
    %42 = arith.mulf %36, %36 : vector<1x32xf32>
    %43 = arith.subf %41, %42 : vector<1x32xf32>
    %cst_10 = arith.constant 9.99999974E-6 : f32
    %44 = vector.broadcast %cst_10 : f32 to vector<1x32xf32>
    %45 = arith.addf %43, %44 : vector<1x32xf32>
    %46 = math.rsqrt %45 : vector<1x32xf32>
    %47 = arith.mulf %46, %7 : vector<1x32xf32>
    %48 = vector.broadcast %47 : vector<1x32xf32> to vector<8x32xf32>
    %49 = arith.mulf %32, %48 : vector<8x32xf32>
    %50 = arith.mulf %36, %47 : vector<1x32xf32>
    %51 = arith.subf %8, %50 : vector<1x32xf32>
    %52 = vector.broadcast %51 : vector<1x32xf32> to vector<8x32xf32>
    %53 = arith.addf %49, %52 : vector<8x32xf32>
    %cst_11 = arith.constant 0.00999999977 : f32
    %54 = vector.broadcast %cst_11 : f32 to vector<8x32xf32>
    %55 = arith.mulf %54, %53 : vector<8x32xf32>
    %56 = arith.maximumf %53, %55 : vector<8x32xf32>
    %cst_12 = arith.constant dense<0.000000e+00> : vector<8x32xf32>
    %57 = tpu.matmul %56, %17, %cst_12 {dimension_numbers = #tpu.dot_dimension_numbers<[1], [0], [0], [1], [0, 0, 1, 1], [], []>} : vector<8x32xf32>, vector<32x32xf32>, vector<8x32xf32> -> vector<8x32xf32>
    %cst_13 = arith.constant dense<0.000000e+00> : vector<32xf32>
    %58 = vector.multi_reduction <add>, %57, %cst_13 [0] : vector<8x32xf32> to vector<32xf32>
    %59 = vector.shape_cast %58 : vector<32xf32> to vector<1x32xf32>
    %cst_14 = arith.constant 8.000000e+00 : f32
    %60 = vector.broadcast %cst_14 : f32 to vector<1x32xf32>
    %61 = arith.divf %59, %60 : vector<1x32xf32>
    %62 = arith.mulf %57, %57 : vector<8x32xf32>
    %cst_15 = arith.constant dense<0.000000e+00> : vector<32xf32>
    %63 = vector.multi_reduction <add>, %62, %cst_15 [0] : vector<8x32xf32> to vector<32xf32>
    %64 = vector.shape_cast %63 : vector<32xf32> to vector<1x32xf32>
    %cst_16 = arith.constant 8.000000e+00 : f32
    %65 = vector.broadcast %cst_16 : f32 to vector<1x32xf32>
    %66 = arith.divf %64, %65 : vector<1x32xf32>
    %67 = arith.mulf %61, %61 : vector<1x32xf32>
    %68 = arith.subf %66, %67 : vector<1x32xf32>
    %cst_17 = arith.constant 9.99999974E-6 : f32
    %69 = vector.broadcast %cst_17 : f32 to vector<1x32xf32>
    %70 = arith.addf %68, %69 : vector<1x32xf32>
    %71 = math.rsqrt %70 : vector<1x32xf32>
    %72 = arith.mulf %71, %9 : vector<1x32xf32>
    %73 = vector.broadcast %72 : vector<1x32xf32> to vector<8x32xf32>
    %74 = arith.mulf %57, %73 : vector<8x32xf32>
    %75 = arith.mulf %61, %72 : vector<1x32xf32>
    %76 = arith.subf %10, %75 : vector<1x32xf32>
    %77 = vector.broadcast %76 : vector<1x32xf32> to vector<8x32xf32>
    %78 = arith.addf %74, %77 : vector<8x32xf32>
    %cst_18 = arith.constant 0.00999999977 : f32
    %79 = vector.broadcast %cst_18 : f32 to vector<8x32xf32>
    %80 = arith.mulf %79, %78 : vector<8x32xf32>
    %81 = arith.maximumf %78, %80 : vector<8x32xf32>
    %82 = arith.mulf %81, %13 : vector<8x32xf32>
    %cst_19 = arith.constant dense<0.000000e+00> : vector<8xf32>
    %83 = vector.multi_reduction <add>, %82, %cst_19 [1] : vector<8x32xf32> to vector<8xf32>
    %84 = vector.shape_cast %83 : vector<8xf32> to vector<8x1xf32>
    %85 = arith.addf %84, %21 : vector<8x1xf32>
    %86 = arith.mulf %81, %16 : vector<8x32xf32>
    %cst_20 = arith.constant dense<0.000000e+00> : vector<8xf32>
    %87 = vector.multi_reduction <add>, %86, %cst_20 [1] : vector<8x32xf32> to vector<8xf32>
    %88 = vector.shape_cast %87 : vector<8xf32> to vector<8x1xf32>
    %89 = arith.addf %88, %24 : vector<8x1xf32>
    %cst_21 = arith.constant 5.000000e-02 : f32
    %90 = vector.broadcast %cst_21 : f32 to vector<8x1xf32>
    %91 = arith.mulf %90, %85 : vector<8x1xf32>
    %92 = arith.addf %26, %91 : vector<8x1xf32>
    %cst_22 = arith.constant 5.000000e-02 : f32
    %93 = vector.broadcast %cst_22 : f32 to vector<8x1xf32>
    %94 = arith.mulf %93, %89 : vector<8x1xf32>
    %95 = arith.addf %27, %94 : vector<8x1xf32>
    %c1_i32 = arith.constant 1 : i32
    %96 = vector.broadcast %92 : vector<8x1xf32> to vector<8x32xf32>
    %97 = arith.mulf %96, %3 : vector<8x32xf32>
    %98 = vector.broadcast %95 : vector<8x1xf32> to vector<8x32xf32>
    %99 = arith.mulf %98, %6 : vector<8x32xf32>
    %100 = arith.addf %97, %99 : vector<8x32xf32>
    %cst_23 = arith.constant dense<0.000000e+00> : vector<32xf32>
    %101 = vector.multi_reduction <add>, %100, %cst_23 [0] : vector<8x32xf32> to vector<32xf32>
    %102 = vector.shape_cast %101 : vector<32xf32> to vector<1x32xf32>
    %cst_24 = arith.constant 8.000000e+00 : f32
    %103 = vector.broadcast %cst_24 : f32 to vector<1x32xf32>
    %104 = arith.divf %102, %103 : vector<1x32xf32>
    %105 = arith.mulf %100, %100 : vector<8x32xf32>
    %cst_25 = arith.constant dense<0.000000e+00> : vector<32xf32>
    %106 = vector.multi_reduction <add>, %105, %cst_25 [0] : vector<8x32xf32> to vector<32xf32>
    %107 = vector.shape_cast %106 : vector<32xf32> to vector<1x32xf32>
    %cst_26 = arith.constant 8.000000e+00 : f32
    %108 = vector.broadcast %cst_26 : f32 to vector<1x32xf32>
    %109 = arith.divf %107, %108 : vector<1x32xf32>
    %110 = arith.mulf %104, %104 : vector<1x32xf32>
    %111 = arith.subf %109, %110 : vector<1x32xf32>
    %cst_27 = arith.constant 9.99999974E-6 : f32
    %112 = vector.broadcast %cst_27 : f32 to vector<1x32xf32>
    %113 = arith.addf %111, %112 : vector<1x32xf32>
    %114 = math.rsqrt %113 : vector<1x32xf32>
    %115 = arith.mulf %114, %7 : vector<1x32xf32>
    %116 = vector.broadcast %115 : vector<1x32xf32> to vector<8x32xf32>
    %117 = arith.mulf %100, %116 : vector<8x32xf32>
    %118 = arith.mulf %104, %115 : vector<1x32xf32>
    %119 = arith.subf %8, %118 : vector<1x32xf32>
    %120 = vector.broadcast %119 : vector<1x32xf32> to vector<8x32xf32>
    %121 = arith.addf %117, %120 : vector<8x32xf32>
    %cst_28 = arith.constant 0.00999999977 : f32
    %122 = vector.broadcast %cst_28 : f32 to vector<8x32xf32>
    %123 = arith.mulf %122, %121 : vector<8x32xf32>
    %124 = arith.maximumf %121, %123 : vector<8x32xf32>
    %cst_29 = arith.constant dense<0.000000e+00> : vector<8x32xf32>
    %125 = tpu.matmul %124, %17, %cst_29 {dimension_numbers = #tpu.dot_dimension_numbers<[1], [0], [0], [1], [0, 0, 1, 1], [], []>} : vector<8x32xf32>, vector<32x32xf32>, vector<8x32xf32> -> vector<8x32xf32>
    %cst_30 = arith.constant dense<0.000000e+00> : vector<32xf32>
    %126 = vector.multi_reduction <add>, %125, %cst_30 [0] : vector<8x32xf32> to vector<32xf32>
    %127 = vector.shape_cast %126 : vector<32xf32> to vector<1x32xf32>
    %cst_31 = arith.constant 8.000000e+00 : f32
    %128 = vector.broadcast %cst_31 : f32 to vector<1x32xf32>
    %129 = arith.divf %127, %128 : vector<1x32xf32>
    %130 = arith.mulf %125, %125 : vector<8x32xf32>
    %cst_32 = arith.constant dense<0.000000e+00> : vector<32xf32>
    %131 = vector.multi_reduction <add>, %130, %cst_32 [0] : vector<8x32xf32> to vector<32xf32>
    %132 = vector.shape_cast %131 : vector<32xf32> to vector<1x32xf32>
    %cst_33 = arith.constant 8.000000e+00 : f32
    %133 = vector.broadcast %cst_33 : f32 to vector<1x32xf32>
    %134 = arith.divf %132, %133 : vector<1x32xf32>
    %135 = arith.mulf %129, %129 : vector<1x32xf32>
    %136 = arith.subf %134, %135 : vector<1x32xf32>
    %cst_34 = arith.constant 9.99999974E-6 : f32
    %137 = vector.broadcast %cst_34 : f32 to vector<1x32xf32>
    %138 = arith.addf %136, %137 : vector<1x32xf32>
    %139 = math.rsqrt %138 : vector<1x32xf32>
    %140 = arith.mulf %139, %9 : vector<1x32xf32>
    %141 = vector.broadcast %140 : vector<1x32xf32> to vector<8x32xf32>
    %142 = arith.mulf %125, %141 : vector<8x32xf32>
    %143 = arith.mulf %129, %140 : vector<1x32xf32>
    %144 = arith.subf %10, %143 : vector<1x32xf32>
    %145 = vector.broadcast %144 : vector<1x32xf32> to vector<8x32xf32>
    %146 = arith.addf %142, %145 : vector<8x32xf32>
    %cst_35 = arith.constant 0.00999999977 : f32
    %147 = vector.broadcast %cst_35 : f32 to vector<8x32xf32>
    %148 = arith.mulf %147, %146 : vector<8x32xf32>
    %149 = arith.maximumf %146, %148 : vector<8x32xf32>
    %150 = arith.mulf %149, %13 : vector<8x32xf32>
    %cst_36 = arith.constant dense<0.000000e+00> : vector<8xf32>
    %151 = vector.multi_reduction <add>, %150, %cst_36 [1] : vector<8x32xf32> to vector<8xf32>
    %152 = vector.shape_cast %151 : vector<8xf32> to vector<8x1xf32>
    %153 = arith.addf %152, %21 : vector<8x1xf32>
    %154 = arith.mulf %149, %16 : vector<8x32xf32>
    %cst_37 = arith.constant dense<0.000000e+00> : vector<8xf32>
    %155 = vector.multi_reduction <add>, %154, %cst_37 [1] : vector<8x32xf32> to vector<8xf32>
    %156 = vector.shape_cast %155 : vector<8xf32> to vector<8x1xf32>
    %157 = arith.addf %156, %24 : vector<8x1xf32>
    %cst_38 = arith.constant 5.000000e-02 : f32
    %158 = vector.broadcast %cst_38 : f32 to vector<8x1xf32>
    %159 = arith.mulf %158, %153 : vector<8x1xf32>
    %160 = arith.addf %92, %159 : vector<8x1xf32>
    %cst_39 = arith.constant 5.000000e-02 : f32
    %161 = vector.broadcast %cst_39 : f32 to vector<8x1xf32>
    %162 = arith.mulf %161, %157 : vector<8x1xf32>
    %163 = arith.addf %95, %162 : vector<8x1xf32>
    %c2_i32 = arith.constant 2 : i32
    %164 = vector.broadcast %160 : vector<8x1xf32> to vector<8x32xf32>
    %165 = arith.mulf %164, %3 : vector<8x32xf32>
    %166 = vector.broadcast %163 : vector<8x1xf32> to vector<8x32xf32>
    %167 = arith.mulf %166, %6 : vector<8x32xf32>
    %168 = arith.addf %165, %167 : vector<8x32xf32>
    %cst_40 = arith.constant dense<0.000000e+00> : vector<32xf32>
    %169 = vector.multi_reduction <add>, %168, %cst_40 [0] : vector<8x32xf32> to vector<32xf32>
    %170 = vector.shape_cast %169 : vector<32xf32> to vector<1x32xf32>
    %cst_41 = arith.constant 8.000000e+00 : f32
    %171 = vector.broadcast %cst_41 : f32 to vector<1x32xf32>
    %172 = arith.divf %170, %171 : vector<1x32xf32>
    %173 = arith.mulf %168, %168 : vector<8x32xf32>
    %cst_42 = arith.constant dense<0.000000e+00> : vector<32xf32>
    %174 = vector.multi_reduction <add>, %173, %cst_42 [0] : vector<8x32xf32> to vector<32xf32>
    %175 = vector.shape_cast %174 : vector<32xf32> to vector<1x32xf32>
    %cst_43 = arith.constant 8.000000e+00 : f32
    %176 = vector.broadcast %cst_43 : f32 to vector<1x32xf32>
    %177 = arith.divf %175, %176 : vector<1x32xf32>
    %178 = arith.mulf %172, %172 : vector<1x32xf32>
    %179 = arith.subf %177, %178 : vector<1x32xf32>
    %cst_44 = arith.constant 9.99999974E-6 : f32
    %180 = vector.broadcast %cst_44 : f32 to vector<1x32xf32>
    %181 = arith.addf %179, %180 : vector<1x32xf32>
    %182 = math.rsqrt %181 : vector<1x32xf32>
    %183 = arith.mulf %182, %7 : vector<1x32xf32>
    %184 = vector.broadcast %183 : vector<1x32xf32> to vector<8x32xf32>
    %185 = arith.mulf %168, %184 : vector<8x32xf32>
    %186 = arith.mulf %172, %183 : vector<1x32xf32>
    %187 = arith.subf %8, %186 : vector<1x32xf32>
    %188 = vector.broadcast %187 : vector<1x32xf32> to vector<8x32xf32>
    %189 = arith.addf %185, %188 : vector<8x32xf32>
    %cst_45 = arith.constant 0.00999999977 : f32
    %190 = vector.broadcast %cst_45 : f32 to vector<8x32xf32>
    %191 = arith.mulf %190, %189 : vector<8x32xf32>
    %192 = arith.maximumf %189, %191 : vector<8x32xf32>
    %cst_46 = arith.constant dense<0.000000e+00> : vector<8x32xf32>
    %193 = tpu.matmul %192, %17, %cst_46 {dimension_numbers = #tpu.dot_dimension_numbers<[1], [0], [0], [1], [0, 0, 1, 1], [], []>} : vector<8x32xf32>, vector<32x32xf32>, vector<8x32xf32> -> vector<8x32xf32>
    %cst_47 = arith.constant dense<0.000000e+00> : vector<32xf32>
    %194 = vector.multi_reduction <add>, %193, %cst_47 [0] : vector<8x32xf32> to vector<32xf32>
    %195 = vector.shape_cast %194 : vector<32xf32> to vector<1x32xf32>
    %cst_48 = arith.constant 8.000000e+00 : f32
    %196 = vector.broadcast %cst_48 : f32 to vector<1x32xf32>
    %197 = arith.divf %195, %196 : vector<1x32xf32>
    %198 = arith.mulf %193, %193 : vector<8x32xf32>
    %cst_49 = arith.constant dense<0.000000e+00> : vector<32xf32>
    %199 = vector.multi_reduction <add>, %198, %cst_49 [0] : vector<8x32xf32> to vector<32xf32>
    %200 = vector.shape_cast %199 : vector<32xf32> to vector<1x32xf32>
    %cst_50 = arith.constant 8.000000e+00 : f32
    %201 = vector.broadcast %cst_50 : f32 to vector<1x32xf32>
    %202 = arith.divf %200, %201 : vector<1x32xf32>
    %203 = arith.mulf %197, %197 : vector<1x32xf32>
    %204 = arith.subf %202, %203 : vector<1x32xf32>
    %cst_51 = arith.constant 9.99999974E-6 : f32
    %205 = vector.broadcast %cst_51 : f32 to vector<1x32xf32>
    %206 = arith.addf %204, %205 : vector<1x32xf32>
    %207 = math.rsqrt %206 : vector<1x32xf32>
    %208 = arith.mulf %207, %9 : vector<1x32xf32>
    %209 = vector.broadcast %208 : vector<1x32xf32> to vector<8x32xf32>
    %210 = arith.mulf %193, %209 : vector<8x32xf32>
    %211 = arith.mulf %197, %208 : vector<1x32xf32>
    %212 = arith.subf %10, %211 : vector<1x32xf32>
    %213 = vector.broadcast %212 : vector<1x32xf32> to vector<8x32xf32>
    %214 = arith.addf %210, %213 : vector<8x32xf32>
    %cst_52 = arith.constant 0.00999999977 : f32
    %215 = vector.broadcast %cst_52 : f32 to vector<8x32xf32>
    %216 = arith.mulf %215, %214 : vector<8x32xf32>
    %217 = arith.maximumf %214, %216 : vector<8x32xf32>
    %218 = arith.mulf %217, %13 : vector<8x32xf32>
    %cst_53 = arith.constant dense<0.000000e+00> : vector<8xf32>
    %219 = vector.multi_reduction <add>, %218, %cst_53 [1] : vector<8x32xf32> to vector<8xf32>
    %220 = vector.shape_cast %219 : vector<8xf32> to vector<8x1xf32>
    %221 = arith.addf %220, %21 : vector<8x1xf32>
    %222 = arith.mulf %217, %16 : vector<8x32xf32>
    %cst_54 = arith.constant dense<0.000000e+00> : vector<8xf32>
    %223 = vector.multi_reduction <add>, %222, %cst_54 [1] : vector<8x32xf32> to vector<8xf32>
    %224 = vector.shape_cast %223 : vector<8xf32> to vector<8x1xf32>
    %225 = arith.addf %224, %24 : vector<8x1xf32>
    %cst_55 = arith.constant 5.000000e-02 : f32
    %226 = vector.broadcast %cst_55 : f32 to vector<8x1xf32>
    %227 = arith.mulf %226, %221 : vector<8x1xf32>
    %228 = arith.addf %160, %227 : vector<8x1xf32>
    %cst_56 = arith.constant 5.000000e-02 : f32
    %229 = vector.broadcast %cst_56 : f32 to vector<8x1xf32>
    %230 = arith.mulf %229, %225 : vector<8x1xf32>
    %231 = arith.addf %163, %230 : vector<8x1xf32>
    %c3_i32 = arith.constant 3 : i32
    %232 = vector.broadcast %228 : vector<8x1xf32> to vector<8x32xf32>
    %233 = arith.mulf %232, %3 : vector<8x32xf32>
    %234 = vector.broadcast %231 : vector<8x1xf32> to vector<8x32xf32>
    %235 = arith.mulf %234, %6 : vector<8x32xf32>
    %236 = arith.addf %233, %235 : vector<8x32xf32>
    %cst_57 = arith.constant dense<0.000000e+00> : vector<32xf32>
    %237 = vector.multi_reduction <add>, %236, %cst_57 [0] : vector<8x32xf32> to vector<32xf32>
    %238 = vector.shape_cast %237 : vector<32xf32> to vector<1x32xf32>
    %cst_58 = arith.constant 8.000000e+00 : f32
    %239 = vector.broadcast %cst_58 : f32 to vector<1x32xf32>
    %240 = arith.divf %238, %239 : vector<1x32xf32>
    %241 = arith.mulf %236, %236 : vector<8x32xf32>
    %cst_59 = arith.constant dense<0.000000e+00> : vector<32xf32>
    %242 = vector.multi_reduction <add>, %241, %cst_59 [0] : vector<8x32xf32> to vector<32xf32>
    %243 = vector.shape_cast %242 : vector<32xf32> to vector<1x32xf32>
    %cst_60 = arith.constant 8.000000e+00 : f32
    %244 = vector.broadcast %cst_60 : f32 to vector<1x32xf32>
    %245 = arith.divf %243, %244 : vector<1x32xf32>
    %246 = arith.mulf %240, %240 : vector<1x32xf32>
    %247 = arith.subf %245, %246 : vector<1x32xf32>
    %cst_61 = arith.constant 9.99999974E-6 : f32
    %248 = vector.broadcast %cst_61 : f32 to vector<1x32xf32>
    %249 = arith.addf %247, %248 : vector<1x32xf32>
    %250 = math.rsqrt %249 : vector<1x32xf32>
    %251 = arith.mulf %250, %7 : vector<1x32xf32>
    %252 = vector.broadcast %251 : vector<1x32xf32> to vector<8x32xf32>
    %253 = arith.mulf %236, %252 : vector<8x32xf32>
    %254 = arith.mulf %240, %251 : vector<1x32xf32>
    %255 = arith.subf %8, %254 : vector<1x32xf32>
    %256 = vector.broadcast %255 : vector<1x32xf32> to vector<8x32xf32>
    %257 = arith.addf %253, %256 : vector<8x32xf32>
    %cst_62 = arith.constant 0.00999999977 : f32
    %258 = vector.broadcast %cst_62 : f32 to vector<8x32xf32>
    %259 = arith.mulf %258, %257 : vector<8x32xf32>
    %260 = arith.maximumf %257, %259 : vector<8x32xf32>
    %cst_63 = arith.constant dense<0.000000e+00> : vector<8x32xf32>
    %261 = tpu.matmul %260, %17, %cst_63 {dimension_numbers = #tpu.dot_dimension_numbers<[1], [0], [0], [1], [0, 0, 1, 1], [], []>} : vector<8x32xf32>, vector<32x32xf32>, vector<8x32xf32> -> vector<8x32xf32>
    %cst_64 = arith.constant dense<0.000000e+00> : vector<32xf32>
    %262 = vector.multi_reduction <add>, %261, %cst_64 [0] : vector<8x32xf32> to vector<32xf32>
    %263 = vector.shape_cast %262 : vector<32xf32> to vector<1x32xf32>
    %cst_65 = arith.constant 8.000000e+00 : f32
    %264 = vector.broadcast %cst_65 : f32 to vector<1x32xf32>
    %265 = arith.divf %263, %264 : vector<1x32xf32>
    %266 = arith.mulf %261, %261 : vector<8x32xf32>
    %cst_66 = arith.constant dense<0.000000e+00> : vector<32xf32>
    %267 = vector.multi_reduction <add>, %266, %cst_66 [0] : vector<8x32xf32> to vector<32xf32>
    %268 = vector.shape_cast %267 : vector<32xf32> to vector<1x32xf32>
    %cst_67 = arith.constant 8.000000e+00 : f32
    %269 = vector.broadcast %cst_67 : f32 to vector<1x32xf32>
    %270 = arith.divf %268, %269 : vector<1x32xf32>
    %271 = arith.mulf %265, %265 : vector<1x32xf32>
    %272 = arith.subf %270, %271 : vector<1x32xf32>
    %cst_68 = arith.constant 9.99999974E-6 : f32
    %273 = vector.broadcast %cst_68 : f32 to vector<1x32xf32>
    %274 = arith.addf %272, %273 : vector<1x32xf32>
    %275 = math.rsqrt %274 : vector<1x32xf32>
    %276 = arith.mulf %275, %9 : vector<1x32xf32>
    %277 = vector.broadcast %276 : vector<1x32xf32> to vector<8x32xf32>
    %278 = arith.mulf %261, %277 : vector<8x32xf32>
    %279 = arith.mulf %265, %276 : vector<1x32xf32>
    %280 = arith.subf %10, %279 : vector<1x32xf32>
    %281 = vector.broadcast %280 : vector<1x32xf32> to vector<8x32xf32>
    %282 = arith.addf %278, %281 : vector<8x32xf32>
    %cst_69 = arith.constant 0.00999999977 : f32
    %283 = vector.broadcast %cst_69 : f32 to vector<8x32xf32>
    %284 = arith.mulf %283, %282 : vector<8x32xf32>
    %285 = arith.maximumf %282, %284 : vector<8x32xf32>
    %286 = arith.mulf %285, %13 : vector<8x32xf32>
    %cst_70 = arith.constant dense<0.000000e+00> : vector<8xf32>
    %287 = vector.multi_reduction <add>, %286, %cst_70 [1] : vector<8x32xf32> to vector<8xf32>
    %288 = vector.shape_cast %287 : vector<8xf32> to vector<8x1xf32>
    %289 = arith.addf %288, %21 : vector<8x1xf32>
    %290 = arith.mulf %285, %16 : vector<8x32xf32>
    %cst_71 = arith.constant dense<0.000000e+00> : vector<8xf32>
    %291 = vector.multi_reduction <add>, %290, %cst_71 [1] : vector<8x32xf32> to vector<8xf32>
    %292 = vector.shape_cast %291 : vector<8xf32> to vector<8x1xf32>
    %293 = arith.addf %292, %24 : vector<8x1xf32>
    %cst_72 = arith.constant 5.000000e-02 : f32
    %294 = vector.broadcast %cst_72 : f32 to vector<8x1xf32>
    %295 = arith.mulf %294, %289 : vector<8x1xf32>
    %296 = arith.addf %228, %295 : vector<8x1xf32>
    %cst_73 = arith.constant 5.000000e-02 : f32
    %297 = vector.broadcast %cst_73 : f32 to vector<8x1xf32>
    %298 = arith.mulf %297, %293 : vector<8x1xf32>
    %299 = arith.addf %231, %298 : vector<8x1xf32>
    %c4_i32 = arith.constant 4 : i32
    %300 = vector.broadcast %296 : vector<8x1xf32> to vector<8x32xf32>
    %301 = arith.mulf %300, %3 : vector<8x32xf32>
    %302 = vector.broadcast %299 : vector<8x1xf32> to vector<8x32xf32>
    %303 = arith.mulf %302, %6 : vector<8x32xf32>
    %304 = arith.addf %301, %303 : vector<8x32xf32>
    %cst_74 = arith.constant dense<0.000000e+00> : vector<32xf32>
    %305 = vector.multi_reduction <add>, %304, %cst_74 [0] : vector<8x32xf32> to vector<32xf32>
    %306 = vector.shape_cast %305 : vector<32xf32> to vector<1x32xf32>
    %cst_75 = arith.constant 8.000000e+00 : f32
    %307 = vector.broadcast %cst_75 : f32 to vector<1x32xf32>
    %308 = arith.divf %306, %307 : vector<1x32xf32>
    %309 = arith.mulf %304, %304 : vector<8x32xf32>
    %cst_76 = arith.constant dense<0.000000e+00> : vector<32xf32>
    %310 = vector.multi_reduction <add>, %309, %cst_76 [0] : vector<8x32xf32> to vector<32xf32>
    %311 = vector.shape_cast %310 : vector<32xf32> to vector<1x32xf32>
    %cst_77 = arith.constant 8.000000e+00 : f32
    %312 = vector.broadcast %cst_77 : f32 to vector<1x32xf32>
    %313 = arith.divf %311, %312 : vector<1x32xf32>
    %314 = arith.mulf %308, %308 : vector<1x32xf32>
    %315 = arith.subf %313, %314 : vector<1x32xf32>
    %cst_78 = arith.constant 9.99999974E-6 : f32
    %316 = vector.broadcast %cst_78 : f32 to vector<1x32xf32>
    %317 = arith.addf %315, %316 : vector<1x32xf32>
    %318 = math.rsqrt %317 : vector<1x32xf32>
    %319 = arith.mulf %318, %7 : vector<1x32xf32>
    %320 = vector.broadcast %319 : vector<1x32xf32> to vector<8x32xf32>
    %321 = arith.mulf %304, %320 : vector<8x32xf32>
    %322 = arith.mulf %308, %319 : vector<1x32xf32>
    %323 = arith.subf %8, %322 : vector<1x32xf32>
    %324 = vector.broadcast %323 : vector<1x32xf32> to vector<8x32xf32>
    %325 = arith.addf %321, %324 : vector<8x32xf32>
    %cst_79 = arith.constant 0.00999999977 : f32
    %326 = vector.broadcast %cst_79 : f32 to vector<8x32xf32>
    %327 = arith.mulf %326, %325 : vector<8x32xf32>
    %328 = arith.maximumf %325, %327 : vector<8x32xf32>
    %cst_80 = arith.constant dense<0.000000e+00> : vector<8x32xf32>
    %329 = tpu.matmul %328, %17, %cst_80 {dimension_numbers = #tpu.dot_dimension_numbers<[1], [0], [0], [1], [0, 0, 1, 1], [], []>} : vector<8x32xf32>, vector<32x32xf32>, vector<8x32xf32> -> vector<8x32xf32>
    %cst_81 = arith.constant dense<0.000000e+00> : vector<32xf32>
    %330 = vector.multi_reduction <add>, %329, %cst_81 [0] : vector<8x32xf32> to vector<32xf32>
    %331 = vector.shape_cast %330 : vector<32xf32> to vector<1x32xf32>
    %cst_82 = arith.constant 8.000000e+00 : f32
    %332 = vector.broadcast %cst_82 : f32 to vector<1x32xf32>
    %333 = arith.divf %331, %332 : vector<1x32xf32>
    %334 = arith.mulf %329, %329 : vector<8x32xf32>
    %cst_83 = arith.constant dense<0.000000e+00> : vector<32xf32>
    %335 = vector.multi_reduction <add>, %334, %cst_83 [0] : vector<8x32xf32> to vector<32xf32>
    %336 = vector.shape_cast %335 : vector<32xf32> to vector<1x32xf32>
    %cst_84 = arith.constant 8.000000e+00 : f32
    %337 = vector.broadcast %cst_84 : f32 to vector<1x32xf32>
    %338 = arith.divf %336, %337 : vector<1x32xf32>
    %339 = arith.mulf %333, %333 : vector<1x32xf32>
    %340 = arith.subf %338, %339 : vector<1x32xf32>
    %cst_85 = arith.constant 9.99999974E-6 : f32
    %341 = vector.broadcast %cst_85 : f32 to vector<1x32xf32>
    %342 = arith.addf %340, %341 : vector<1x32xf32>
    %343 = math.rsqrt %342 : vector<1x32xf32>
    %344 = arith.mulf %343, %9 : vector<1x32xf32>
    %345 = vector.broadcast %344 : vector<1x32xf32> to vector<8x32xf32>
    %346 = arith.mulf %329, %345 : vector<8x32xf32>
    %347 = arith.mulf %333, %344 : vector<1x32xf32>
    %348 = arith.subf %10, %347 : vector<1x32xf32>
    %349 = vector.broadcast %348 : vector<1x32xf32> to vector<8x32xf32>
    %350 = arith.addf %346, %349 : vector<8x32xf32>
    %cst_86 = arith.constant 0.00999999977 : f32
    %351 = vector.broadcast %cst_86 : f32 to vector<8x32xf32>
    %352 = arith.mulf %351, %350 : vector<8x32xf32>
    %353 = arith.maximumf %350, %352 : vector<8x32xf32>
    %354 = arith.mulf %353, %13 : vector<8x32xf32>
    %cst_87 = arith.constant dense<0.000000e+00> : vector<8xf32>
    %355 = vector.multi_reduction <add>, %354, %cst_87 [1] : vector<8x32xf32> to vector<8xf32>
    %356 = vector.shape_cast %355 : vector<8xf32> to vector<8x1xf32>
    %357 = arith.addf %356, %21 : vector<8x1xf32>
    %358 = arith.mulf %353, %16 : vector<8x32xf32>
    %cst_88 = arith.constant dense<0.000000e+00> : vector<8xf32>
    %359 = vector.multi_reduction <add>, %358, %cst_88 [1] : vector<8x32xf32> to vector<8xf32>
    %360 = vector.shape_cast %359 : vector<8xf32> to vector<8x1xf32>
    %361 = arith.addf %360, %24 : vector<8x1xf32>
    %cst_89 = arith.constant 5.000000e-02 : f32
    %362 = vector.broadcast %cst_89 : f32 to vector<8x1xf32>
    %363 = arith.mulf %362, %357 : vector<8x1xf32>
    %364 = arith.addf %296, %363 : vector<8x1xf32>
    %cst_90 = arith.constant 5.000000e-02 : f32
    %365 = vector.broadcast %cst_90 : f32 to vector<8x1xf32>
    %366 = arith.mulf %365, %361 : vector<8x1xf32>
    %367 = arith.addf %299, %366 : vector<8x1xf32>
    %c5_i32 = arith.constant 5 : i32
    %368 = vector.broadcast %364 : vector<8x1xf32> to vector<8x32xf32>
    %369 = arith.mulf %368, %3 : vector<8x32xf32>
    %370 = vector.broadcast %367 : vector<8x1xf32> to vector<8x32xf32>
    %371 = arith.mulf %370, %6 : vector<8x32xf32>
    %372 = arith.addf %369, %371 : vector<8x32xf32>
    %cst_91 = arith.constant dense<0.000000e+00> : vector<32xf32>
    %373 = vector.multi_reduction <add>, %372, %cst_91 [0] : vector<8x32xf32> to vector<32xf32>
    %374 = vector.shape_cast %373 : vector<32xf32> to vector<1x32xf32>
    %cst_92 = arith.constant 8.000000e+00 : f32
    %375 = vector.broadcast %cst_92 : f32 to vector<1x32xf32>
    %376 = arith.divf %374, %375 : vector<1x32xf32>
    %377 = arith.mulf %372, %372 : vector<8x32xf32>
    %cst_93 = arith.constant dense<0.000000e+00> : vector<32xf32>
    %378 = vector.multi_reduction <add>, %377, %cst_93 [0] : vector<8x32xf32> to vector<32xf32>
    %379 = vector.shape_cast %378 : vector<32xf32> to vector<1x32xf32>
    %cst_94 = arith.constant 8.000000e+00 : f32
    %380 = vector.broadcast %cst_94 : f32 to vector<1x32xf32>
    %381 = arith.divf %379, %380 : vector<1x32xf32>
    %382 = arith.mulf %376, %376 : vector<1x32xf32>
    %383 = arith.subf %381, %382 : vector<1x32xf32>
    %cst_95 = arith.constant 9.99999974E-6 : f32
    %384 = vector.broadcast %cst_95 : f32 to vector<1x32xf32>
    %385 = arith.addf %383, %384 : vector<1x32xf32>
    %386 = math.rsqrt %385 : vector<1x32xf32>
    %387 = arith.mulf %386, %7 : vector<1x32xf32>
    %388 = vector.broadcast %387 : vector<1x32xf32> to vector<8x32xf32>
    %389 = arith.mulf %372, %388 : vector<8x32xf32>
    %390 = arith.mulf %376, %387 : vector<1x32xf32>
    %391 = arith.subf %8, %390 : vector<1x32xf32>
    %392 = vector.broadcast %391 : vector<1x32xf32> to vector<8x32xf32>
    %393 = arith.addf %389, %392 : vector<8x32xf32>
    %cst_96 = arith.constant 0.00999999977 : f32
    %394 = vector.broadcast %cst_96 : f32 to vector<8x32xf32>
    %395 = arith.mulf %394, %393 : vector<8x32xf32>
    %396 = arith.maximumf %393, %395 : vector<8x32xf32>
    %cst_97 = arith.constant dense<0.000000e+00> : vector<8x32xf32>
    %397 = tpu.matmul %396, %17, %cst_97 {dimension_numbers = #tpu.dot_dimension_numbers<[1], [0], [0], [1], [0, 0, 1, 1], [], []>} : vector<8x32xf32>, vector<32x32xf32>, vector<8x32xf32> -> vector<8x32xf32>
    %cst_98 = arith.constant dense<0.000000e+00> : vector<32xf32>
    %398 = vector.multi_reduction <add>, %397, %cst_98 [0] : vector<8x32xf32> to vector<32xf32>
    %399 = vector.shape_cast %398 : vector<32xf32> to vector<1x32xf32>
    %cst_99 = arith.constant 8.000000e+00 : f32
    %400 = vector.broadcast %cst_99 : f32 to vector<1x32xf32>
    %401 = arith.divf %399, %400 : vector<1x32xf32>
    %402 = arith.mulf %397, %397 : vector<8x32xf32>
    %cst_100 = arith.constant dense<0.000000e+00> : vector<32xf32>
    %403 = vector.multi_reduction <add>, %402, %cst_100 [0] : vector<8x32xf32> to vector<32xf32>
    %404 = vector.shape_cast %403 : vector<32xf32> to vector<1x32xf32>
    %cst_101 = arith.constant 8.000000e+00 : f32
    %405 = vector.broadcast %cst_101 : f32 to vector<1x32xf32>
    %406 = arith.divf %404, %405 : vector<1x32xf32>
    %407 = arith.mulf %401, %401 : vector<1x32xf32>
    %408 = arith.subf %406, %407 : vector<1x32xf32>
    %cst_102 = arith.constant 9.99999974E-6 : f32
    %409 = vector.broadcast %cst_102 : f32 to vector<1x32xf32>
    %410 = arith.addf %408, %409 : vector<1x32xf32>
    %411 = math.rsqrt %410 : vector<1x32xf32>
    %412 = arith.mulf %411, %9 : vector<1x32xf32>
    %413 = vector.broadcast %412 : vector<1x32xf32> to vector<8x32xf32>
    %414 = arith.mulf %397, %413 : vector<8x32xf32>
    %415 = arith.mulf %401, %412 : vector<1x32xf32>
    %416 = arith.subf %10, %415 : vector<1x32xf32>
    %417 = vector.broadcast %416 : vector<1x32xf32> to vector<8x32xf32>
    %418 = arith.addf %414, %417 : vector<8x32xf32>
    %cst_103 = arith.constant 0.00999999977 : f32
    %419 = vector.broadcast %cst_103 : f32 to vector<8x32xf32>
    %420 = arith.mulf %419, %418 : vector<8x32xf32>
    %421 = arith.maximumf %418, %420 : vector<8x32xf32>
    %422 = arith.mulf %421, %13 : vector<8x32xf32>
    %cst_104 = arith.constant dense<0.000000e+00> : vector<8xf32>
    %423 = vector.multi_reduction <add>, %422, %cst_104 [1] : vector<8x32xf32> to vector<8xf32>
    %424 = vector.shape_cast %423 : vector<8xf32> to vector<8x1xf32>
    %425 = arith.addf %424, %21 : vector<8x1xf32>
    %426 = arith.mulf %421, %16 : vector<8x32xf32>
    %cst_105 = arith.constant dense<0.000000e+00> : vector<8xf32>
    %427 = vector.multi_reduction <add>, %426, %cst_105 [1] : vector<8x32xf32> to vector<8xf32>
    %428 = vector.shape_cast %427 : vector<8xf32> to vector<8x1xf32>
    %429 = arith.addf %428, %24 : vector<8x1xf32>
    %cst_106 = arith.constant 5.000000e-02 : f32
    %430 = vector.broadcast %cst_106 : f32 to vector<8x1xf32>
    %431 = arith.mulf %430, %425 : vector<8x1xf32>
    %432 = arith.addf %364, %431 : vector<8x1xf32>
    %cst_107 = arith.constant 5.000000e-02 : f32
    %433 = vector.broadcast %cst_107 : f32 to vector<8x1xf32>
    %434 = arith.mulf %433, %429 : vector<8x1xf32>
    %435 = arith.addf %367, %434 : vector<8x1xf32>
    %c6_i32 = arith.constant 6 : i32
    %436 = vector.broadcast %432 : vector<8x1xf32> to vector<8x32xf32>
    %437 = arith.mulf %436, %3 : vector<8x32xf32>
    %438 = vector.broadcast %435 : vector<8x1xf32> to vector<8x32xf32>
    %439 = arith.mulf %438, %6 : vector<8x32xf32>
    %440 = arith.addf %437, %439 : vector<8x32xf32>
    %cst_108 = arith.constant dense<0.000000e+00> : vector<32xf32>
    %441 = vector.multi_reduction <add>, %440, %cst_108 [0] : vector<8x32xf32> to vector<32xf32>
    %442 = vector.shape_cast %441 : vector<32xf32> to vector<1x32xf32>
    %cst_109 = arith.constant 8.000000e+00 : f32
    %443 = vector.broadcast %cst_109 : f32 to vector<1x32xf32>
    %444 = arith.divf %442, %443 : vector<1x32xf32>
    %445 = arith.mulf %440, %440 : vector<8x32xf32>
    %cst_110 = arith.constant dense<0.000000e+00> : vector<32xf32>
    %446 = vector.multi_reduction <add>, %445, %cst_110 [0] : vector<8x32xf32> to vector<32xf32>
    %447 = vector.shape_cast %446 : vector<32xf32> to vector<1x32xf32>
    %cst_111 = arith.constant 8.000000e+00 : f32
    %448 = vector.broadcast %cst_111 : f32 to vector<1x32xf32>
    %449 = arith.divf %447, %448 : vector<1x32xf32>
    %450 = arith.mulf %444, %444 : vector<1x32xf32>
    %451 = arith.subf %449, %450 : vector<1x32xf32>
    %cst_112 = arith.constant 9.99999974E-6 : f32
    %452 = vector.broadcast %cst_112 : f32 to vector<1x32xf32>
    %453 = arith.addf %451, %452 : vector<1x32xf32>
    %454 = math.rsqrt %453 : vector<1x32xf32>
    %455 = arith.mulf %454, %7 : vector<1x32xf32>
    %456 = vector.broadcast %455 : vector<1x32xf32> to vector<8x32xf32>
    %457 = arith.mulf %440, %456 : vector<8x32xf32>
    %458 = arith.mulf %444, %455 : vector<1x32xf32>
    %459 = arith.subf %8, %458 : vector<1x32xf32>
    %460 = vector.broadcast %459 : vector<1x32xf32> to vector<8x32xf32>
    %461 = arith.addf %457, %460 : vector<8x32xf32>
    %cst_113 = arith.constant 0.00999999977 : f32
    %462 = vector.broadcast %cst_113 : f32 to vector<8x32xf32>
    %463 = arith.mulf %462, %461 : vector<8x32xf32>
    %464 = arith.maximumf %461, %463 : vector<8x32xf32>
    %cst_114 = arith.constant dense<0.000000e+00> : vector<8x32xf32>
    %465 = tpu.matmul %464, %17, %cst_114 {dimension_numbers = #tpu.dot_dimension_numbers<[1], [0], [0], [1], [0, 0, 1, 1], [], []>} : vector<8x32xf32>, vector<32x32xf32>, vector<8x32xf32> -> vector<8x32xf32>
    %cst_115 = arith.constant dense<0.000000e+00> : vector<32xf32>
    %466 = vector.multi_reduction <add>, %465, %cst_115 [0] : vector<8x32xf32> to vector<32xf32>
    %467 = vector.shape_cast %466 : vector<32xf32> to vector<1x32xf32>
    %cst_116 = arith.constant 8.000000e+00 : f32
    %468 = vector.broadcast %cst_116 : f32 to vector<1x32xf32>
    %469 = arith.divf %467, %468 : vector<1x32xf32>
    %470 = arith.mulf %465, %465 : vector<8x32xf32>
    %cst_117 = arith.constant dense<0.000000e+00> : vector<32xf32>
    %471 = vector.multi_reduction <add>, %470, %cst_117 [0] : vector<8x32xf32> to vector<32xf32>
    %472 = vector.shape_cast %471 : vector<32xf32> to vector<1x32xf32>
    %cst_118 = arith.constant 8.000000e+00 : f32
    %473 = vector.broadcast %cst_118 : f32 to vector<1x32xf32>
    %474 = arith.divf %472, %473 : vector<1x32xf32>
    %475 = arith.mulf %469, %469 : vector<1x32xf32>
    %476 = arith.subf %474, %475 : vector<1x32xf32>
    %cst_119 = arith.constant 9.99999974E-6 : f32
    %477 = vector.broadcast %cst_119 : f32 to vector<1x32xf32>
    %478 = arith.addf %476, %477 : vector<1x32xf32>
    %479 = math.rsqrt %478 : vector<1x32xf32>
    %480 = arith.mulf %479, %9 : vector<1x32xf32>
    %481 = vector.broadcast %480 : vector<1x32xf32> to vector<8x32xf32>
    %482 = arith.mulf %465, %481 : vector<8x32xf32>
    %483 = arith.mulf %469, %480 : vector<1x32xf32>
    %484 = arith.subf %10, %483 : vector<1x32xf32>
    %485 = vector.broadcast %484 : vector<1x32xf32> to vector<8x32xf32>
    %486 = arith.addf %482, %485 : vector<8x32xf32>
    %cst_120 = arith.constant 0.00999999977 : f32
    %487 = vector.broadcast %cst_120 : f32 to vector<8x32xf32>
    %488 = arith.mulf %487, %486 : vector<8x32xf32>
    %489 = arith.maximumf %486, %488 : vector<8x32xf32>
    %490 = arith.mulf %489, %13 : vector<8x32xf32>
    %cst_121 = arith.constant dense<0.000000e+00> : vector<8xf32>
    %491 = vector.multi_reduction <add>, %490, %cst_121 [1] : vector<8x32xf32> to vector<8xf32>
    %492 = vector.shape_cast %491 : vector<8xf32> to vector<8x1xf32>
    %493 = arith.addf %492, %21 : vector<8x1xf32>
    %494 = arith.mulf %489, %16 : vector<8x32xf32>
    %cst_122 = arith.constant dense<0.000000e+00> : vector<8xf32>
    %495 = vector.multi_reduction <add>, %494, %cst_122 [1] : vector<8x32xf32> to vector<8xf32>
    %496 = vector.shape_cast %495 : vector<8xf32> to vector<8x1xf32>
    %497 = arith.addf %496, %24 : vector<8x1xf32>
    %cst_123 = arith.constant 5.000000e-02 : f32
    %498 = vector.broadcast %cst_123 : f32 to vector<8x1xf32>
    %499 = arith.mulf %498, %493 : vector<8x1xf32>
    %500 = arith.addf %432, %499 : vector<8x1xf32>
    %cst_124 = arith.constant 5.000000e-02 : f32
    %501 = vector.broadcast %cst_124 : f32 to vector<8x1xf32>
    %502 = arith.mulf %501, %497 : vector<8x1xf32>
    %503 = arith.addf %435, %502 : vector<8x1xf32>
    %c7_i32 = arith.constant 7 : i32
    %504 = vector.broadcast %500 : vector<8x1xf32> to vector<8x32xf32>
    %505 = arith.mulf %504, %3 : vector<8x32xf32>
    %506 = vector.broadcast %503 : vector<8x1xf32> to vector<8x32xf32>
    %507 = arith.mulf %506, %6 : vector<8x32xf32>
    %508 = arith.addf %505, %507 : vector<8x32xf32>
    %cst_125 = arith.constant dense<0.000000e+00> : vector<32xf32>
    %509 = vector.multi_reduction <add>, %508, %cst_125 [0] : vector<8x32xf32> to vector<32xf32>
    %510 = vector.shape_cast %509 : vector<32xf32> to vector<1x32xf32>
    %cst_126 = arith.constant 8.000000e+00 : f32
    %511 = vector.broadcast %cst_126 : f32 to vector<1x32xf32>
    %512 = arith.divf %510, %511 : vector<1x32xf32>
    %513 = arith.mulf %508, %508 : vector<8x32xf32>
    %cst_127 = arith.constant dense<0.000000e+00> : vector<32xf32>
    %514 = vector.multi_reduction <add>, %513, %cst_127 [0] : vector<8x32xf32> to vector<32xf32>
    %515 = vector.shape_cast %514 : vector<32xf32> to vector<1x32xf32>
    %cst_128 = arith.constant 8.000000e+00 : f32
    %516 = vector.broadcast %cst_128 : f32 to vector<1x32xf32>
    %517 = arith.divf %515, %516 : vector<1x32xf32>
    %518 = arith.mulf %512, %512 : vector<1x32xf32>
    %519 = arith.subf %517, %518 : vector<1x32xf32>
    %cst_129 = arith.constant 9.99999974E-6 : f32
    %520 = vector.broadcast %cst_129 : f32 to vector<1x32xf32>
    %521 = arith.addf %519, %520 : vector<1x32xf32>
    %522 = math.rsqrt %521 : vector<1x32xf32>
    %523 = arith.mulf %522, %7 : vector<1x32xf32>
    %524 = vector.broadcast %523 : vector<1x32xf32> to vector<8x32xf32>
    %525 = arith.mulf %508, %524 : vector<8x32xf32>
    %526 = arith.mulf %512, %523 : vector<1x32xf32>
    %527 = arith.subf %8, %526 : vector<1x32xf32>
    %528 = vector.broadcast %527 : vector<1x32xf32> to vector<8x32xf32>
    %529 = arith.addf %525, %528 : vector<8x32xf32>
    %cst_130 = arith.constant 0.00999999977 : f32
    %530 = vector.broadcast %cst_130 : f32 to vector<8x32xf32>
    %531 = arith.mulf %530, %529 : vector<8x32xf32>
    %532 = arith.maximumf %529, %531 : vector<8x32xf32>
    %cst_131 = arith.constant dense<0.000000e+00> : vector<8x32xf32>
    %533 = tpu.matmul %532, %17, %cst_131 {dimension_numbers = #tpu.dot_dimension_numbers<[1], [0], [0], [1], [0, 0, 1, 1], [], []>} : vector<8x32xf32>, vector<32x32xf32>, vector<8x32xf32> -> vector<8x32xf32>
    %cst_132 = arith.constant dense<0.000000e+00> : vector<32xf32>
    %534 = vector.multi_reduction <add>, %533, %cst_132 [0] : vector<8x32xf32> to vector<32xf32>
    %535 = vector.shape_cast %534 : vector<32xf32> to vector<1x32xf32>
    %cst_133 = arith.constant 8.000000e+00 : f32
    %536 = vector.broadcast %cst_133 : f32 to vector<1x32xf32>
    %537 = arith.divf %535, %536 : vector<1x32xf32>
    %538 = arith.mulf %533, %533 : vector<8x32xf32>
    %cst_134 = arith.constant dense<0.000000e+00> : vector<32xf32>
    %539 = vector.multi_reduction <add>, %538, %cst_134 [0] : vector<8x32xf32> to vector<32xf32>
    %540 = vector.shape_cast %539 : vector<32xf32> to vector<1x32xf32>
    %cst_135 = arith.constant 8.000000e+00 : f32
    %541 = vector.broadcast %cst_135 : f32 to vector<1x32xf32>
    %542 = arith.divf %540, %541 : vector<1x32xf32>
    %543 = arith.mulf %537, %537 : vector<1x32xf32>
    %544 = arith.subf %542, %543 : vector<1x32xf32>
    %cst_136 = arith.constant 9.99999974E-6 : f32
    %545 = vector.broadcast %cst_136 : f32 to vector<1x32xf32>
    %546 = arith.addf %544, %545 : vector<1x32xf32>
    %547 = math.rsqrt %546 : vector<1x32xf32>
    %548 = arith.mulf %547, %9 : vector<1x32xf32>
    %549 = vector.broadcast %548 : vector<1x32xf32> to vector<8x32xf32>
    %550 = arith.mulf %533, %549 : vector<8x32xf32>
    %551 = arith.mulf %537, %548 : vector<1x32xf32>
    %552 = arith.subf %10, %551 : vector<1x32xf32>
    %553 = vector.broadcast %552 : vector<1x32xf32> to vector<8x32xf32>
    %554 = arith.addf %550, %553 : vector<8x32xf32>
    %cst_137 = arith.constant 0.00999999977 : f32
    %555 = vector.broadcast %cst_137 : f32 to vector<8x32xf32>
    %556 = arith.mulf %555, %554 : vector<8x32xf32>
    %557 = arith.maximumf %554, %556 : vector<8x32xf32>
    %558 = arith.mulf %557, %13 : vector<8x32xf32>
    %cst_138 = arith.constant dense<0.000000e+00> : vector<8xf32>
    %559 = vector.multi_reduction <add>, %558, %cst_138 [1] : vector<8x32xf32> to vector<8xf32>
    %560 = vector.shape_cast %559 : vector<8xf32> to vector<8x1xf32>
    %561 = arith.addf %560, %21 : vector<8x1xf32>
    %562 = arith.mulf %557, %16 : vector<8x32xf32>
    %cst_139 = arith.constant dense<0.000000e+00> : vector<8xf32>
    %563 = vector.multi_reduction <add>, %562, %cst_139 [1] : vector<8x32xf32> to vector<8xf32>
    %564 = vector.shape_cast %563 : vector<8xf32> to vector<8x1xf32>
    %565 = arith.addf %564, %24 : vector<8x1xf32>
    %cst_140 = arith.constant 5.000000e-02 : f32
    %566 = vector.broadcast %cst_140 : f32 to vector<8x1xf32>
    %567 = arith.mulf %566, %561 : vector<8x1xf32>
    %568 = arith.addf %500, %567 : vector<8x1xf32>
    %cst_141 = arith.constant 5.000000e-02 : f32
    %569 = vector.broadcast %cst_141 : f32 to vector<8x1xf32>
    %570 = arith.mulf %569, %565 : vector<8x1xf32>
    %571 = arith.addf %503, %570 : vector<8x1xf32>
    %c8_i32 = arith.constant 8 : i32
    %572 = vector.broadcast %568 : vector<8x1xf32> to vector<8x32xf32>
    %573 = arith.mulf %572, %3 : vector<8x32xf32>
    %574 = vector.broadcast %571 : vector<8x1xf32> to vector<8x32xf32>
    %575 = arith.mulf %574, %6 : vector<8x32xf32>
    %576 = arith.addf %573, %575 : vector<8x32xf32>
    %cst_142 = arith.constant dense<0.000000e+00> : vector<32xf32>
    %577 = vector.multi_reduction <add>, %576, %cst_142 [0] : vector<8x32xf32> to vector<32xf32>
    %578 = vector.shape_cast %577 : vector<32xf32> to vector<1x32xf32>
    %cst_143 = arith.constant 8.000000e+00 : f32
    %579 = vector.broadcast %cst_143 : f32 to vector<1x32xf32>
    %580 = arith.divf %578, %579 : vector<1x32xf32>
    %581 = arith.mulf %576, %576 : vector<8x32xf32>
    %cst_144 = arith.constant dense<0.000000e+00> : vector<32xf32>
    %582 = vector.multi_reduction <add>, %581, %cst_144 [0] : vector<8x32xf32> to vector<32xf32>
    %583 = vector.shape_cast %582 : vector<32xf32> to vector<1x32xf32>
    %cst_145 = arith.constant 8.000000e+00 : f32
    %584 = vector.broadcast %cst_145 : f32 to vector<1x32xf32>
    %585 = arith.divf %583, %584 : vector<1x32xf32>
    %586 = arith.mulf %580, %580 : vector<1x32xf32>
    %587 = arith.subf %585, %586 : vector<1x32xf32>
    %cst_146 = arith.constant 9.99999974E-6 : f32
    %588 = vector.broadcast %cst_146 : f32 to vector<1x32xf32>
    %589 = arith.addf %587, %588 : vector<1x32xf32>
    %590 = math.rsqrt %589 : vector<1x32xf32>
    %591 = arith.mulf %590, %7 : vector<1x32xf32>
    %592 = vector.broadcast %591 : vector<1x32xf32> to vector<8x32xf32>
    %593 = arith.mulf %576, %592 : vector<8x32xf32>
    %594 = arith.mulf %580, %591 : vector<1x32xf32>
    %595 = arith.subf %8, %594 : vector<1x32xf32>
    %596 = vector.broadcast %595 : vector<1x32xf32> to vector<8x32xf32>
    %597 = arith.addf %593, %596 : vector<8x32xf32>
    %cst_147 = arith.constant 0.00999999977 : f32
    %598 = vector.broadcast %cst_147 : f32 to vector<8x32xf32>
    %599 = arith.mulf %598, %597 : vector<8x32xf32>
    %600 = arith.maximumf %597, %599 : vector<8x32xf32>
    %cst_148 = arith.constant dense<0.000000e+00> : vector<8x32xf32>
    %601 = tpu.matmul %600, %17, %cst_148 {dimension_numbers = #tpu.dot_dimension_numbers<[1], [0], [0], [1], [0, 0, 1, 1], [], []>} : vector<8x32xf32>, vector<32x32xf32>, vector<8x32xf32> -> vector<8x32xf32>
    %cst_149 = arith.constant dense<0.000000e+00> : vector<32xf32>
    %602 = vector.multi_reduction <add>, %601, %cst_149 [0] : vector<8x32xf32> to vector<32xf32>
    %603 = vector.shape_cast %602 : vector<32xf32> to vector<1x32xf32>
    %cst_150 = arith.constant 8.000000e+00 : f32
    %604 = vector.broadcast %cst_150 : f32 to vector<1x32xf32>
    %605 = arith.divf %603, %604 : vector<1x32xf32>
    %606 = arith.mulf %601, %601 : vector<8x32xf32>
    %cst_151 = arith.constant dense<0.000000e+00> : vector<32xf32>
    %607 = vector.multi_reduction <add>, %606, %cst_151 [0] : vector<8x32xf32> to vector<32xf32>
    %608 = vector.shape_cast %607 : vector<32xf32> to vector<1x32xf32>
    %cst_152 = arith.constant 8.000000e+00 : f32
    %609 = vector.broadcast %cst_152 : f32 to vector<1x32xf32>
    %610 = arith.divf %608, %609 : vector<1x32xf32>
    %611 = arith.mulf %605, %605 : vector<1x32xf32>
    %612 = arith.subf %610, %611 : vector<1x32xf32>
    %cst_153 = arith.constant 9.99999974E-6 : f32
    %613 = vector.broadcast %cst_153 : f32 to vector<1x32xf32>
    %614 = arith.addf %612, %613 : vector<1x32xf32>
    %615 = math.rsqrt %614 : vector<1x32xf32>
    %616 = arith.mulf %615, %9 : vector<1x32xf32>
    %617 = vector.broadcast %616 : vector<1x32xf32> to vector<8x32xf32>
    %618 = arith.mulf %601, %617 : vector<8x32xf32>
    %619 = arith.mulf %605, %616 : vector<1x32xf32>
    %620 = arith.subf %10, %619 : vector<1x32xf32>
    %621 = vector.broadcast %620 : vector<1x32xf32> to vector<8x32xf32>
    %622 = arith.addf %618, %621 : vector<8x32xf32>
    %cst_154 = arith.constant 0.00999999977 : f32
    %623 = vector.broadcast %cst_154 : f32 to vector<8x32xf32>
    %624 = arith.mulf %623, %622 : vector<8x32xf32>
    %625 = arith.maximumf %622, %624 : vector<8x32xf32>
    %626 = arith.mulf %625, %13 : vector<8x32xf32>
    %cst_155 = arith.constant dense<0.000000e+00> : vector<8xf32>
    %627 = vector.multi_reduction <add>, %626, %cst_155 [1] : vector<8x32xf32> to vector<8xf32>
    %628 = vector.shape_cast %627 : vector<8xf32> to vector<8x1xf32>
    %629 = arith.addf %628, %21 : vector<8x1xf32>
    %630 = arith.mulf %625, %16 : vector<8x32xf32>
    %cst_156 = arith.constant dense<0.000000e+00> : vector<8xf32>
    %631 = vector.multi_reduction <add>, %630, %cst_156 [1] : vector<8x32xf32> to vector<8xf32>
    %632 = vector.shape_cast %631 : vector<8xf32> to vector<8x1xf32>
    %633 = arith.addf %632, %24 : vector<8x1xf32>
    %cst_157 = arith.constant 5.000000e-02 : f32
    %634 = vector.broadcast %cst_157 : f32 to vector<8x1xf32>
    %635 = arith.mulf %634, %629 : vector<8x1xf32>
    %636 = arith.addf %568, %635 : vector<8x1xf32>
    %cst_158 = arith.constant 5.000000e-02 : f32
    %637 = vector.broadcast %cst_158 : f32 to vector<8x1xf32>
    %638 = arith.mulf %637, %633 : vector<8x1xf32>
    %639 = arith.addf %571, %638 : vector<8x1xf32>
    %c9_i32 = arith.constant 9 : i32
    %640 = vector.broadcast %636 : vector<8x1xf32> to vector<8x32xf32>
    %641 = arith.mulf %640, %3 : vector<8x32xf32>
    %642 = vector.broadcast %639 : vector<8x1xf32> to vector<8x32xf32>
    %643 = arith.mulf %642, %6 : vector<8x32xf32>
    %644 = arith.addf %641, %643 : vector<8x32xf32>
    %cst_159 = arith.constant dense<0.000000e+00> : vector<32xf32>
    %645 = vector.multi_reduction <add>, %644, %cst_159 [0] : vector<8x32xf32> to vector<32xf32>
    %646 = vector.shape_cast %645 : vector<32xf32> to vector<1x32xf32>
    %cst_160 = arith.constant 8.000000e+00 : f32
    %647 = vector.broadcast %cst_160 : f32 to vector<1x32xf32>
    %648 = arith.divf %646, %647 : vector<1x32xf32>
    %649 = arith.mulf %644, %644 : vector<8x32xf32>
    %cst_161 = arith.constant dense<0.000000e+00> : vector<32xf32>
    %650 = vector.multi_reduction <add>, %649, %cst_161 [0] : vector<8x32xf32> to vector<32xf32>
    %651 = vector.shape_cast %650 : vector<32xf32> to vector<1x32xf32>
    %cst_162 = arith.constant 8.000000e+00 : f32
    %652 = vector.broadcast %cst_162 : f32 to vector<1x32xf32>
    %653 = arith.divf %651, %652 : vector<1x32xf32>
    %654 = arith.mulf %648, %648 : vector<1x32xf32>
    %655 = arith.subf %653, %654 : vector<1x32xf32>
    %cst_163 = arith.constant 9.99999974E-6 : f32
    %656 = vector.broadcast %cst_163 : f32 to vector<1x32xf32>
    %657 = arith.addf %655, %656 : vector<1x32xf32>
    %658 = math.rsqrt %657 : vector<1x32xf32>
    %659 = arith.mulf %658, %7 : vector<1x32xf32>
    %660 = vector.broadcast %659 : vector<1x32xf32> to vector<8x32xf32>
    %661 = arith.mulf %644, %660 : vector<8x32xf32>
    %662 = arith.mulf %648, %659 : vector<1x32xf32>
    %663 = arith.subf %8, %662 : vector<1x32xf32>
    %664 = vector.broadcast %663 : vector<1x32xf32> to vector<8x32xf32>
    %665 = arith.addf %661, %664 : vector<8x32xf32>
    %cst_164 = arith.constant 0.00999999977 : f32
    %666 = vector.broadcast %cst_164 : f32 to vector<8x32xf32>
    %667 = arith.mulf %666, %665 : vector<8x32xf32>
    %668 = arith.maximumf %665, %667 : vector<8x32xf32>
    %cst_165 = arith.constant dense<0.000000e+00> : vector<8x32xf32>
    %669 = tpu.matmul %668, %17, %cst_165 {dimension_numbers = #tpu.dot_dimension_numbers<[1], [0], [0], [1], [0, 0, 1, 1], [], []>} : vector<8x32xf32>, vector<32x32xf32>, vector<8x32xf32> -> vector<8x32xf32>
    %cst_166 = arith.constant dense<0.000000e+00> : vector<32xf32>
    %670 = vector.multi_reduction <add>, %669, %cst_166 [0] : vector<8x32xf32> to vector<32xf32>
    %671 = vector.shape_cast %670 : vector<32xf32> to vector<1x32xf32>
    %cst_167 = arith.constant 8.000000e+00 : f32
    %672 = vector.broadcast %cst_167 : f32 to vector<1x32xf32>
    %673 = arith.divf %671, %672 : vector<1x32xf32>
    %674 = arith.mulf %669, %669 : vector<8x32xf32>
    %cst_168 = arith.constant dense<0.000000e+00> : vector<32xf32>
    %675 = vector.multi_reduction <add>, %674, %cst_168 [0] : vector<8x32xf32> to vector<32xf32>
    %676 = vector.shape_cast %675 : vector<32xf32> to vector<1x32xf32>
    %cst_169 = arith.constant 8.000000e+00 : f32
    %677 = vector.broadcast %cst_169 : f32 to vector<1x32xf32>
    %678 = arith.divf %676, %677 : vector<1x32xf32>
    %679 = arith.mulf %673, %673 : vector<1x32xf32>
    %680 = arith.subf %678, %679 : vector<1x32xf32>
    %cst_170 = arith.constant 9.99999974E-6 : f32
    %681 = vector.broadcast %cst_170 : f32 to vector<1x32xf32>
    %682 = arith.addf %680, %681 : vector<1x32xf32>
    %683 = math.rsqrt %682 : vector<1x32xf32>
    %684 = arith.mulf %683, %9 : vector<1x32xf32>
    %685 = vector.broadcast %684 : vector<1x32xf32> to vector<8x32xf32>
    %686 = arith.mulf %669, %685 : vector<8x32xf32>
    %687 = arith.mulf %673, %684 : vector<1x32xf32>
    %688 = arith.subf %10, %687 : vector<1x32xf32>
    %689 = vector.broadcast %688 : vector<1x32xf32> to vector<8x32xf32>
    %690 = arith.addf %686, %689 : vector<8x32xf32>
    %cst_171 = arith.constant 0.00999999977 : f32
    %691 = vector.broadcast %cst_171 : f32 to vector<8x32xf32>
    %692 = arith.mulf %691, %690 : vector<8x32xf32>
    %693 = arith.maximumf %690, %692 : vector<8x32xf32>
    %694 = arith.mulf %693, %13 : vector<8x32xf32>
    %cst_172 = arith.constant dense<0.000000e+00> : vector<8xf32>
    %695 = vector.multi_reduction <add>, %694, %cst_172 [1] : vector<8x32xf32> to vector<8xf32>
    %696 = vector.shape_cast %695 : vector<8xf32> to vector<8x1xf32>
    %697 = arith.addf %696, %21 : vector<8x1xf32>
    %698 = arith.mulf %693, %16 : vector<8x32xf32>
    %cst_173 = arith.constant dense<0.000000e+00> : vector<8xf32>
    %699 = vector.multi_reduction <add>, %698, %cst_173 [1] : vector<8x32xf32> to vector<8xf32>
    %700 = vector.shape_cast %699 : vector<8xf32> to vector<8x1xf32>
    %701 = arith.addf %700, %24 : vector<8x1xf32>
    %cst_174 = arith.constant 5.000000e-02 : f32
    %702 = vector.broadcast %cst_174 : f32 to vector<8x1xf32>
    %703 = arith.mulf %702, %697 : vector<8x1xf32>
    %704 = arith.addf %636, %703 : vector<8x1xf32>
    %cst_175 = arith.constant 5.000000e-02 : f32
    %705 = vector.broadcast %cst_175 : f32 to vector<8x1xf32>
    %706 = arith.mulf %705, %701 : vector<8x1xf32>
    %707 = arith.addf %639, %706 : vector<8x1xf32>
    %c10_i32 = arith.constant 10 : i32
    %708 = vector.broadcast %704 : vector<8x1xf32> to vector<8x32xf32>
    %709 = arith.mulf %708, %3 : vector<8x32xf32>
    %710 = vector.broadcast %707 : vector<8x1xf32> to vector<8x32xf32>
    %711 = arith.mulf %710, %6 : vector<8x32xf32>
    %712 = arith.addf %709, %711 : vector<8x32xf32>
    %cst_176 = arith.constant dense<0.000000e+00> : vector<32xf32>
    %713 = vector.multi_reduction <add>, %712, %cst_176 [0] : vector<8x32xf32> to vector<32xf32>
    %714 = vector.shape_cast %713 : vector<32xf32> to vector<1x32xf32>
    %cst_177 = arith.constant 8.000000e+00 : f32
    %715 = vector.broadcast %cst_177 : f32 to vector<1x32xf32>
    %716 = arith.divf %714, %715 : vector<1x32xf32>
    %717 = arith.mulf %712, %712 : vector<8x32xf32>
    %cst_178 = arith.constant dense<0.000000e+00> : vector<32xf32>
    %718 = vector.multi_reduction <add>, %717, %cst_178 [0] : vector<8x32xf32> to vector<32xf32>
    %719 = vector.shape_cast %718 : vector<32xf32> to vector<1x32xf32>
    %cst_179 = arith.constant 8.000000e+00 : f32
    %720 = vector.broadcast %cst_179 : f32 to vector<1x32xf32>
    %721 = arith.divf %719, %720 : vector<1x32xf32>
    %722 = arith.mulf %716, %716 : vector<1x32xf32>
    %723 = arith.subf %721, %722 : vector<1x32xf32>
    %cst_180 = arith.constant 9.99999974E-6 : f32
    %724 = vector.broadcast %cst_180 : f32 to vector<1x32xf32>
    %725 = arith.addf %723, %724 : vector<1x32xf32>
    %726 = math.rsqrt %725 : vector<1x32xf32>
    %727 = arith.mulf %726, %7 : vector<1x32xf32>
    %728 = vector.broadcast %727 : vector<1x32xf32> to vector<8x32xf32>
    %729 = arith.mulf %712, %728 : vector<8x32xf32>
    %730 = arith.mulf %716, %727 : vector<1x32xf32>
    %731 = arith.subf %8, %730 : vector<1x32xf32>
    %732 = vector.broadcast %731 : vector<1x32xf32> to vector<8x32xf32>
    %733 = arith.addf %729, %732 : vector<8x32xf32>
    %cst_181 = arith.constant 0.00999999977 : f32
    %734 = vector.broadcast %cst_181 : f32 to vector<8x32xf32>
    %735 = arith.mulf %734, %733 : vector<8x32xf32>
    %736 = arith.maximumf %733, %735 : vector<8x32xf32>
    %cst_182 = arith.constant dense<0.000000e+00> : vector<8x32xf32>
    %737 = tpu.matmul %736, %17, %cst_182 {dimension_numbers = #tpu.dot_dimension_numbers<[1], [0], [0], [1], [0, 0, 1, 1], [], []>} : vector<8x32xf32>, vector<32x32xf32>, vector<8x32xf32> -> vector<8x32xf32>
    %cst_183 = arith.constant dense<0.000000e+00> : vector<32xf32>
    %738 = vector.multi_reduction <add>, %737, %cst_183 [0] : vector<8x32xf32> to vector<32xf32>
    %739 = vector.shape_cast %738 : vector<32xf32> to vector<1x32xf32>
    %cst_184 = arith.constant 8.000000e+00 : f32
    %740 = vector.broadcast %cst_184 : f32 to vector<1x32xf32>
    %741 = arith.divf %739, %740 : vector<1x32xf32>
    %742 = arith.mulf %737, %737 : vector<8x32xf32>
    %cst_185 = arith.constant dense<0.000000e+00> : vector<32xf32>
    %743 = vector.multi_reduction <add>, %742, %cst_185 [0] : vector<8x32xf32> to vector<32xf32>
    %744 = vector.shape_cast %743 : vector<32xf32> to vector<1x32xf32>
    %cst_186 = arith.constant 8.000000e+00 : f32
    %745 = vector.broadcast %cst_186 : f32 to vector<1x32xf32>
    %746 = arith.divf %744, %745 : vector<1x32xf32>
    %747 = arith.mulf %741, %741 : vector<1x32xf32>
    %748 = arith.subf %746, %747 : vector<1x32xf32>
    %cst_187 = arith.constant 9.99999974E-6 : f32
    %749 = vector.broadcast %cst_187 : f32 to vector<1x32xf32>
    %750 = arith.addf %748, %749 : vector<1x32xf32>
    %751 = math.rsqrt %750 : vector<1x32xf32>
    %752 = arith.mulf %751, %9 : vector<1x32xf32>
    %753 = vector.broadcast %752 : vector<1x32xf32> to vector<8x32xf32>
    %754 = arith.mulf %737, %753 : vector<8x32xf32>
    %755 = arith.mulf %741, %752 : vector<1x32xf32>
    %756 = arith.subf %10, %755 : vector<1x32xf32>
    %757 = vector.broadcast %756 : vector<1x32xf32> to vector<8x32xf32>
    %758 = arith.addf %754, %757 : vector<8x32xf32>
    %cst_188 = arith.constant 0.00999999977 : f32
    %759 = vector.broadcast %cst_188 : f32 to vector<8x32xf32>
    %760 = arith.mulf %759, %758 : vector<8x32xf32>
    %761 = arith.maximumf %758, %760 : vector<8x32xf32>
    %762 = arith.mulf %761, %13 : vector<8x32xf32>
    %cst_189 = arith.constant dense<0.000000e+00> : vector<8xf32>
    %763 = vector.multi_reduction <add>, %762, %cst_189 [1] : vector<8x32xf32> to vector<8xf32>
    %764 = vector.shape_cast %763 : vector<8xf32> to vector<8x1xf32>
    %765 = arith.addf %764, %21 : vector<8x1xf32>
    %766 = arith.mulf %761, %16 : vector<8x32xf32>
    %cst_190 = arith.constant dense<0.000000e+00> : vector<8xf32>
    %767 = vector.multi_reduction <add>, %766, %cst_190 [1] : vector<8x32xf32> to vector<8xf32>
    %768 = vector.shape_cast %767 : vector<8xf32> to vector<8x1xf32>
    %769 = arith.addf %768, %24 : vector<8x1xf32>
    %cst_191 = arith.constant 5.000000e-02 : f32
    %770 = vector.broadcast %cst_191 : f32 to vector<8x1xf32>
    %771 = arith.mulf %770, %765 : vector<8x1xf32>
    %772 = arith.addf %704, %771 : vector<8x1xf32>
    %cst_192 = arith.constant 5.000000e-02 : f32
    %773 = vector.broadcast %cst_192 : f32 to vector<8x1xf32>
    %774 = arith.mulf %773, %769 : vector<8x1xf32>
    %775 = arith.addf %707, %774 : vector<8x1xf32>
    %c11_i32 = arith.constant 11 : i32
    %776 = vector.broadcast %772 : vector<8x1xf32> to vector<8x32xf32>
    %777 = arith.mulf %776, %3 : vector<8x32xf32>
    %778 = vector.broadcast %775 : vector<8x1xf32> to vector<8x32xf32>
    %779 = arith.mulf %778, %6 : vector<8x32xf32>
    %780 = arith.addf %777, %779 : vector<8x32xf32>
    %cst_193 = arith.constant dense<0.000000e+00> : vector<32xf32>
    %781 = vector.multi_reduction <add>, %780, %cst_193 [0] : vector<8x32xf32> to vector<32xf32>
    %782 = vector.shape_cast %781 : vector<32xf32> to vector<1x32xf32>
    %cst_194 = arith.constant 8.000000e+00 : f32
    %783 = vector.broadcast %cst_194 : f32 to vector<1x32xf32>
    %784 = arith.divf %782, %783 : vector<1x32xf32>
    %785 = arith.mulf %780, %780 : vector<8x32xf32>
    %cst_195 = arith.constant dense<0.000000e+00> : vector<32xf32>
    %786 = vector.multi_reduction <add>, %785, %cst_195 [0] : vector<8x32xf32> to vector<32xf32>
    %787 = vector.shape_cast %786 : vector<32xf32> to vector<1x32xf32>
    %cst_196 = arith.constant 8.000000e+00 : f32
    %788 = vector.broadcast %cst_196 : f32 to vector<1x32xf32>
    %789 = arith.divf %787, %788 : vector<1x32xf32>
    %790 = arith.mulf %784, %784 : vector<1x32xf32>
    %791 = arith.subf %789, %790 : vector<1x32xf32>
    %cst_197 = arith.constant 9.99999974E-6 : f32
    %792 = vector.broadcast %cst_197 : f32 to vector<1x32xf32>
    %793 = arith.addf %791, %792 : vector<1x32xf32>
    %794 = math.rsqrt %793 : vector<1x32xf32>
    %795 = arith.mulf %794, %7 : vector<1x32xf32>
    %796 = vector.broadcast %795 : vector<1x32xf32> to vector<8x32xf32>
    %797 = arith.mulf %780, %796 : vector<8x32xf32>
    %798 = arith.mulf %784, %795 : vector<1x32xf32>
    %799 = arith.subf %8, %798 : vector<1x32xf32>
    %800 = vector.broadcast %799 : vector<1x32xf32> to vector<8x32xf32>
    %801 = arith.addf %797, %800 : vector<8x32xf32>
    %cst_198 = arith.constant 0.00999999977 : f32
    %802 = vector.broadcast %cst_198 : f32 to vector<8x32xf32>
    %803 = arith.mulf %802, %801 : vector<8x32xf32>
    %804 = arith.maximumf %801, %803 : vector<8x32xf32>
    %cst_199 = arith.constant dense<0.000000e+00> : vector<8x32xf32>
    %805 = tpu.matmul %804, %17, %cst_199 {dimension_numbers = #tpu.dot_dimension_numbers<[1], [0], [0], [1], [0, 0, 1, 1], [], []>} : vector<8x32xf32>, vector<32x32xf32>, vector<8x32xf32> -> vector<8x32xf32>
    %cst_200 = arith.constant dense<0.000000e+00> : vector<32xf32>
    %806 = vector.multi_reduction <add>, %805, %cst_200 [0] : vector<8x32xf32> to vector<32xf32>
    %807 = vector.shape_cast %806 : vector<32xf32> to vector<1x32xf32>
    %cst_201 = arith.constant 8.000000e+00 : f32
    %808 = vector.broadcast %cst_201 : f32 to vector<1x32xf32>
    %809 = arith.divf %807, %808 : vector<1x32xf32>
    %810 = arith.mulf %805, %805 : vector<8x32xf32>
    %cst_202 = arith.constant dense<0.000000e+00> : vector<32xf32>
    %811 = vector.multi_reduction <add>, %810, %cst_202 [0] : vector<8x32xf32> to vector<32xf32>
    %812 = vector.shape_cast %811 : vector<32xf32> to vector<1x32xf32>
    %cst_203 = arith.constant 8.000000e+00 : f32
    %813 = vector.broadcast %cst_203 : f32 to vector<1x32xf32>
    %814 = arith.divf %812, %813 : vector<1x32xf32>
    %815 = arith.mulf %809, %809 : vector<1x32xf32>
    %816 = arith.subf %814, %815 : vector<1x32xf32>
    %cst_204 = arith.constant 9.99999974E-6 : f32
    %817 = vector.broadcast %cst_204 : f32 to vector<1x32xf32>
    %818 = arith.addf %816, %817 : vector<1x32xf32>
    %819 = math.rsqrt %818 : vector<1x32xf32>
    %820 = arith.mulf %819, %9 : vector<1x32xf32>
    %821 = vector.broadcast %820 : vector<1x32xf32> to vector<8x32xf32>
    %822 = arith.mulf %805, %821 : vector<8x32xf32>
    %823 = arith.mulf %809, %820 : vector<1x32xf32>
    %824 = arith.subf %10, %823 : vector<1x32xf32>
    %825 = vector.broadcast %824 : vector<1x32xf32> to vector<8x32xf32>
    %826 = arith.addf %822, %825 : vector<8x32xf32>
    %cst_205 = arith.constant 0.00999999977 : f32
    %827 = vector.broadcast %cst_205 : f32 to vector<8x32xf32>
    %828 = arith.mulf %827, %826 : vector<8x32xf32>
    %829 = arith.maximumf %826, %828 : vector<8x32xf32>
    %830 = arith.mulf %829, %13 : vector<8x32xf32>
    %cst_206 = arith.constant dense<0.000000e+00> : vector<8xf32>
    %831 = vector.multi_reduction <add>, %830, %cst_206 [1] : vector<8x32xf32> to vector<8xf32>
    %832 = vector.shape_cast %831 : vector<8xf32> to vector<8x1xf32>
    %833 = arith.addf %832, %21 : vector<8x1xf32>
    %834 = arith.mulf %829, %16 : vector<8x32xf32>
    %cst_207 = arith.constant dense<0.000000e+00> : vector<8xf32>
    %835 = vector.multi_reduction <add>, %834, %cst_207 [1] : vector<8x32xf32> to vector<8xf32>
    %836 = vector.shape_cast %835 : vector<8xf32> to vector<8x1xf32>
    %837 = arith.addf %836, %24 : vector<8x1xf32>
    %cst_208 = arith.constant 5.000000e-02 : f32
    %838 = vector.broadcast %cst_208 : f32 to vector<8x1xf32>
    %839 = arith.mulf %838, %833 : vector<8x1xf32>
    %840 = arith.addf %772, %839 : vector<8x1xf32>
    %cst_209 = arith.constant 5.000000e-02 : f32
    %841 = vector.broadcast %cst_209 : f32 to vector<8x1xf32>
    %842 = arith.mulf %841, %837 : vector<8x1xf32>
    %843 = arith.addf %775, %842 : vector<8x1xf32>
    %c12_i32 = arith.constant 12 : i32
    %844 = vector.broadcast %840 : vector<8x1xf32> to vector<8x32xf32>
    %845 = arith.mulf %844, %3 : vector<8x32xf32>
    %846 = vector.broadcast %843 : vector<8x1xf32> to vector<8x32xf32>
    %847 = arith.mulf %846, %6 : vector<8x32xf32>
    %848 = arith.addf %845, %847 : vector<8x32xf32>
    %cst_210 = arith.constant dense<0.000000e+00> : vector<32xf32>
    %849 = vector.multi_reduction <add>, %848, %cst_210 [0] : vector<8x32xf32> to vector<32xf32>
    %850 = vector.shape_cast %849 : vector<32xf32> to vector<1x32xf32>
    %cst_211 = arith.constant 8.000000e+00 : f32
    %851 = vector.broadcast %cst_211 : f32 to vector<1x32xf32>
    %852 = arith.divf %850, %851 : vector<1x32xf32>
    %853 = arith.mulf %848, %848 : vector<8x32xf32>
    %cst_212 = arith.constant dense<0.000000e+00> : vector<32xf32>
    %854 = vector.multi_reduction <add>, %853, %cst_212 [0] : vector<8x32xf32> to vector<32xf32>
    %855 = vector.shape_cast %854 : vector<32xf32> to vector<1x32xf32>
    %cst_213 = arith.constant 8.000000e+00 : f32
    %856 = vector.broadcast %cst_213 : f32 to vector<1x32xf32>
    %857 = arith.divf %855, %856 : vector<1x32xf32>
    %858 = arith.mulf %852, %852 : vector<1x32xf32>
    %859 = arith.subf %857, %858 : vector<1x32xf32>
    %cst_214 = arith.constant 9.99999974E-6 : f32
    %860 = vector.broadcast %cst_214 : f32 to vector<1x32xf32>
    %861 = arith.addf %859, %860 : vector<1x32xf32>
    %862 = math.rsqrt %861 : vector<1x32xf32>
    %863 = arith.mulf %862, %7 : vector<1x32xf32>
    %864 = vector.broadcast %863 : vector<1x32xf32> to vector<8x32xf32>
    %865 = arith.mulf %848, %864 : vector<8x32xf32>
    %866 = arith.mulf %852, %863 : vector<1x32xf32>
    %867 = arith.subf %8, %866 : vector<1x32xf32>
    %868 = vector.broadcast %867 : vector<1x32xf32> to vector<8x32xf32>
    %869 = arith.addf %865, %868 : vector<8x32xf32>
    %cst_215 = arith.constant 0.00999999977 : f32
    %870 = vector.broadcast %cst_215 : f32 to vector<8x32xf32>
    %871 = arith.mulf %870, %869 : vector<8x32xf32>
    %872 = arith.maximumf %869, %871 : vector<8x32xf32>
    %cst_216 = arith.constant dense<0.000000e+00> : vector<8x32xf32>
    %873 = tpu.matmul %872, %17, %cst_216 {dimension_numbers = #tpu.dot_dimension_numbers<[1], [0], [0], [1], [0, 0, 1, 1], [], []>} : vector<8x32xf32>, vector<32x32xf32>, vector<8x32xf32> -> vector<8x32xf32>
    %cst_217 = arith.constant dense<0.000000e+00> : vector<32xf32>
    %874 = vector.multi_reduction <add>, %873, %cst_217 [0] : vector<8x32xf32> to vector<32xf32>
    %875 = vector.shape_cast %874 : vector<32xf32> to vector<1x32xf32>
    %cst_218 = arith.constant 8.000000e+00 : f32
    %876 = vector.broadcast %cst_218 : f32 to vector<1x32xf32>
    %877 = arith.divf %875, %876 : vector<1x32xf32>
    %878 = arith.mulf %873, %873 : vector<8x32xf32>
    %cst_219 = arith.constant dense<0.000000e+00> : vector<32xf32>
    %879 = vector.multi_reduction <add>, %878, %cst_219 [0] : vector<8x32xf32> to vector<32xf32>
    %880 = vector.shape_cast %879 : vector<32xf32> to vector<1x32xf32>
    %cst_220 = arith.constant 8.000000e+00 : f32
    %881 = vector.broadcast %cst_220 : f32 to vector<1x32xf32>
    %882 = arith.divf %880, %881 : vector<1x32xf32>
    %883 = arith.mulf %877, %877 : vector<1x32xf32>
    %884 = arith.subf %882, %883 : vector<1x32xf32>
    %cst_221 = arith.constant 9.99999974E-6 : f32
    %885 = vector.broadcast %cst_221 : f32 to vector<1x32xf32>
    %886 = arith.addf %884, %885 : vector<1x32xf32>
    %887 = math.rsqrt %886 : vector<1x32xf32>
    %888 = arith.mulf %887, %9 : vector<1x32xf32>
    %889 = vector.broadcast %888 : vector<1x32xf32> to vector<8x32xf32>
    %890 = arith.mulf %873, %889 : vector<8x32xf32>
    %891 = arith.mulf %877, %888 : vector<1x32xf32>
    %892 = arith.subf %10, %891 : vector<1x32xf32>
    %893 = vector.broadcast %892 : vector<1x32xf32> to vector<8x32xf32>
    %894 = arith.addf %890, %893 : vector<8x32xf32>
    %cst_222 = arith.constant 0.00999999977 : f32
    %895 = vector.broadcast %cst_222 : f32 to vector<8x32xf32>
    %896 = arith.mulf %895, %894 : vector<8x32xf32>
    %897 = arith.maximumf %894, %896 : vector<8x32xf32>
    %898 = arith.mulf %897, %13 : vector<8x32xf32>
    %cst_223 = arith.constant dense<0.000000e+00> : vector<8xf32>
    %899 = vector.multi_reduction <add>, %898, %cst_223 [1] : vector<8x32xf32> to vector<8xf32>
    %900 = vector.shape_cast %899 : vector<8xf32> to vector<8x1xf32>
    %901 = arith.addf %900, %21 : vector<8x1xf32>
    %902 = arith.mulf %897, %16 : vector<8x32xf32>
    %cst_224 = arith.constant dense<0.000000e+00> : vector<8xf32>
    %903 = vector.multi_reduction <add>, %902, %cst_224 [1] : vector<8x32xf32> to vector<8xf32>
    %904 = vector.shape_cast %903 : vector<8xf32> to vector<8x1xf32>
    %905 = arith.addf %904, %24 : vector<8x1xf32>
    %cst_225 = arith.constant 5.000000e-02 : f32
    %906 = vector.broadcast %cst_225 : f32 to vector<8x1xf32>
    %907 = arith.mulf %906, %901 : vector<8x1xf32>
    %908 = arith.addf %840, %907 : vector<8x1xf32>
    %cst_226 = arith.constant 5.000000e-02 : f32
    %909 = vector.broadcast %cst_226 : f32 to vector<8x1xf32>
    %910 = arith.mulf %909, %905 : vector<8x1xf32>
    %911 = arith.addf %843, %910 : vector<8x1xf32>
    %c13_i32 = arith.constant 13 : i32
    %912 = vector.broadcast %908 : vector<8x1xf32> to vector<8x32xf32>
    %913 = arith.mulf %912, %3 : vector<8x32xf32>
    %914 = vector.broadcast %911 : vector<8x1xf32> to vector<8x32xf32>
    %915 = arith.mulf %914, %6 : vector<8x32xf32>
    %916 = arith.addf %913, %915 : vector<8x32xf32>
    %cst_227 = arith.constant dense<0.000000e+00> : vector<32xf32>
    %917 = vector.multi_reduction <add>, %916, %cst_227 [0] : vector<8x32xf32> to vector<32xf32>
    %918 = vector.shape_cast %917 : vector<32xf32> to vector<1x32xf32>
    %cst_228 = arith.constant 8.000000e+00 : f32
    %919 = vector.broadcast %cst_228 : f32 to vector<1x32xf32>
    %920 = arith.divf %918, %919 : vector<1x32xf32>
    %921 = arith.mulf %916, %916 : vector<8x32xf32>
    %cst_229 = arith.constant dense<0.000000e+00> : vector<32xf32>
    %922 = vector.multi_reduction <add>, %921, %cst_229 [0] : vector<8x32xf32> to vector<32xf32>
    %923 = vector.shape_cast %922 : vector<32xf32> to vector<1x32xf32>
    %cst_230 = arith.constant 8.000000e+00 : f32
    %924 = vector.broadcast %cst_230 : f32 to vector<1x32xf32>
    %925 = arith.divf %923, %924 : vector<1x32xf32>
    %926 = arith.mulf %920, %920 : vector<1x32xf32>
    %927 = arith.subf %925, %926 : vector<1x32xf32>
    %cst_231 = arith.constant 9.99999974E-6 : f32
    %928 = vector.broadcast %cst_231 : f32 to vector<1x32xf32>
    %929 = arith.addf %927, %928 : vector<1x32xf32>
    %930 = math.rsqrt %929 : vector<1x32xf32>
    %931 = arith.mulf %930, %7 : vector<1x32xf32>
    %932 = vector.broadcast %931 : vector<1x32xf32> to vector<8x32xf32>
    %933 = arith.mulf %916, %932 : vector<8x32xf32>
    %934 = arith.mulf %920, %931 : vector<1x32xf32>
    %935 = arith.subf %8, %934 : vector<1x32xf32>
    %936 = vector.broadcast %935 : vector<1x32xf32> to vector<8x32xf32>
    %937 = arith.addf %933, %936 : vector<8x32xf32>
    %cst_232 = arith.constant 0.00999999977 : f32
    %938 = vector.broadcast %cst_232 : f32 to vector<8x32xf32>
    %939 = arith.mulf %938, %937 : vector<8x32xf32>
    %940 = arith.maximumf %937, %939 : vector<8x32xf32>
    %cst_233 = arith.constant dense<0.000000e+00> : vector<8x32xf32>
    %941 = tpu.matmul %940, %17, %cst_233 {dimension_numbers = #tpu.dot_dimension_numbers<[1], [0], [0], [1], [0, 0, 1, 1], [], []>} : vector<8x32xf32>, vector<32x32xf32>, vector<8x32xf32> -> vector<8x32xf32>
    %cst_234 = arith.constant dense<0.000000e+00> : vector<32xf32>
    %942 = vector.multi_reduction <add>, %941, %cst_234 [0] : vector<8x32xf32> to vector<32xf32>
    %943 = vector.shape_cast %942 : vector<32xf32> to vector<1x32xf32>
    %cst_235 = arith.constant 8.000000e+00 : f32
    %944 = vector.broadcast %cst_235 : f32 to vector<1x32xf32>
    %945 = arith.divf %943, %944 : vector<1x32xf32>
    %946 = arith.mulf %941, %941 : vector<8x32xf32>
    %cst_236 = arith.constant dense<0.000000e+00> : vector<32xf32>
    %947 = vector.multi_reduction <add>, %946, %cst_236 [0] : vector<8x32xf32> to vector<32xf32>
    %948 = vector.shape_cast %947 : vector<32xf32> to vector<1x32xf32>
    %cst_237 = arith.constant 8.000000e+00 : f32
    %949 = vector.broadcast %cst_237 : f32 to vector<1x32xf32>
    %950 = arith.divf %948, %949 : vector<1x32xf32>
    %951 = arith.mulf %945, %945 : vector<1x32xf32>
    %952 = arith.subf %950, %951 : vector<1x32xf32>
    %cst_238 = arith.constant 9.99999974E-6 : f32
    %953 = vector.broadcast %cst_238 : f32 to vector<1x32xf32>
    %954 = arith.addf %952, %953 : vector<1x32xf32>
    %955 = math.rsqrt %954 : vector<1x32xf32>
    %956 = arith.mulf %955, %9 : vector<1x32xf32>
    %957 = vector.broadcast %956 : vector<1x32xf32> to vector<8x32xf32>
    %958 = arith.mulf %941, %957 : vector<8x32xf32>
    %959 = arith.mulf %945, %956 : vector<1x32xf32>
    %960 = arith.subf %10, %959 : vector<1x32xf32>
    %961 = vector.broadcast %960 : vector<1x32xf32> to vector<8x32xf32>
    %962 = arith.addf %958, %961 : vector<8x32xf32>
    %cst_239 = arith.constant 0.00999999977 : f32
    %963 = vector.broadcast %cst_239 : f32 to vector<8x32xf32>
    %964 = arith.mulf %963, %962 : vector<8x32xf32>
    %965 = arith.maximumf %962, %964 : vector<8x32xf32>
    %966 = arith.mulf %965, %13 : vector<8x32xf32>
    %cst_240 = arith.constant dense<0.000000e+00> : vector<8xf32>
    %967 = vector.multi_reduction <add>, %966, %cst_240 [1] : vector<8x32xf32> to vector<8xf32>
    %968 = vector.shape_cast %967 : vector<8xf32> to vector<8x1xf32>
    %969 = arith.addf %968, %21 : vector<8x1xf32>
    %970 = arith.mulf %965, %16 : vector<8x32xf32>
    %cst_241 = arith.constant dense<0.000000e+00> : vector<8xf32>
    %971 = vector.multi_reduction <add>, %970, %cst_241 [1] : vector<8x32xf32> to vector<8xf32>
    %972 = vector.shape_cast %971 : vector<8xf32> to vector<8x1xf32>
    %973 = arith.addf %972, %24 : vector<8x1xf32>
    %cst_242 = arith.constant 5.000000e-02 : f32
    %974 = vector.broadcast %cst_242 : f32 to vector<8x1xf32>
    %975 = arith.mulf %974, %969 : vector<8x1xf32>
    %976 = arith.addf %908, %975 : vector<8x1xf32>
    %cst_243 = arith.constant 5.000000e-02 : f32
    %977 = vector.broadcast %cst_243 : f32 to vector<8x1xf32>
    %978 = arith.mulf %977, %973 : vector<8x1xf32>
    %979 = arith.addf %911, %978 : vector<8x1xf32>
    %c14_i32 = arith.constant 14 : i32
    %980 = vector.broadcast %976 : vector<8x1xf32> to vector<8x32xf32>
    %981 = arith.mulf %980, %3 : vector<8x32xf32>
    %982 = vector.broadcast %979 : vector<8x1xf32> to vector<8x32xf32>
    %983 = arith.mulf %982, %6 : vector<8x32xf32>
    %984 = arith.addf %981, %983 : vector<8x32xf32>
    %cst_244 = arith.constant dense<0.000000e+00> : vector<32xf32>
    %985 = vector.multi_reduction <add>, %984, %cst_244 [0] : vector<8x32xf32> to vector<32xf32>
    %986 = vector.shape_cast %985 : vector<32xf32> to vector<1x32xf32>
    %cst_245 = arith.constant 8.000000e+00 : f32
    %987 = vector.broadcast %cst_245 : f32 to vector<1x32xf32>
    %988 = arith.divf %986, %987 : vector<1x32xf32>
    %989 = arith.mulf %984, %984 : vector<8x32xf32>
    %cst_246 = arith.constant dense<0.000000e+00> : vector<32xf32>
    %990 = vector.multi_reduction <add>, %989, %cst_246 [0] : vector<8x32xf32> to vector<32xf32>
    %991 = vector.shape_cast %990 : vector<32xf32> to vector<1x32xf32>
    %cst_247 = arith.constant 8.000000e+00 : f32
    %992 = vector.broadcast %cst_247 : f32 to vector<1x32xf32>
    %993 = arith.divf %991, %992 : vector<1x32xf32>
    %994 = arith.mulf %988, %988 : vector<1x32xf32>
    %995 = arith.subf %993, %994 : vector<1x32xf32>
    %cst_248 = arith.constant 9.99999974E-6 : f32
    %996 = vector.broadcast %cst_248 : f32 to vector<1x32xf32>
    %997 = arith.addf %995, %996 : vector<1x32xf32>
    %998 = math.rsqrt %997 : vector<1x32xf32>
    %999 = arith.mulf %998, %7 : vector<1x32xf32>
    %1000 = vector.broadcast %999 : vector<1x32xf32> to vector<8x32xf32>
    %1001 = arith.mulf %984, %1000 : vector<8x32xf32>
    %1002 = arith.mulf %988, %999 : vector<1x32xf32>
    %1003 = arith.subf %8, %1002 : vector<1x32xf32>
    %1004 = vector.broadcast %1003 : vector<1x32xf32> to vector<8x32xf32>
    %1005 = arith.addf %1001, %1004 : vector<8x32xf32>
    %cst_249 = arith.constant 0.00999999977 : f32
    %1006 = vector.broadcast %cst_249 : f32 to vector<8x32xf32>
    %1007 = arith.mulf %1006, %1005 : vector<8x32xf32>
    %1008 = arith.maximumf %1005, %1007 : vector<8x32xf32>
    %cst_250 = arith.constant dense<0.000000e+00> : vector<8x32xf32>
    %1009 = tpu.matmul %1008, %17, %cst_250 {dimension_numbers = #tpu.dot_dimension_numbers<[1], [0], [0], [1], [0, 0, 1, 1], [], []>} : vector<8x32xf32>, vector<32x32xf32>, vector<8x32xf32> -> vector<8x32xf32>
    %cst_251 = arith.constant dense<0.000000e+00> : vector<32xf32>
    %1010 = vector.multi_reduction <add>, %1009, %cst_251 [0] : vector<8x32xf32> to vector<32xf32>
    %1011 = vector.shape_cast %1010 : vector<32xf32> to vector<1x32xf32>
    %cst_252 = arith.constant 8.000000e+00 : f32
    %1012 = vector.broadcast %cst_252 : f32 to vector<1x32xf32>
    %1013 = arith.divf %1011, %1012 : vector<1x32xf32>
    %1014 = arith.mulf %1009, %1009 : vector<8x32xf32>
    %cst_253 = arith.constant dense<0.000000e+00> : vector<32xf32>
    %1015 = vector.multi_reduction <add>, %1014, %cst_253 [0] : vector<8x32xf32> to vector<32xf32>
    %1016 = vector.shape_cast %1015 : vector<32xf32> to vector<1x32xf32>
    %cst_254 = arith.constant 8.000000e+00 : f32
    %1017 = vector.broadcast %cst_254 : f32 to vector<1x32xf32>
    %1018 = arith.divf %1016, %1017 : vector<1x32xf32>
    %1019 = arith.mulf %1013, %1013 : vector<1x32xf32>
    %1020 = arith.subf %1018, %1019 : vector<1x32xf32>
    %cst_255 = arith.constant 9.99999974E-6 : f32
    %1021 = vector.broadcast %cst_255 : f32 to vector<1x32xf32>
    %1022 = arith.addf %1020, %1021 : vector<1x32xf32>
    %1023 = math.rsqrt %1022 : vector<1x32xf32>
    %1024 = arith.mulf %1023, %9 : vector<1x32xf32>
    %1025 = vector.broadcast %1024 : vector<1x32xf32> to vector<8x32xf32>
    %1026 = arith.mulf %1009, %1025 : vector<8x32xf32>
    %1027 = arith.mulf %1013, %1024 : vector<1x32xf32>
    %1028 = arith.subf %10, %1027 : vector<1x32xf32>
    %1029 = vector.broadcast %1028 : vector<1x32xf32> to vector<8x32xf32>
    %1030 = arith.addf %1026, %1029 : vector<8x32xf32>
    %cst_256 = arith.constant 0.00999999977 : f32
    %1031 = vector.broadcast %cst_256 : f32 to vector<8x32xf32>
    %1032 = arith.mulf %1031, %1030 : vector<8x32xf32>
    %1033 = arith.maximumf %1030, %1032 : vector<8x32xf32>
    %1034 = arith.mulf %1033, %13 : vector<8x32xf32>
    %cst_257 = arith.constant dense<0.000000e+00> : vector<8xf32>
    %1035 = vector.multi_reduction <add>, %1034, %cst_257 [1] : vector<8x32xf32> to vector<8xf32>
    %1036 = vector.shape_cast %1035 : vector<8xf32> to vector<8x1xf32>
    %1037 = arith.addf %1036, %21 : vector<8x1xf32>
    %1038 = arith.mulf %1033, %16 : vector<8x32xf32>
    %cst_258 = arith.constant dense<0.000000e+00> : vector<8xf32>
    %1039 = vector.multi_reduction <add>, %1038, %cst_258 [1] : vector<8x32xf32> to vector<8xf32>
    %1040 = vector.shape_cast %1039 : vector<8xf32> to vector<8x1xf32>
    %1041 = arith.addf %1040, %24 : vector<8x1xf32>
    %cst_259 = arith.constant 5.000000e-02 : f32
    %1042 = vector.broadcast %cst_259 : f32 to vector<8x1xf32>
    %1043 = arith.mulf %1042, %1037 : vector<8x1xf32>
    %1044 = arith.addf %976, %1043 : vector<8x1xf32>
    %cst_260 = arith.constant 5.000000e-02 : f32
    %1045 = vector.broadcast %cst_260 : f32 to vector<8x1xf32>
    %1046 = arith.mulf %1045, %1041 : vector<8x1xf32>
    %1047 = arith.addf %979, %1046 : vector<8x1xf32>
    %c15_i32 = arith.constant 15 : i32
    %1048 = vector.broadcast %1044 : vector<8x1xf32> to vector<8x32xf32>
    %1049 = arith.mulf %1048, %3 : vector<8x32xf32>
    %1050 = vector.broadcast %1047 : vector<8x1xf32> to vector<8x32xf32>
    %1051 = arith.mulf %1050, %6 : vector<8x32xf32>
    %1052 = arith.addf %1049, %1051 : vector<8x32xf32>
    %cst_261 = arith.constant dense<0.000000e+00> : vector<32xf32>
    %1053 = vector.multi_reduction <add>, %1052, %cst_261 [0] : vector<8x32xf32> to vector<32xf32>
    %1054 = vector.shape_cast %1053 : vector<32xf32> to vector<1x32xf32>
    %cst_262 = arith.constant 8.000000e+00 : f32
    %1055 = vector.broadcast %cst_262 : f32 to vector<1x32xf32>
    %1056 = arith.divf %1054, %1055 : vector<1x32xf32>
    %1057 = arith.mulf %1052, %1052 : vector<8x32xf32>
    %cst_263 = arith.constant dense<0.000000e+00> : vector<32xf32>
    %1058 = vector.multi_reduction <add>, %1057, %cst_263 [0] : vector<8x32xf32> to vector<32xf32>
    %1059 = vector.shape_cast %1058 : vector<32xf32> to vector<1x32xf32>
    %cst_264 = arith.constant 8.000000e+00 : f32
    %1060 = vector.broadcast %cst_264 : f32 to vector<1x32xf32>
    %1061 = arith.divf %1059, %1060 : vector<1x32xf32>
    %1062 = arith.mulf %1056, %1056 : vector<1x32xf32>
    %1063 = arith.subf %1061, %1062 : vector<1x32xf32>
    %cst_265 = arith.constant 9.99999974E-6 : f32
    %1064 = vector.broadcast %cst_265 : f32 to vector<1x32xf32>
    %1065 = arith.addf %1063, %1064 : vector<1x32xf32>
    %1066 = math.rsqrt %1065 : vector<1x32xf32>
    %1067 = arith.mulf %1066, %7 : vector<1x32xf32>
    %1068 = vector.broadcast %1067 : vector<1x32xf32> to vector<8x32xf32>
    %1069 = arith.mulf %1052, %1068 : vector<8x32xf32>
    %1070 = arith.mulf %1056, %1067 : vector<1x32xf32>
    %1071 = arith.subf %8, %1070 : vector<1x32xf32>
    %1072 = vector.broadcast %1071 : vector<1x32xf32> to vector<8x32xf32>
    %1073 = arith.addf %1069, %1072 : vector<8x32xf32>
    %cst_266 = arith.constant 0.00999999977 : f32
    %1074 = vector.broadcast %cst_266 : f32 to vector<8x32xf32>
    %1075 = arith.mulf %1074, %1073 : vector<8x32xf32>
    %1076 = arith.maximumf %1073, %1075 : vector<8x32xf32>
    %cst_267 = arith.constant dense<0.000000e+00> : vector<8x32xf32>
    %1077 = tpu.matmul %1076, %17, %cst_267 {dimension_numbers = #tpu.dot_dimension_numbers<[1], [0], [0], [1], [0, 0, 1, 1], [], []>} : vector<8x32xf32>, vector<32x32xf32>, vector<8x32xf32> -> vector<8x32xf32>
    %cst_268 = arith.constant dense<0.000000e+00> : vector<32xf32>
    %1078 = vector.multi_reduction <add>, %1077, %cst_268 [0] : vector<8x32xf32> to vector<32xf32>
    %1079 = vector.shape_cast %1078 : vector<32xf32> to vector<1x32xf32>
    %cst_269 = arith.constant 8.000000e+00 : f32
    %1080 = vector.broadcast %cst_269 : f32 to vector<1x32xf32>
    %1081 = arith.divf %1079, %1080 : vector<1x32xf32>
    %1082 = arith.mulf %1077, %1077 : vector<8x32xf32>
    %cst_270 = arith.constant dense<0.000000e+00> : vector<32xf32>
    %1083 = vector.multi_reduction <add>, %1082, %cst_270 [0] : vector<8x32xf32> to vector<32xf32>
    %1084 = vector.shape_cast %1083 : vector<32xf32> to vector<1x32xf32>
    %cst_271 = arith.constant 8.000000e+00 : f32
    %1085 = vector.broadcast %cst_271 : f32 to vector<1x32xf32>
    %1086 = arith.divf %1084, %1085 : vector<1x32xf32>
    %1087 = arith.mulf %1081, %1081 : vector<1x32xf32>
    %1088 = arith.subf %1086, %1087 : vector<1x32xf32>
    %cst_272 = arith.constant 9.99999974E-6 : f32
    %1089 = vector.broadcast %cst_272 : f32 to vector<1x32xf32>
    %1090 = arith.addf %1088, %1089 : vector<1x32xf32>
    %1091 = math.rsqrt %1090 : vector<1x32xf32>
    %1092 = arith.mulf %1091, %9 : vector<1x32xf32>
    %1093 = vector.broadcast %1092 : vector<1x32xf32> to vector<8x32xf32>
    %1094 = arith.mulf %1077, %1093 : vector<8x32xf32>
    %1095 = arith.mulf %1081, %1092 : vector<1x32xf32>
    %1096 = arith.subf %10, %1095 : vector<1x32xf32>
    %1097 = vector.broadcast %1096 : vector<1x32xf32> to vector<8x32xf32>
    %1098 = arith.addf %1094, %1097 : vector<8x32xf32>
    %cst_273 = arith.constant 0.00999999977 : f32
    %1099 = vector.broadcast %cst_273 : f32 to vector<8x32xf32>
    %1100 = arith.mulf %1099, %1098 : vector<8x32xf32>
    %1101 = arith.maximumf %1098, %1100 : vector<8x32xf32>
    %1102 = arith.mulf %1101, %13 : vector<8x32xf32>
    %cst_274 = arith.constant dense<0.000000e+00> : vector<8xf32>
    %1103 = vector.multi_reduction <add>, %1102, %cst_274 [1] : vector<8x32xf32> to vector<8xf32>
    %1104 = vector.shape_cast %1103 : vector<8xf32> to vector<8x1xf32>
    %1105 = arith.addf %1104, %21 : vector<8x1xf32>
    %1106 = arith.mulf %1101, %16 : vector<8x32xf32>
    %cst_275 = arith.constant dense<0.000000e+00> : vector<8xf32>
    %1107 = vector.multi_reduction <add>, %1106, %cst_275 [1] : vector<8x32xf32> to vector<8xf32>
    %1108 = vector.shape_cast %1107 : vector<8xf32> to vector<8x1xf32>
    %1109 = arith.addf %1108, %24 : vector<8x1xf32>
    %cst_276 = arith.constant 5.000000e-02 : f32
    %1110 = vector.broadcast %cst_276 : f32 to vector<8x1xf32>
    %1111 = arith.mulf %1110, %1105 : vector<8x1xf32>
    %1112 = arith.addf %1044, %1111 : vector<8x1xf32>
    %cst_277 = arith.constant 5.000000e-02 : f32
    %1113 = vector.broadcast %cst_277 : f32 to vector<8x1xf32>
    %1114 = arith.mulf %1113, %1109 : vector<8x1xf32>
    %1115 = arith.addf %1047, %1114 : vector<8x1xf32>
    %c16_i32 = arith.constant 16 : i32
    %1116 = vector.broadcast %1112 : vector<8x1xf32> to vector<8x32xf32>
    %1117 = arith.mulf %1116, %3 : vector<8x32xf32>
    %1118 = vector.broadcast %1115 : vector<8x1xf32> to vector<8x32xf32>
    %1119 = arith.mulf %1118, %6 : vector<8x32xf32>
    %1120 = arith.addf %1117, %1119 : vector<8x32xf32>
    %cst_278 = arith.constant dense<0.000000e+00> : vector<32xf32>
    %1121 = vector.multi_reduction <add>, %1120, %cst_278 [0] : vector<8x32xf32> to vector<32xf32>
    %1122 = vector.shape_cast %1121 : vector<32xf32> to vector<1x32xf32>
    %cst_279 = arith.constant 8.000000e+00 : f32
    %1123 = vector.broadcast %cst_279 : f32 to vector<1x32xf32>
    %1124 = arith.divf %1122, %1123 : vector<1x32xf32>
    %1125 = arith.mulf %1120, %1120 : vector<8x32xf32>
    %cst_280 = arith.constant dense<0.000000e+00> : vector<32xf32>
    %1126 = vector.multi_reduction <add>, %1125, %cst_280 [0] : vector<8x32xf32> to vector<32xf32>
    %1127 = vector.shape_cast %1126 : vector<32xf32> to vector<1x32xf32>
    %cst_281 = arith.constant 8.000000e+00 : f32
    %1128 = vector.broadcast %cst_281 : f32 to vector<1x32xf32>
    %1129 = arith.divf %1127, %1128 : vector<1x32xf32>
    %1130 = arith.mulf %1124, %1124 : vector<1x32xf32>
    %1131 = arith.subf %1129, %1130 : vector<1x32xf32>
    %cst_282 = arith.constant 9.99999974E-6 : f32
    %1132 = vector.broadcast %cst_282 : f32 to vector<1x32xf32>
    %1133 = arith.addf %1131, %1132 : vector<1x32xf32>
    %1134 = math.rsqrt %1133 : vector<1x32xf32>
    %1135 = arith.mulf %1134, %7 : vector<1x32xf32>
    %1136 = vector.broadcast %1135 : vector<1x32xf32> to vector<8x32xf32>
    %1137 = arith.mulf %1120, %1136 : vector<8x32xf32>
    %1138 = arith.mulf %1124, %1135 : vector<1x32xf32>
    %1139 = arith.subf %8, %1138 : vector<1x32xf32>
    %1140 = vector.broadcast %1139 : vector<1x32xf32> to vector<8x32xf32>
    %1141 = arith.addf %1137, %1140 : vector<8x32xf32>
    %cst_283 = arith.constant 0.00999999977 : f32
    %1142 = vector.broadcast %cst_283 : f32 to vector<8x32xf32>
    %1143 = arith.mulf %1142, %1141 : vector<8x32xf32>
    %1144 = arith.maximumf %1141, %1143 : vector<8x32xf32>
    %cst_284 = arith.constant dense<0.000000e+00> : vector<8x32xf32>
    %1145 = tpu.matmul %1144, %17, %cst_284 {dimension_numbers = #tpu.dot_dimension_numbers<[1], [0], [0], [1], [0, 0, 1, 1], [], []>} : vector<8x32xf32>, vector<32x32xf32>, vector<8x32xf32> -> vector<8x32xf32>
    %cst_285 = arith.constant dense<0.000000e+00> : vector<32xf32>
    %1146 = vector.multi_reduction <add>, %1145, %cst_285 [0] : vector<8x32xf32> to vector<32xf32>
    %1147 = vector.shape_cast %1146 : vector<32xf32> to vector<1x32xf32>
    %cst_286 = arith.constant 8.000000e+00 : f32
    %1148 = vector.broadcast %cst_286 : f32 to vector<1x32xf32>
    %1149 = arith.divf %1147, %1148 : vector<1x32xf32>
    %1150 = arith.mulf %1145, %1145 : vector<8x32xf32>
    %cst_287 = arith.constant dense<0.000000e+00> : vector<32xf32>
    %1151 = vector.multi_reduction <add>, %1150, %cst_287 [0] : vector<8x32xf32> to vector<32xf32>
    %1152 = vector.shape_cast %1151 : vector<32xf32> to vector<1x32xf32>
    %cst_288 = arith.constant 8.000000e+00 : f32
    %1153 = vector.broadcast %cst_288 : f32 to vector<1x32xf32>
    %1154 = arith.divf %1152, %1153 : vector<1x32xf32>
    %1155 = arith.mulf %1149, %1149 : vector<1x32xf32>
    %1156 = arith.subf %1154, %1155 : vector<1x32xf32>
    %cst_289 = arith.constant 9.99999974E-6 : f32
    %1157 = vector.broadcast %cst_289 : f32 to vector<1x32xf32>
    %1158 = arith.addf %1156, %1157 : vector<1x32xf32>
    %1159 = math.rsqrt %1158 : vector<1x32xf32>
    %1160 = arith.mulf %1159, %9 : vector<1x32xf32>
    %1161 = vector.broadcast %1160 : vector<1x32xf32> to vector<8x32xf32>
    %1162 = arith.mulf %1145, %1161 : vector<8x32xf32>
    %1163 = arith.mulf %1149, %1160 : vector<1x32xf32>
    %1164 = arith.subf %10, %1163 : vector<1x32xf32>
    %1165 = vector.broadcast %1164 : vector<1x32xf32> to vector<8x32xf32>
    %1166 = arith.addf %1162, %1165 : vector<8x32xf32>
    %cst_290 = arith.constant 0.00999999977 : f32
    %1167 = vector.broadcast %cst_290 : f32 to vector<8x32xf32>
    %1168 = arith.mulf %1167, %1166 : vector<8x32xf32>
    %1169 = arith.maximumf %1166, %1168 : vector<8x32xf32>
    %1170 = arith.mulf %1169, %13 : vector<8x32xf32>
    %cst_291 = arith.constant dense<0.000000e+00> : vector<8xf32>
    %1171 = vector.multi_reduction <add>, %1170, %cst_291 [1] : vector<8x32xf32> to vector<8xf32>
    %1172 = vector.shape_cast %1171 : vector<8xf32> to vector<8x1xf32>
    %1173 = arith.addf %1172, %21 : vector<8x1xf32>
    %1174 = arith.mulf %1169, %16 : vector<8x32xf32>
    %cst_292 = arith.constant dense<0.000000e+00> : vector<8xf32>
    %1175 = vector.multi_reduction <add>, %1174, %cst_292 [1] : vector<8x32xf32> to vector<8xf32>
    %1176 = vector.shape_cast %1175 : vector<8xf32> to vector<8x1xf32>
    %1177 = arith.addf %1176, %24 : vector<8x1xf32>
    %cst_293 = arith.constant 5.000000e-02 : f32
    %1178 = vector.broadcast %cst_293 : f32 to vector<8x1xf32>
    %1179 = arith.mulf %1178, %1173 : vector<8x1xf32>
    %1180 = arith.addf %1112, %1179 : vector<8x1xf32>
    %cst_294 = arith.constant 5.000000e-02 : f32
    %1181 = vector.broadcast %cst_294 : f32 to vector<8x1xf32>
    %1182 = arith.mulf %1181, %1177 : vector<8x1xf32>
    %1183 = arith.addf %1115, %1182 : vector<8x1xf32>
    %c17_i32 = arith.constant 17 : i32
    %1184 = vector.broadcast %1180 : vector<8x1xf32> to vector<8x32xf32>
    %1185 = arith.mulf %1184, %3 : vector<8x32xf32>
    %1186 = vector.broadcast %1183 : vector<8x1xf32> to vector<8x32xf32>
    %1187 = arith.mulf %1186, %6 : vector<8x32xf32>
    %1188 = arith.addf %1185, %1187 : vector<8x32xf32>
    %cst_295 = arith.constant dense<0.000000e+00> : vector<32xf32>
    %1189 = vector.multi_reduction <add>, %1188, %cst_295 [0] : vector<8x32xf32> to vector<32xf32>
    %1190 = vector.shape_cast %1189 : vector<32xf32> to vector<1x32xf32>
    %cst_296 = arith.constant 8.000000e+00 : f32
    %1191 = vector.broadcast %cst_296 : f32 to vector<1x32xf32>
    %1192 = arith.divf %1190, %1191 : vector<1x32xf32>
    %1193 = arith.mulf %1188, %1188 : vector<8x32xf32>
    %cst_297 = arith.constant dense<0.000000e+00> : vector<32xf32>
    %1194 = vector.multi_reduction <add>, %1193, %cst_297 [0] : vector<8x32xf32> to vector<32xf32>
    %1195 = vector.shape_cast %1194 : vector<32xf32> to vector<1x32xf32>
    %cst_298 = arith.constant 8.000000e+00 : f32
    %1196 = vector.broadcast %cst_298 : f32 to vector<1x32xf32>
    %1197 = arith.divf %1195, %1196 : vector<1x32xf32>
    %1198 = arith.mulf %1192, %1192 : vector<1x32xf32>
    %1199 = arith.subf %1197, %1198 : vector<1x32xf32>
    %cst_299 = arith.constant 9.99999974E-6 : f32
    %1200 = vector.broadcast %cst_299 : f32 to vector<1x32xf32>
    %1201 = arith.addf %1199, %1200 : vector<1x32xf32>
    %1202 = math.rsqrt %1201 : vector<1x32xf32>
    %1203 = arith.mulf %1202, %7 : vector<1x32xf32>
    %1204 = vector.broadcast %1203 : vector<1x32xf32> to vector<8x32xf32>
    %1205 = arith.mulf %1188, %1204 : vector<8x32xf32>
    %1206 = arith.mulf %1192, %1203 : vector<1x32xf32>
    %1207 = arith.subf %8, %1206 : vector<1x32xf32>
    %1208 = vector.broadcast %1207 : vector<1x32xf32> to vector<8x32xf32>
    %1209 = arith.addf %1205, %1208 : vector<8x32xf32>
    %cst_300 = arith.constant 0.00999999977 : f32
    %1210 = vector.broadcast %cst_300 : f32 to vector<8x32xf32>
    %1211 = arith.mulf %1210, %1209 : vector<8x32xf32>
    %1212 = arith.maximumf %1209, %1211 : vector<8x32xf32>
    %cst_301 = arith.constant dense<0.000000e+00> : vector<8x32xf32>
    %1213 = tpu.matmul %1212, %17, %cst_301 {dimension_numbers = #tpu.dot_dimension_numbers<[1], [0], [0], [1], [0, 0, 1, 1], [], []>} : vector<8x32xf32>, vector<32x32xf32>, vector<8x32xf32> -> vector<8x32xf32>
    %cst_302 = arith.constant dense<0.000000e+00> : vector<32xf32>
    %1214 = vector.multi_reduction <add>, %1213, %cst_302 [0] : vector<8x32xf32> to vector<32xf32>
    %1215 = vector.shape_cast %1214 : vector<32xf32> to vector<1x32xf32>
    %cst_303 = arith.constant 8.000000e+00 : f32
    %1216 = vector.broadcast %cst_303 : f32 to vector<1x32xf32>
    %1217 = arith.divf %1215, %1216 : vector<1x32xf32>
    %1218 = arith.mulf %1213, %1213 : vector<8x32xf32>
    %cst_304 = arith.constant dense<0.000000e+00> : vector<32xf32>
    %1219 = vector.multi_reduction <add>, %1218, %cst_304 [0] : vector<8x32xf32> to vector<32xf32>
    %1220 = vector.shape_cast %1219 : vector<32xf32> to vector<1x32xf32>
    %cst_305 = arith.constant 8.000000e+00 : f32
    %1221 = vector.broadcast %cst_305 : f32 to vector<1x32xf32>
    %1222 = arith.divf %1220, %1221 : vector<1x32xf32>
    %1223 = arith.mulf %1217, %1217 : vector<1x32xf32>
    %1224 = arith.subf %1222, %1223 : vector<1x32xf32>
    %cst_306 = arith.constant 9.99999974E-6 : f32
    %1225 = vector.broadcast %cst_306 : f32 to vector<1x32xf32>
    %1226 = arith.addf %1224, %1225 : vector<1x32xf32>
    %1227 = math.rsqrt %1226 : vector<1x32xf32>
    %1228 = arith.mulf %1227, %9 : vector<1x32xf32>
    %1229 = vector.broadcast %1228 : vector<1x32xf32> to vector<8x32xf32>
    %1230 = arith.mulf %1213, %1229 : vector<8x32xf32>
    %1231 = arith.mulf %1217, %1228 : vector<1x32xf32>
    %1232 = arith.subf %10, %1231 : vector<1x32xf32>
    %1233 = vector.broadcast %1232 : vector<1x32xf32> to vector<8x32xf32>
    %1234 = arith.addf %1230, %1233 : vector<8x32xf32>
    %cst_307 = arith.constant 0.00999999977 : f32
    %1235 = vector.broadcast %cst_307 : f32 to vector<8x32xf32>
    %1236 = arith.mulf %1235, %1234 : vector<8x32xf32>
    %1237 = arith.maximumf %1234, %1236 : vector<8x32xf32>
    %1238 = arith.mulf %1237, %13 : vector<8x32xf32>
    %cst_308 = arith.constant dense<0.000000e+00> : vector<8xf32>
    %1239 = vector.multi_reduction <add>, %1238, %cst_308 [1] : vector<8x32xf32> to vector<8xf32>
    %1240 = vector.shape_cast %1239 : vector<8xf32> to vector<8x1xf32>
    %1241 = arith.addf %1240, %21 : vector<8x1xf32>
    %1242 = arith.mulf %1237, %16 : vector<8x32xf32>
    %cst_309 = arith.constant dense<0.000000e+00> : vector<8xf32>
    %1243 = vector.multi_reduction <add>, %1242, %cst_309 [1] : vector<8x32xf32> to vector<8xf32>
    %1244 = vector.shape_cast %1243 : vector<8xf32> to vector<8x1xf32>
    %1245 = arith.addf %1244, %24 : vector<8x1xf32>
    %cst_310 = arith.constant 5.000000e-02 : f32
    %1246 = vector.broadcast %cst_310 : f32 to vector<8x1xf32>
    %1247 = arith.mulf %1246, %1241 : vector<8x1xf32>
    %1248 = arith.addf %1180, %1247 : vector<8x1xf32>
    %cst_311 = arith.constant 5.000000e-02 : f32
    %1249 = vector.broadcast %cst_311 : f32 to vector<8x1xf32>
    %1250 = arith.mulf %1249, %1245 : vector<8x1xf32>
    %1251 = arith.addf %1183, %1250 : vector<8x1xf32>
    %c18_i32 = arith.constant 18 : i32
    %1252 = vector.broadcast %1248 : vector<8x1xf32> to vector<8x32xf32>
    %1253 = arith.mulf %1252, %3 : vector<8x32xf32>
    %1254 = vector.broadcast %1251 : vector<8x1xf32> to vector<8x32xf32>
    %1255 = arith.mulf %1254, %6 : vector<8x32xf32>
    %1256 = arith.addf %1253, %1255 : vector<8x32xf32>
    %cst_312 = arith.constant dense<0.000000e+00> : vector<32xf32>
    %1257 = vector.multi_reduction <add>, %1256, %cst_312 [0] : vector<8x32xf32> to vector<32xf32>
    %1258 = vector.shape_cast %1257 : vector<32xf32> to vector<1x32xf32>
    %cst_313 = arith.constant 8.000000e+00 : f32
    %1259 = vector.broadcast %cst_313 : f32 to vector<1x32xf32>
    %1260 = arith.divf %1258, %1259 : vector<1x32xf32>
    %1261 = arith.mulf %1256, %1256 : vector<8x32xf32>
    %cst_314 = arith.constant dense<0.000000e+00> : vector<32xf32>
    %1262 = vector.multi_reduction <add>, %1261, %cst_314 [0] : vector<8x32xf32> to vector<32xf32>
    %1263 = vector.shape_cast %1262 : vector<32xf32> to vector<1x32xf32>
    %cst_315 = arith.constant 8.000000e+00 : f32
    %1264 = vector.broadcast %cst_315 : f32 to vector<1x32xf32>
    %1265 = arith.divf %1263, %1264 : vector<1x32xf32>
    %1266 = arith.mulf %1260, %1260 : vector<1x32xf32>
    %1267 = arith.subf %1265, %1266 : vector<1x32xf32>
    %cst_316 = arith.constant 9.99999974E-6 : f32
    %1268 = vector.broadcast %cst_316 : f32 to vector<1x32xf32>
    %1269 = arith.addf %1267, %1268 : vector<1x32xf32>
    %1270 = math.rsqrt %1269 : vector<1x32xf32>
    %1271 = arith.mulf %1270, %7 : vector<1x32xf32>
    %1272 = vector.broadcast %1271 : vector<1x32xf32> to vector<8x32xf32>
    %1273 = arith.mulf %1256, %1272 : vector<8x32xf32>
    %1274 = arith.mulf %1260, %1271 : vector<1x32xf32>
    %1275 = arith.subf %8, %1274 : vector<1x32xf32>
    %1276 = vector.broadcast %1275 : vector<1x32xf32> to vector<8x32xf32>
    %1277 = arith.addf %1273, %1276 : vector<8x32xf32>
    %cst_317 = arith.constant 0.00999999977 : f32
    %1278 = vector.broadcast %cst_317 : f32 to vector<8x32xf32>
    %1279 = arith.mulf %1278, %1277 : vector<8x32xf32>
    %1280 = arith.maximumf %1277, %1279 : vector<8x32xf32>
    %cst_318 = arith.constant dense<0.000000e+00> : vector<8x32xf32>
    %1281 = tpu.matmul %1280, %17, %cst_318 {dimension_numbers = #tpu.dot_dimension_numbers<[1], [0], [0], [1], [0, 0, 1, 1], [], []>} : vector<8x32xf32>, vector<32x32xf32>, vector<8x32xf32> -> vector<8x32xf32>
    %cst_319 = arith.constant dense<0.000000e+00> : vector<32xf32>
    %1282 = vector.multi_reduction <add>, %1281, %cst_319 [0] : vector<8x32xf32> to vector<32xf32>
    %1283 = vector.shape_cast %1282 : vector<32xf32> to vector<1x32xf32>
    %cst_320 = arith.constant 8.000000e+00 : f32
    %1284 = vector.broadcast %cst_320 : f32 to vector<1x32xf32>
    %1285 = arith.divf %1283, %1284 : vector<1x32xf32>
    %1286 = arith.mulf %1281, %1281 : vector<8x32xf32>
    %cst_321 = arith.constant dense<0.000000e+00> : vector<32xf32>
    %1287 = vector.multi_reduction <add>, %1286, %cst_321 [0] : vector<8x32xf32> to vector<32xf32>
    %1288 = vector.shape_cast %1287 : vector<32xf32> to vector<1x32xf32>
    %cst_322 = arith.constant 8.000000e+00 : f32
    %1289 = vector.broadcast %cst_322 : f32 to vector<1x32xf32>
    %1290 = arith.divf %1288, %1289 : vector<1x32xf32>
    %1291 = arith.mulf %1285, %1285 : vector<1x32xf32>
    %1292 = arith.subf %1290, %1291 : vector<1x32xf32>
    %cst_323 = arith.constant 9.99999974E-6 : f32
    %1293 = vector.broadcast %cst_323 : f32 to vector<1x32xf32>
    %1294 = arith.addf %1292, %1293 : vector<1x32xf32>
    %1295 = math.rsqrt %1294 : vector<1x32xf32>
    %1296 = arith.mulf %1295, %9 : vector<1x32xf32>
    %1297 = vector.broadcast %1296 : vector<1x32xf32> to vector<8x32xf32>
    %1298 = arith.mulf %1281, %1297 : vector<8x32xf32>
    %1299 = arith.mulf %1285, %1296 : vector<1x32xf32>
    %1300 = arith.subf %10, %1299 : vector<1x32xf32>
    %1301 = vector.broadcast %1300 : vector<1x32xf32> to vector<8x32xf32>
    %1302 = arith.addf %1298, %1301 : vector<8x32xf32>
    %cst_324 = arith.constant 0.00999999977 : f32
    %1303 = vector.broadcast %cst_324 : f32 to vector<8x32xf32>
    %1304 = arith.mulf %1303, %1302 : vector<8x32xf32>
    %1305 = arith.maximumf %1302, %1304 : vector<8x32xf32>
    %1306 = arith.mulf %1305, %13 : vector<8x32xf32>
    %cst_325 = arith.constant dense<0.000000e+00> : vector<8xf32>
    %1307 = vector.multi_reduction <add>, %1306, %cst_325 [1] : vector<8x32xf32> to vector<8xf32>
    %1308 = vector.shape_cast %1307 : vector<8xf32> to vector<8x1xf32>
    %1309 = arith.addf %1308, %21 : vector<8x1xf32>
    %1310 = arith.mulf %1305, %16 : vector<8x32xf32>
    %cst_326 = arith.constant dense<0.000000e+00> : vector<8xf32>
    %1311 = vector.multi_reduction <add>, %1310, %cst_326 [1] : vector<8x32xf32> to vector<8xf32>
    %1312 = vector.shape_cast %1311 : vector<8xf32> to vector<8x1xf32>
    %1313 = arith.addf %1312, %24 : vector<8x1xf32>
    %cst_327 = arith.constant 5.000000e-02 : f32
    %1314 = vector.broadcast %cst_327 : f32 to vector<8x1xf32>
    %1315 = arith.mulf %1314, %1309 : vector<8x1xf32>
    %1316 = arith.addf %1248, %1315 : vector<8x1xf32>
    %cst_328 = arith.constant 5.000000e-02 : f32
    %1317 = vector.broadcast %cst_328 : f32 to vector<8x1xf32>
    %1318 = arith.mulf %1317, %1313 : vector<8x1xf32>
    %1319 = arith.addf %1251, %1318 : vector<8x1xf32>
    %c19_i32 = arith.constant 19 : i32
    %1320 = vector.broadcast %1316 : vector<8x1xf32> to vector<8x32xf32>
    %1321 = arith.mulf %1320, %3 : vector<8x32xf32>
    %1322 = vector.broadcast %1319 : vector<8x1xf32> to vector<8x32xf32>
    %1323 = arith.mulf %1322, %6 : vector<8x32xf32>
    %1324 = arith.addf %1321, %1323 : vector<8x32xf32>
    %cst_329 = arith.constant dense<0.000000e+00> : vector<32xf32>
    %1325 = vector.multi_reduction <add>, %1324, %cst_329 [0] : vector<8x32xf32> to vector<32xf32>
    %1326 = vector.shape_cast %1325 : vector<32xf32> to vector<1x32xf32>
    %cst_330 = arith.constant 8.000000e+00 : f32
    %1327 = vector.broadcast %cst_330 : f32 to vector<1x32xf32>
    %1328 = arith.divf %1326, %1327 : vector<1x32xf32>
    %1329 = arith.mulf %1324, %1324 : vector<8x32xf32>
    %cst_331 = arith.constant dense<0.000000e+00> : vector<32xf32>
    %1330 = vector.multi_reduction <add>, %1329, %cst_331 [0] : vector<8x32xf32> to vector<32xf32>
    %1331 = vector.shape_cast %1330 : vector<32xf32> to vector<1x32xf32>
    %cst_332 = arith.constant 8.000000e+00 : f32
    %1332 = vector.broadcast %cst_332 : f32 to vector<1x32xf32>
    %1333 = arith.divf %1331, %1332 : vector<1x32xf32>
    %1334 = arith.mulf %1328, %1328 : vector<1x32xf32>
    %1335 = arith.subf %1333, %1334 : vector<1x32xf32>
    %cst_333 = arith.constant 9.99999974E-6 : f32
    %1336 = vector.broadcast %cst_333 : f32 to vector<1x32xf32>
    %1337 = arith.addf %1335, %1336 : vector<1x32xf32>
    %1338 = math.rsqrt %1337 : vector<1x32xf32>
    %1339 = arith.mulf %1338, %7 : vector<1x32xf32>
    %1340 = vector.broadcast %1339 : vector<1x32xf32> to vector<8x32xf32>
    %1341 = arith.mulf %1324, %1340 : vector<8x32xf32>
    %1342 = arith.mulf %1328, %1339 : vector<1x32xf32>
    %1343 = arith.subf %8, %1342 : vector<1x32xf32>
    %1344 = vector.broadcast %1343 : vector<1x32xf32> to vector<8x32xf32>
    %1345 = arith.addf %1341, %1344 : vector<8x32xf32>
    %cst_334 = arith.constant 0.00999999977 : f32
    %1346 = vector.broadcast %cst_334 : f32 to vector<8x32xf32>
    %1347 = arith.mulf %1346, %1345 : vector<8x32xf32>
    %1348 = arith.maximumf %1345, %1347 : vector<8x32xf32>
    %cst_335 = arith.constant dense<0.000000e+00> : vector<8x32xf32>
    %1349 = tpu.matmul %1348, %17, %cst_335 {dimension_numbers = #tpu.dot_dimension_numbers<[1], [0], [0], [1], [0, 0, 1, 1], [], []>} : vector<8x32xf32>, vector<32x32xf32>, vector<8x32xf32> -> vector<8x32xf32>
    %cst_336 = arith.constant dense<0.000000e+00> : vector<32xf32>
    %1350 = vector.multi_reduction <add>, %1349, %cst_336 [0] : vector<8x32xf32> to vector<32xf32>
    %1351 = vector.shape_cast %1350 : vector<32xf32> to vector<1x32xf32>
    %cst_337 = arith.constant 8.000000e+00 : f32
    %1352 = vector.broadcast %cst_337 : f32 to vector<1x32xf32>
    %1353 = arith.divf %1351, %1352 : vector<1x32xf32>
    %1354 = arith.mulf %1349, %1349 : vector<8x32xf32>
    %cst_338 = arith.constant dense<0.000000e+00> : vector<32xf32>
    %1355 = vector.multi_reduction <add>, %1354, %cst_338 [0] : vector<8x32xf32> to vector<32xf32>
    %1356 = vector.shape_cast %1355 : vector<32xf32> to vector<1x32xf32>
    %cst_339 = arith.constant 8.000000e+00 : f32
    %1357 = vector.broadcast %cst_339 : f32 to vector<1x32xf32>
    %1358 = arith.divf %1356, %1357 : vector<1x32xf32>
    %1359 = arith.mulf %1353, %1353 : vector<1x32xf32>
    %1360 = arith.subf %1358, %1359 : vector<1x32xf32>
    %cst_340 = arith.constant 9.99999974E-6 : f32
    %1361 = vector.broadcast %cst_340 : f32 to vector<1x32xf32>
    %1362 = arith.addf %1360, %1361 : vector<1x32xf32>
    %1363 = math.rsqrt %1362 : vector<1x32xf32>
    %1364 = arith.mulf %1363, %9 : vector<1x32xf32>
    %1365 = vector.broadcast %1364 : vector<1x32xf32> to vector<8x32xf32>
    %1366 = arith.mulf %1349, %1365 : vector<8x32xf32>
    %1367 = arith.mulf %1353, %1364 : vector<1x32xf32>
    %1368 = arith.subf %10, %1367 : vector<1x32xf32>
    %1369 = vector.broadcast %1368 : vector<1x32xf32> to vector<8x32xf32>
    %1370 = arith.addf %1366, %1369 : vector<8x32xf32>
    %cst_341 = arith.constant 0.00999999977 : f32
    %1371 = vector.broadcast %cst_341 : f32 to vector<8x32xf32>
    %1372 = arith.mulf %1371, %1370 : vector<8x32xf32>
    %1373 = arith.maximumf %1370, %1372 : vector<8x32xf32>
    %1374 = arith.mulf %1373, %13 : vector<8x32xf32>
    %cst_342 = arith.constant dense<0.000000e+00> : vector<8xf32>
    %1375 = vector.multi_reduction <add>, %1374, %cst_342 [1] : vector<8x32xf32> to vector<8xf32>
    %1376 = vector.shape_cast %1375 : vector<8xf32> to vector<8x1xf32>
    %1377 = arith.addf %1376, %21 : vector<8x1xf32>
    %1378 = arith.mulf %1373, %16 : vector<8x32xf32>
    %cst_343 = arith.constant dense<0.000000e+00> : vector<8xf32>
    %1379 = vector.multi_reduction <add>, %1378, %cst_343 [1] : vector<8x32xf32> to vector<8xf32>
    %1380 = vector.shape_cast %1379 : vector<8xf32> to vector<8x1xf32>
    %1381 = arith.addf %1380, %24 : vector<8x1xf32>
    %cst_344 = arith.constant 5.000000e-02 : f32
    %1382 = vector.broadcast %cst_344 : f32 to vector<8x1xf32>
    %1383 = arith.mulf %1382, %1377 : vector<8x1xf32>
    %1384 = arith.addf %1316, %1383 : vector<8x1xf32>
    %cst_345 = arith.constant 5.000000e-02 : f32
    %1385 = vector.broadcast %cst_345 : f32 to vector<8x1xf32>
    %1386 = arith.mulf %1385, %1381 : vector<8x1xf32>
    %1387 = arith.addf %1319, %1386 : vector<8x1xf32>
    %1388 = arith.maximumf %1384, %1387 : vector<8x1xf32>
    %1389 = arith.subf %1384, %1388 : vector<8x1xf32>
    %1390 = math.exp %1389 : vector<8x1xf32>
    %1391 = arith.subf %1387, %1388 : vector<8x1xf32>
    %1392 = math.exp %1391 : vector<8x1xf32>
    %1393 = arith.addf %1390, %1392 : vector<8x1xf32>
    %cst_346 = arith.constant 1.000000e+00 : f32
    %1394 = vector.broadcast %cst_346 : f32 to vector<8x1xf32>
    %1395 = arith.divf %1394, %1393 : vector<8x1xf32>
    %1396 = arith.mulf %1390, %1395 : vector<8x1xf32>
    %c0_347 = arith.constant 0 : index
    %c0_348 = arith.constant 0 : index
    %1397 = vector.load %arg4[%c0_347, %c0_348] : memref<8x2xf32, #tpu.memory_space<vmem>>, vector<8x1xf32>
    tpu.vector_store %arg4[%c0_347, %c0_348], %1396 {strides = array<i32>} : memref<8x2xf32, #tpu.memory_space<vmem>>, vector<8x1xf32>,
    %1398 = arith.mulf %1392, %1395 : vector<8x1xf32>
    %c0_349 = arith.constant 0 : index
    %c1 = arith.constant 1 : index
    %1399 = vector.load %arg4[%c0_349, %c1] : memref<8x2xf32, #tpu.memory_space<vmem>>, vector<8x1xf32>
    tpu.vector_store %arg4[%c0_349, %c1], %1398 {strides = array<i32>} : memref<8x2xf32, #tpu.memory_space<vmem>>, vector<8x1xf32>,
    return
  }
}

</mosaic_0001>

<bundles_post_ra>
// kernel: tpu_custom_call.1
= control target key start
LH: loop header
LB: loop body
LE: loop exit
PB: predicated region body
PF: predicated region fallthrough
CT: control target
= control target key end

     0   :  { %9 = vsyncpa [#allocation3], 0  ;;  %s4255_s15 = smov [#allocation2]   ;;  %s5093_s0 = inlined_call_operand.vmem [shape: f32[8,2], index: 0, kind: input, shape index: {}]   ;;  %s5094_s1 = inlined_call_operand.vmem [shape: f32[8,32], index: 1, kind: input, shape index: {}]   ;;  %s5095_s2 = inlined_call_operand.hbm [shape: f32[32,32], index: 2, kind: input, shape index: {}]   ;;  %s5096_s3 = inlined_call_operand.vmem [shape: f32[1,2], index: 3, kind: input, shape index: {}]   ;;  %s5097_s4 = inlined_call_operand.vmem [shape: f32[8,2], index: 4, kind: output, shape index: {}]  }
   0x1   :  { %s19_s16 = sshll.u32 %s4255_s15, 4  ;;  %s4231_s19 = scalar_lea.hbm %s5095_s2, 512  ;;  %s20_s16 = int_to_ptr.vmem [resolvable:$true] %s19_s16 }
   0x2   :  { %p4232_p0 = scmp.ne.s32.totalorder %s5095_s2, %s4231_s19  ;;  %p4235_p1 = scmp.lt.u32.totalorder %s4231_s19, %s5095_s2 }
   0x4   :  { %p4237_p2 = pnand %p4235_p1, %p4232_p0 }
   0x6   :  { %4240 = shalt.err (!%p4237_p2)
}
   0x7   :  { %s4241_s24 = scalar_lea.vmem %s20_s16, 512  ;;  %p4246_p4 = scmp.lt.s32.totalorder %s20_s16, %s20_s16 }
   0x8   :  { %p4242_p3 = scmp.ne.s32.totalorder %s20_s16, %s4241_s24  ;;  %p4247_p5 = scmp.lt.s32.totalorder %s4241_s24, %s4241_s24 }
   0xa   :  { %p4248_p6 = por %p4247_p5, %p4246_p4 }
   0xc   :  { %p4249_p7 = pnand %p4248_p6, %p4242_p3 }
   0xe   :  { %4252 = shalt.err (!%p4249_p7)
}
   0xf   :  { %s4256_s25 = smov 128   ;;  %s4257_s26 = smov 8  }
  0x10   :  { %25 = dma.hbm_to_vmem [thread:$0]  %s5095_s2, 512, %s20_s16, [#allocation3], %s4256_s25, %s4256_s25, %s4257_s26  }
  0x11   :  { %4253 = dma.done.wait [#allocation3], 512  }
  0x12   :  { %4254 = vsyncadd [#allocation3], 4294966784  ;;  %v4258_v0 = vmov 0   ;;  %v4307_v1 = vld [vmem:[%s5093_s0] sm:$0xff]  ;;  %v4259_v2 = vmov 1   ;;  %v48_v3 = vld [vmem:[#allocation2] sm:$0xff]  ;;  %v32_v11 = vlaneseq }
  0x13   :  { %4129 = vset.pattern.permute.xlu0 %v4258_v0  ;;  %4131 = vset.pattern.permute.xlu1 %v4258_v0  ;;  %v49_v4 = vld [vmem:[#allocation2 + $0x8] sm:$0xff]  ;;  %v50_v6 = vld [vmem:[#allocation2 + $0x10] sm:$0xff]  ;;  %v51_v7 = vld [vmem:[#allocation2 + $0x18] sm:$0xff]  ;;  %v4260_v8 = vmov 0.0|0.0   ;;  %vm4261_vm0 = vmmov 0   ;;  %v4262_v10 = vmov 0.0  }
  0x14   :  { %62 = vperm.xlu0 %4129, %v4307_v1   ;;  %v4312_v5 = vpack.c.bf16 %v49_v4, %v48_v3  ;;  %3999 = vmatprep.subr.bf16.mxu0 %v4260_v8  ;;  %v4316_v9 = vpack.c.bf16 %v51_v7, %v50_v6  ;;  %v4330_v12 = vshrl.u32 %v32_v11, 7  ;;  %v4337_v15 = vld [vmem:[%s5094_s1] sm:$0xff]  ;;  %vm72_vm1 = vcmask 261120   ;;  %s4264_s18 = smov 1  }
  0x15   :  { %4005 = vmatprep.subr.bf16.mxu1 %v4260_v8  ;;  %3787 = vmatprep.mubr.msk.f32.mxu0 %vm4261_vm0, %v4262_v10  ;;  %vm3644_vm2 = vcmask 7168   ;;  %vm3651_vm3 = vcmask 15368  }
  0x16   :  { %4001 = vmatpush3.bf16.msra.mxu0 %v4312_v5  ;;  %4007 = vmatpush3.bf16.msra.mxu1 %v4312_v5  ;;  %v34_v13 = vsub.s32 0, %v4330_v12  ;;  %v38_v14 = vsub.s32 1, %v4330_v12  ;;  %v4350_v44 = vsub.s32 2, %v4330_v12  ;;  %v4354_v47 = vsub.s32 3, %v4330_v12 }
  0x17   :  { %4002 = vmatprep.subr.bf16.mxu0 %v4260_v8  ;;  %4008 = vmatprep.subr.bf16.mxu1 %v4260_v8 }
  0x18   :  { %4130 = vset.pattern.permute.xlu0 %v4259_v2  ;;  %3798 = vmatprep.mubr.msk.f32.mxu1 %vm4261_vm0, %v4262_v10  ;;  %v4340_v17 = vrot.slane %v4337_v15, %v34_v13  ;;  %v4343_v18 = vrot.slane %v4337_v15, %v38_v14 }
  0x19   :  { %67 = vperm.xlu0 %4130, %v4307_v1  }
  0x1a   :  { %4004 = vmatpush3.bf16.msra.mxu0 %v4316_v9  ;;  %4010 = vmatpush3.bf16.msra.mxu1 %v4316_v9 }
  0x1b   :  { %4011 = vmatprep.subr.bf16.mxu0 %v4260_v8  ;;  %4017 = vmatprep.subr.bf16.mxu1 %v4260_v8 }
  0x93   :  { %v63_v16 = vpop.permute.xlu0 %62 }
  0x94   :  { %v65_v20 = vmul.f32 %v63_v16, %v4340_v17 }
  0x98   :  { %v68_v19 = vpop.permute.xlu0 %67 }
  0x99   :  { %v70_v21 = vmul.f32 %v68_v19, %v4343_v18 }
  0x9b   :  { %v71_v22 = vadd.f32 %v70_v21, %v65_v20 }
  0x9d   :  { %v73_v23 = vsel %vm72_vm1, %v71_v22, 0.0  ;;  %v82_v24 = vmul.f32 %v71_v22, %v71_v22 }
  0x9e   :  { %v74_v25 = vrot.slane %v73_v23, 4 }
  0x9f   :  { %v83_v26 = vsel %vm72_vm1, %v82_v24, 0.0 }
  0xa0   :  { %v75_v27 = vadd.f32 %v74_v25, %v73_v23  ;;  %v84_v28 = vrot.slane %v83_v26, 4 }
  0xa2   :  { %v76_v29 = vrot.slane %v75_v27, 2  ;;  %v85_v30 = vadd.f32 %v84_v28, %v83_v26 }
  0xa4   :  { %v77_v31 = vadd.f32 %v76_v29, %v75_v27  ;;  %v86_v32 = vrot.slane %v85_v30, 2  ;;  %v4370_v27 = vsub.s32 4, %v4330_v12 }
  0xa6   :  { %v78_v33 = vrot.slane %v77_v31, 1  ;;  %v87_v34 = vadd.f32 %v86_v32, %v85_v30 }
  0xa8   :  { %v79_v35 = vadd.f32 %v78_v33, %v77_v31  ;;  %v88_v36 = vrot.slane %v87_v34, 1  ;;  %v4374_v31 = vsub.s32 5, %v4330_v12 }
  0xaa   :  { %v81_v37 = vmul.f32 0.125, %v79_v35  ;;  %v89_v38 = vadd.f32 %v88_v36, %v87_v34  ;;  %v42_v35 = vsub.s32 6, %v4330_v12 }
  0xac   :  { %v90_v39 = vmul.f32 0.125, %v89_v38  ;;  %v91_v40 = vmul.f32 %v81_v37, %v81_v37  ;;  %v4381_v38 = vrot.slane %v4337_v15, %v42_v35 }
  0xae   :  { %v92_v41 = vsub.f32 %v90_v39, %v91_v40 }
  0xb0   :  { %v93_v42 = vadd.f32 1e-05, %v92_v41 }
  0xb2   :  { %4139 = vrsqrt.f32 %v93_v42 }
  0xbc   :  { %v4140_v43 = vpop.eup %4139 }
  0xbd   :  { %v95_v45 = vmul.f32 %v4140_v43, %v4337_v15 }
  0xbf   :  { %v101_v46 = vmul.f32 %v95_v45, %v81_v37  ;;  %v99_v48 = vrot.slane %v95_v45, %v4350_v44  ;;  %v46_v37 = vsub.s32 7, %v4330_v12  ;;  %v4393_v12 = vld [vmem:[%s5096_s3] ss:$0 sm:$0xff] }
  0xc1   :  { %v103_v49 = vrot.slane %v101_v46, 7  ;;  %v100_v51 = vmul.f32 %v99_v48, %v71_v22  ;;  %v4384_v41 = vrot.slane %v4337_v15, %v46_v37 }
  0xc3   :  { %v105_v50 = vsub.f32 %v4337_v15, %v103_v49 }
  0xc5   :  { %v109_v52 = vrot.slane %v105_v50, %v4354_v47 }
  0xc7   :  { %v110_v53 = vadd.f32 %v109_v52, %v100_v51 }
  0xc9   :  { %v111_v54 = vmul.f32 0.01, %v110_v53 }
  0xcb   :  { %v112_v55 = vmax.f32 %v110_v53, %v111_v54 }
  0xcd   :  { %3788 = vmatmul.mubr.msk.f32.vlgmr.msra.gmra.mrb[0].mxu0 %vm72_vm1, %v112_v55 }
  0xce   :  { %4013 = vmatpush3.bf16.msra.mxu0 %v4312_v5  ;;  %3809 = vmatprep.mubr.msk.f32.mxu0 %vm4261_vm0, %v4262_v10 }
  0xcf   :  { %4014 = vmatprep.subr.bf16.mxu0 %v4260_v8 }
  0xd2   :  { %4016 = vmatpush3.bf16.msra.mxu0 %v4316_v9 }
  0xd3   :  { %4023 = vmatprep.subr.bf16.mxu0 %v4260_v8 }
 0x1a0   :  { %v182_v56 = vpop.f32.mrb[0].mxu0 }
 0x1a1   :  { %v186_v57 = vsel %vm72_vm1, %v182_v56, 0.0  ;;  %v194_v58 = vmul.f32 %v182_v56, %v182_v56  ;;  %v3789_v59 = vpop.f32.mrb[1].mxu0 }
 0x1a2   :  { %v187_v60 = vrot.slane %v186_v57, 4 }
 0x1a3   :  { %v195_v61 = vsel %vm72_vm1, %v194_v58, 0.0 }
 0x1a4   :  { %v188_v62 = vadd.f32 %v187_v60, %v186_v57  ;;  %v196_v63 = vrot.slane %v195_v61, 4 }
 0x1a6   :  { %v189_v3 = vrot.slane %v188_v62, 2  ;;  %v197_v4 = vadd.f32 %v196_v63, %v195_v61 }
 0x1a8   :  { %v190_v6 = vadd.f32 %v189_v3, %v188_v62  ;;  %v198_v7 = vrot.slane %v197_v4, 2 }
 0x1aa   :  { %v191_v11 = vrot.slane %v190_v6, 1  ;;  %v199_v13 = vadd.f32 %v198_v7, %v197_v4 }
 0x1ac   :  { %v192_v14 = vadd.f32 %v191_v11, %v190_v6  ;;  %v200_v16 = vrot.slane %v199_v13, 1 }
 0x1ae   :  { %v193_v19 = vmul.f32 0.125, %v192_v14  ;;  %v201_v20 = vadd.f32 %v200_v16, %v199_v13 }
 0x1b0   :  { %v202_v21 = vmul.f32 0.125, %v201_v20  ;;  %v203_v22 = vmul.f32 %v193_v19, %v193_v19 }
 0x1b2   :  { %v204_v23 = vsub.f32 %v202_v21, %v203_v22 }
 0x1b4   :  { %v205_v24 = vadd.f32 1e-05, %v204_v23 }
 0x1b6   :  { %4141 = vrsqrt.f32 %v205_v24 }
 0x1c0   :  { %v4142_v25 = vpop.eup %4141 }
 0x1c1   :  { %v207_v26 = vmul.f32 %v4142_v25, %v4337_v15 }
 0x1c3   :  { %v213_v28 = vmul.f32 %v207_v26, %v193_v19  ;;  %v211_v29 = vrot.slane %v207_v26, %v4370_v27 }
 0x1c5   :  { %v215_v30 = vrot.slane %v213_v28, 7  ;;  %v212_v33 = vmul.f32 %v211_v29, %v182_v56 }
 0x1c7   :  { %v217_v32 = vsub.f32 %v4337_v15, %v215_v30 }
 0x1c9   :  { %v221_v34 = vrot.slane %v217_v32, %v4374_v31 }
 0x1cb   :  { %v222_v36 = vadd.f32 %v221_v34, %v212_v33 }
 0x1cd   :  { %v223_v39 = vmul.f32 0.01, %v222_v36 }
 0x1cf   :  { %v224_v40 = vmax.f32 %v222_v36, %v223_v39 }
 0x1d1   :  { %v225_v42 = vmul.f32 %v224_v40, %v4381_v38  ;;  %v230_v45 = vmul.f32 %v224_v40, %v4384_v41 }
 0x1d3   :  { %v226_v43 = vsel %vm72_vm1, %v225_v42, 0.0  ;;  %v231_v46 = vsel %vm72_vm1, %v230_v45, 0.0 }
 0x1d4   :  { %227 = vadd.xlane.f32.xlu1 %v226_v43 }
 0x1d8   :  { %232 = vadd.xlane.f32.xlu1 %v231_v46 }
 0x261   :  { %v228_v48 = vpop.xlane.xlu1 %227 }
 0x262   :  { %v229_v49 = vadd.f32 %v4393_v12, %v228_v48 }
 0x264   :  { %v235_v50 = vmul.f32 0.05, %v229_v49 }
 0x265   :  { %v233_v51 = vpop.xlane.xlu1 %232 }
 0x266   :  { %v4397_v52 = vadd.f32 %v235_v50, %v4307_v1  ;;  %v234_v53 = vadd.f32 %v4393_v12, %v233_v51 }
 0x268   :  { %v237_v54 = vmul.f32 0.05, %v234_v53  ;;  %241 = vperm.xlu1 %4131, %v4397_v52  }
 0x26a   :  { %v4402_v55 = vadd.f32 %v237_v54, %v4307_v1 }
 0x26c   :  { %247 = vperm.xlu0 %4130, %v4402_v55   ;;  %4133 = vset.pattern.permute.xlu1 %v4259_v2 }
 0x270   :  { %4132 = vset.pattern.permute.xlu0 %v4258_v0 }
 0x2e7   :  { %v242_v56 = vpop.permute.xlu1 %241 }
 0x2e8   :  { %v244_v58 = vmul.f32 %v242_v56, %v4340_v17 }
 0x2eb   :  { %v248_v57 = vpop.permute.xlu0 %247 }
 0x2ec   :  { %v250_v59 = vmul.f32 %v248_v57, %v4343_v18 }
 0x2ee   :  { %v251_v60 = vadd.f32 %v250_v59, %v244_v58 }
 0x2f0   :  { %v252_v61 = vsel %vm72_vm1, %v251_v60, 0.0  ;;  %v260_v62 = vmul.f32 %v251_v60, %v251_v60 }
 0x2f1   :  { %v253_v63 = vrot.slane %v252_v61, 4 }
 0x2f2   :  { %v261_v1 = vsel %vm72_vm1, %v260_v62, 0.0 }
 0x2f3   :  { %v254_v3 = vadd.f32 %v253_v63, %v252_v61  ;;  %v262_v4 = vrot.slane %v261_v1, 4 }
 0x2f5   :  { %v255_v6 = vrot.slane %v254_v3, 2  ;;  %v263_v7 = vadd.f32 %v262_v4, %v261_v1 }
 0x2f7   :  { %v256_v11 = vadd.f32 %v255_v6, %v254_v3  ;;  %v264_v13 = vrot.slane %v263_v7, 2 }
 0x2f9   :  { %v257_v14 = vrot.slane %v256_v11, 1  ;;  %v265_v16 = vadd.f32 %v264_v13, %v263_v7 }
 0x2fb   :  { %v258_v19 = vadd.f32 %v257_v14, %v256_v11  ;;  %v266_v20 = vrot.slane %v265_v16, 1 }
 0x2fd   :  { %v259_v21 = vmul.f32 0.125, %v258_v19  ;;  %v267_v22 = vadd.f32 %v266_v20, %v265_v16 }
 0x2ff   :  { %v268_v23 = vmul.f32 0.125, %v267_v22  ;;  %v269_v24 = vmul.f32 %v259_v21, %v259_v21 }
 0x301   :  { %v270_v25 = vsub.f32 %v268_v23, %v269_v24 }
 0x303   :  { %v271_v26 = vadd.f32 1e-05, %v270_v25 }
 0x305   :  { %4143 = vrsqrt.f32 %v271_v26 }
 0x30f   :  { %v4144_v28 = vpop.eup %4143 }
 0x310   :  { %v273_v29 = vmul.f32 %v4144_v28, %v4337_v15 }
 0x312   :  { %v279_v30 = vmul.f32 %v273_v29, %v259_v21  ;;  %v277_v32 = vrot.slane %v273_v29, %v4350_v44 }
 0x314   :  { %v281_v33 = vrot.slane %v279_v30, 7  ;;  %v278_v35 = vmul.f32 %v277_v32, %v251_v60 }
 0x316   :  { %v283_v34 = vsub.f32 %v4337_v15, %v281_v33 }
 0x318   :  { %v287_v36 = vrot.slane %v283_v34, %v4354_v47 }
 0x31a   :  { %v288_v37 = vadd.f32 %v287_v36, %v278_v35 }
 0x31c   :  { %v289_v39 = vmul.f32 0.01, %v288_v37 }
 0x31e   :  { %v290_v40 = vmax.f32 %v288_v37, %v289_v39 }
 0x320   :  { %3799 = vmatmul.mubr.msk.f32.vlgmr.msra.gmra.mrb[0].mxu1 %vm72_vm1, %v290_v40 }
 0x321   :  { %4019 = vmatpush3.bf16.msra.mxu1 %v4312_v5  ;;  %3820 = vmatprep.mubr.msk.f32.mxu1 %vm4261_vm0, %v4262_v10 }
 0x322   :  { %4020 = vmatprep.subr.bf16.mxu1 %v4260_v8 }
 0x325   :  { %4022 = vmatpush3.bf16.msra.mxu1 %v4316_v9 }
 0x326   :  { %4029 = vmatprep.subr.bf16.mxu1 %v4260_v8 }
 0x3f3   :  { %v360_v42 = vpop.f32.mrb[0].mxu1 }
 0x3f4   :  { %v364_v43 = vsel %vm72_vm1, %v360_v42, 0.0  ;;  %v372_v45 = vmul.f32 %v360_v42, %v360_v42  ;;  %v3800_v46 = vpop.f32.mrb[1].mxu1 }
 0x3f5   :  { %v365_v48 = vrot.slane %v364_v43, 4 }
 0x3f6   :  { %v373_v49 = vsel %vm72_vm1, %v372_v45, 0.0 }
 0x3f7   :  { %v366_v50 = vadd.f32 %v365_v48, %v364_v43  ;;  %v374_v51 = vrot.slane %v373_v49, 4 }
 0x3f9   :  { %v367_v53 = vrot.slane %v366_v50, 2  ;;  %v375_v54 = vadd.f32 %v374_v51, %v373_v49 }
 0x3fb   :  { %v368_v56 = vadd.f32 %v367_v53, %v366_v50  ;;  %v376_v57 = vrot.slane %v375_v54, 2 }
 0x3fd   :  { %v369_v58 = vrot.slane %v368_v56, 1  ;;  %v377_v59 = vadd.f32 %v376_v57, %v375_v54 }
 0x3ff   :  { %v370_v60 = vadd.f32 %v369_v58, %v368_v56  ;;  %v378_v61 = vrot.slane %v377_v59, 1 }
 0x401   :  { %v371_v62 = vmul.f32 0.125, %v370_v60  ;;  %v379_v63 = vadd.f32 %v378_v61, %v377_v59 }
 0x403   :  { %v380_v1 = vmul.f32 0.125, %v379_v63  ;;  %v381_v3 = vmul.f32 %v371_v62, %v371_v62 }
 0x405   :  { %v382_v4 = vsub.f32 %v380_v1, %v381_v3 }
 0x407   :  { %v383_v6 = vadd.f32 1e-05, %v382_v4 }
 0x409   :  { %4145 = vrsqrt.f32 %v383_v6 }
 0x413   :  { %v4146_v7 = vpop.eup %4145 }
 0x414   :  { %v385_v11 = vmul.f32 %v4146_v7, %v4337_v15 }
 0x416   :  { %v391_v13 = vmul.f32 %v385_v11, %v371_v62  ;;  %v389_v14 = vrot.slane %v385_v11, %v4370_v27 }
 0x418   :  { %v393_v16 = vrot.slane %v391_v13, 7  ;;  %v390_v20 = vmul.f32 %v389_v14, %v360_v42 }
 0x41a   :  { %v395_v19 = vsub.f32 %v4337_v15, %v393_v16 }
 0x41c   :  { %v399_v21 = vrot.slane %v395_v19, %v4374_v31 }
 0x41e   :  { %v400_v22 = vadd.f32 %v399_v21, %v390_v20 }
 0x420   :  { %v401_v23 = vmul.f32 0.01, %v400_v22 }
 0x422   :  { %v402_v24 = vmax.f32 %v400_v22, %v401_v23 }
 0x424   :  { %v408_v25 = vmul.f32 %v402_v24, %v4384_v41  ;;  %v403_v26 = vmul.f32 %v402_v24, %v4381_v38 }
 0x426   :  { %v409_v28 = vsel %vm72_vm1, %v408_v25, 0.0  ;;  %v404_v29 = vsel %vm72_vm1, %v403_v26, 0.0 }
 0x427   :  { %410 = vadd.xlane.f32.xlu1 %v409_v28  ;;  %405 = vadd.xlane.f32.xlu0 %v404_v29 }
 0x4b4   :  { %v411_v30 = vpop.xlane.xlu1 %410  ;;  %v406_v32 = vpop.xlane.xlu0 %405 }
 0x4b5   :  { %v412_v33 = vadd.f32 %v4393_v12, %v411_v30  ;;  %v407_v34 = vadd.f32 %v4393_v12, %v406_v32 }
 0x4b7   :  { %v415_v35 = vmul.f32 0.05, %v412_v33  ;;  %v413_v36 = vmul.f32 0.05, %v407_v34 }
 0x4b9   :  { %v4435_v37 = vadd.f32 %v415_v35, %v4402_v55  ;;  %v4438_v39 = vadd.f32 %v413_v36, %v4397_v52 }
 0x4bb   :  { %425 = vperm.xlu1 %4133, %v4435_v37   ;;  %419 = vperm.xlu0 %4132, %v4438_v39  }
 0x4bf   :  { %4134 = vset.pattern.permute.xlu1 %v4258_v0  ;;  %4135 = vset.pattern.permute.xlu0 %v4259_v2 }
 0x53a   :  { %v426_v40 = vpop.permute.xlu1 %425  ;;  %v420_v42 = vpop.permute.xlu0 %419 }
 0x53b   :  { %v428_v43 = vmul.f32 %v426_v40, %v4343_v18  ;;  %v422_v45 = vmul.f32 %v420_v42, %v4340_v17 }
 0x53d   :  { %v429_v46 = vadd.f32 %v428_v43, %v422_v45 }
 0x53f   :  { %v430_v55 = vsel %vm72_vm1, %v429_v46, 0.0  ;;  %v438_v48 = vmul.f32 %v429_v46, %v429_v46 }
 0x540   :  { %v431_v52 = vrot.slane %v430_v55, 4 }
 0x541   :  { %v439_v49 = vsel %vm72_vm1, %v438_v48, 0.0 }
 0x542   :  { %v432_v50 = vadd.f32 %v431_v52, %v430_v55  ;;  %v440_v51 = vrot.slane %v439_v49, 4 }
 0x544   :  { %v433_v53 = vrot.slane %v432_v50, 2  ;;  %v441_v54 = vadd.f32 %v440_v51, %v439_v49 }
 0x546   :  { %v434_v56 = vadd.f32 %v433_v53, %v432_v50  ;;  %v442_v57 = vrot.slane %v441_v54, 2 }
 0x548   :  { %v435_v58 = vrot.slane %v434_v56, 1  ;;  %v443_v59 = vadd.f32 %v442_v57, %v441_v54 }
 0x54a   :  { %v436_v60 = vadd.f32 %v435_v58, %v434_v56  ;;  %v444_v61 = vrot.slane %v443_v59, 1 }
 0x54c   :  { %v437_v62 = vmul.f32 0.125, %v436_v60  ;;  %v445_v63 = vadd.f32 %v444_v61, %v443_v59 }
 0x54e   :  { %v446_v1 = vmul.f32 0.125, %v445_v63  ;;  %v447_v3 = vmul.f32 %v437_v62, %v437_v62 }
 0x550   :  { %v448_v4 = vsub.f32 %v446_v1, %v447_v3 }
 0x552   :  { %v449_v6 = vadd.f32 1e-05, %v448_v4 }
 0x554   :  { %4147 = vrsqrt.f32 %v449_v6 }
 0x55e   :  { %v4148_v7 = vpop.eup %4147 }
 0x55f   :  { %v451_v11 = vmul.f32 %v4148_v7, %v4337_v15 }
 0x561   :  { %v457_v13 = vmul.f32 %v451_v11, %v437_v62  ;;  %v455_v14 = vrot.slane %v451_v11, %v4350_v44 }
 0x563   :  { %v459_v16 = vrot.slane %v457_v13, 7  ;;  %v456_v20 = vmul.f32 %v455_v14, %v429_v46 }
 0x565   :  { %v461_v19 = vsub.f32 %v4337_v15, %v459_v16 }
 0x567   :  { %v465_v21 = vrot.slane %v461_v19, %v4354_v47 }
 0x569   :  { %v466_v22 = vadd.f32 %v465_v21, %v456_v20 }
 0x56b   :  { %v467_v23 = vmul.f32 0.01, %v466_v22 }
 0x56d   :  { %v468_v24 = vmax.f32 %v466_v22, %v467_v23 }
 0x56f   :  { %3810 = vmatmul.mubr.msk.f32.vlgmr.msra.gmra.mrb[2].mxu0 %vm72_vm1, %v468_v24 }
 0x570   :  { %4025 = vmatpush3.bf16.msra.mxu0 %v4312_v5  ;;  %3831 = vmatprep.mubr.msk.f32.mxu0 %vm4261_vm0, %v4262_v10 }
 0x571   :  { %4026 = vmatprep.subr.bf16.mxu0 %v4260_v8 }
 0x574   :  { %4028 = vmatpush3.bf16.msra.mxu0 %v4316_v9 }
 0x575   :  { %4035 = vmatprep.subr.bf16.mxu0 %v4260_v8 }
 0x642   :  { %v538_v25 = vpop.f32.mrb[2].mxu0 }
 0x643   :  { %v542_v26 = vsel %vm72_vm1, %v538_v25, 0.0  ;;  %v550_v28 = vmul.f32 %v538_v25, %v538_v25  ;;  %v3811_v29 = vpop.f32.mrb[3].mxu0 }
 0x644   :  { %v543_v30 = vrot.slane %v542_v26, 4 }
 0x645   :  { %v551_v32 = vsel %vm72_vm1, %v550_v28, 0.0 }
 0x646   :  { %v544_v33 = vadd.f32 %v543_v30, %v542_v26  ;;  %v552_v34 = vrot.slane %v551_v32, 4 }
 0x648   :  { %v545_v35 = vrot.slane %v544_v33, 2  ;;  %v553_v36 = vadd.f32 %v552_v34, %v551_v32 }
 0x64a   :  { %v546_v40 = vadd.f32 %v545_v35, %v544_v33  ;;  %v554_v42 = vrot.slane %v553_v36, 2 }
 0x64c   :  { %v547_v43 = vrot.slane %v546_v40, 1  ;;  %v555_v45 = vadd.f32 %v554_v42, %v553_v36 }
 0x64e   :  { %v548_v46 = vadd.f32 %v547_v43, %v546_v40  ;;  %v556_v55 = vrot.slane %v555_v45, 1 }
 0x650   :  { %v549_v48 = vmul.f32 0.125, %v548_v46  ;;  %v557_v52 = vadd.f32 %v556_v55, %v555_v45 }
 0x652   :  { %v558_v49 = vmul.f32 0.125, %v557_v52  ;;  %v559_v50 = vmul.f32 %v549_v48, %v549_v48 }
 0x654   :  { %v560_v51 = vsub.f32 %v558_v49, %v559_v50 }
 0x656   :  { %v561_v53 = vadd.f32 1e-05, %v560_v51 }
 0x658   :  { %4149 = vrsqrt.f32 %v561_v53 }
 0x662   :  { %v4150_v54 = vpop.eup %4149 }
 0x663   :  { %v563_v56 = vmul.f32 %v4150_v54, %v4337_v15 }
 0x665   :  { %v569_v57 = vmul.f32 %v563_v56, %v549_v48  ;;  %v567_v58 = vrot.slane %v563_v56, %v4370_v27 }
 0x667   :  { %v571_v59 = vrot.slane %v569_v57, 7  ;;  %v568_v61 = vmul.f32 %v567_v58, %v538_v25 }
 0x669   :  { %v573_v60 = vsub.f32 %v4337_v15, %v571_v59 }
 0x66b   :  { %v577_v62 = vrot.slane %v573_v60, %v4374_v31 }
 0x66d   :  { %v578_v63 = vadd.f32 %v577_v62, %v568_v61 }
 0x66f   :  { %v579_v1 = vmul.f32 0.01, %v578_v63 }
 0x671   :  { %v580_v3 = vmax.f32 %v578_v63, %v579_v1 }
 0x673   :  { %v586_v4 = vmul.f32 %v580_v3, %v4384_v41  ;;  %v581_v6 = vmul.f32 %v580_v3, %v4381_v38 }
 0x675   :  { %v587_v7 = vsel %vm72_vm1, %v586_v4, 0.0  ;;  %v582_v11 = vsel %vm72_vm1, %v581_v6, 0.0 }
 0x676   :  { %588 = vadd.xlane.f32.xlu0 %v587_v7  ;;  %583 = vadd.xlane.f32.xlu1 %v582_v11 }
 0x703   :  { %v589_v13 = vpop.xlane.xlu0 %588  ;;  %v584_v14 = vpop.xlane.xlu1 %583 }
 0x704   :  { %v590_v16 = vadd.f32 %v4393_v12, %v589_v13  ;;  %v585_v19 = vadd.f32 %v4393_v12, %v584_v14 }
 0x706   :  { %v593_v20 = vmul.f32 0.05, %v590_v16  ;;  %v591_v21 = vmul.f32 0.05, %v585_v19 }
 0x708   :  { %v4472_v22 = vadd.f32 %v593_v20, %v4435_v37  ;;  %v4475_v23 = vadd.f32 %v591_v21, %v4438_v39 }
 0x70a   :  { %603 = vperm.xlu0 %4135, %v4472_v22   ;;  %597 = vperm.xlu1 %4134, %v4475_v23  }
 0x70e   :  { %4137 = vset.pattern.permute.xlu0 %v4258_v0 }
 0x789   :  { %v604_v24 = vpop.permute.xlu0 %603  ;;  %v598_v25 = vpop.permute.xlu1 %597 }
 0x78a   :  { %v606_v26 = vmul.f32 %v604_v24, %v4343_v18  ;;  %v600_v28 = vmul.f32 %v598_v25, %v4340_v17 }
 0x78c   :  { %v607_v29 = vadd.f32 %v606_v26, %v600_v28 }
 0x78e   :  { %v608_v30 = vsel %vm72_vm1, %v607_v29, 0.0  ;;  %v616_v37 = vmul.f32 %v607_v29, %v607_v29 }
 0x78f   :  { %v609_v32 = vrot.slane %v608_v30, 4 }
 0x790   :  { %v617_v39 = vsel %vm72_vm1, %v616_v37, 0.0 }
 0x791   :  { %v610_v33 = vadd.f32 %v609_v32, %v608_v30  ;;  %v618_v34 = vrot.slane %v617_v39, 4 }
 0x793   :  { %v611_v35 = vrot.slane %v610_v33, 2  ;;  %v619_v36 = vadd.f32 %v618_v34, %v617_v39 }
 0x795   :  { %v612_v40 = vadd.f32 %v611_v35, %v610_v33  ;;  %v620_v42 = vrot.slane %v619_v36, 2 }
 0x797   :  { %v613_v0 = vrot.slane %v612_v40, 1  ;;  %v621_v43 = vadd.f32 %v620_v42, %v619_v36 }
 0x799   :  { %v614_v45 = vadd.f32 %v613_v0, %v612_v40  ;;  %v622_v46 = vrot.slane %v621_v43, 1 }
 0x79b   :  { %v615_v55 = vmul.f32 0.125, %v614_v45  ;;  %v623_v48 = vadd.f32 %v622_v46, %v621_v43 }
 0x79d   :  { %v624_v52 = vmul.f32 0.125, %v623_v48  ;;  %v625_v49 = vmul.f32 %v615_v55, %v615_v55 }
 0x79f   :  { %v626_v50 = vsub.f32 %v624_v52, %v625_v49 }
 0x7a1   :  { %v627_v51 = vadd.f32 1e-05, %v626_v50 }
 0x7a3   :  { %4151 = vrsqrt.f32 %v627_v51 }
 0x7ad   :  { %v4152_v53 = vpop.eup %4151 }
 0x7ae   :  { %v629_v54 = vmul.f32 %v4152_v53, %v4337_v15 }
 0x7b0   :  { %v635_v56 = vmul.f32 %v629_v54, %v615_v55  ;;  %v633_v57 = vrot.slane %v629_v54, %v4350_v44 }
 0x7b2   :  { %v637_v58 = vrot.slane %v635_v56, 7  ;;  %v634_v60 = vmul.f32 %v633_v57, %v607_v29 }
 0x7b4   :  { %v639_v59 = vsub.f32 %v4337_v15, %v637_v58 }
 0x7b6   :  { %v643_v61 = vrot.slane %v639_v59, %v4354_v47 }
 0x7b8   :  { %v644_v62 = vadd.f32 %v643_v61, %v634_v60 }
 0x7ba   :  { %v645_v63 = vmul.f32 0.01, %v644_v62 }
 0x7bc   :  { %v646_v1 = vmax.f32 %v644_v62, %v645_v63 }
 0x7be   :  { %3821 = vmatmul.mubr.msk.f32.vlgmr.msra.gmra.mrb[2].mxu1 %vm72_vm1, %v646_v1 }
 0x7bf   :  { %4031 = vmatpush3.bf16.msra.mxu1 %v4312_v5  ;;  %3842 = vmatprep.mubr.msk.f32.mxu1 %vm4261_vm0, %v4262_v10 }
 0x7c0   :  { %4032 = vmatprep.subr.bf16.mxu1 %v4260_v8 }
 0x7c3   :  { %4034 = vmatpush3.bf16.msra.mxu1 %v4316_v9 }
 0x7c4   :  { %4041 = vmatprep.subr.bf16.mxu1 %v4260_v8 }
 0x891   :  { %v716_v3 = vpop.f32.mrb[2].mxu1 }
 0x892   :  { %v720_v4 = vsel %vm72_vm1, %v716_v3, 0.0  ;;  %v728_v6 = vmul.f32 %v716_v3, %v716_v3  ;;  %v3822_v7 = vpop.f32.mrb[3].mxu1 }
 0x893   :  { %v721_v11 = vrot.slane %v720_v4, 4 }
 0x894   :  { %v729_v13 = vsel %vm72_vm1, %v728_v6, 0.0 }
 0x895   :  { %v722_v14 = vadd.f32 %v721_v11, %v720_v4  ;;  %v730_v16 = vrot.slane %v729_v13, 4 }
 0x897   :  { %v723_v19 = vrot.slane %v722_v14, 2  ;;  %v731_v20 = vadd.f32 %v730_v16, %v729_v13 }
 0x899   :  { %v724_v21 = vadd.f32 %v723_v19, %v722_v14  ;;  %v732_v24 = vrot.slane %v731_v20, 2 }
 0x89b   :  { %v725_v25 = vrot.slane %v724_v21, 1  ;;  %v733_v26 = vadd.f32 %v732_v24, %v731_v20 }
 0x89d   :  { %v726_v28 = vadd.f32 %v725_v25, %v724_v21  ;;  %v734_v29 = vrot.slane %v733_v26, 1 }
 0x89f   :  { %v727_v30 = vmul.f32 0.125, %v726_v28  ;;  %v735_v37 = vadd.f32 %v734_v29, %v733_v26 }
 0x8a1   :  { %v736_v32 = vmul.f32 0.125, %v735_v37  ;;  %v737_v39 = vmul.f32 %v727_v30, %v727_v30 }
 0x8a3   :  { %v738_v33 = vsub.f32 %v736_v32, %v737_v39 }
 0x8a5   :  { %v739_v34 = vadd.f32 1e-05, %v738_v33 }
 0x8a7   :  { %4153 = vrsqrt.f32 %v739_v34 }
 0x8b1   :  { %v4154_v35 = vpop.eup %4153 }
 0x8b2   :  { %v741_v36 = vmul.f32 %v4154_v35, %v4337_v15 }
 0x8b4   :  { %v747_v40 = vmul.f32 %v741_v36, %v727_v30  ;;  %v745_v42 = vrot.slane %v741_v36, %v4370_v27 }
 0x8b6   :  { %v749_v0 = vrot.slane %v747_v40, 7  ;;  %v746_v45 = vmul.f32 %v745_v42, %v716_v3 }
 0x8b8   :  { %v751_v43 = vsub.f32 %v4337_v15, %v749_v0 }
 0x8ba   :  { %v755_v46 = vrot.slane %v751_v43, %v4374_v31 }
 0x8bc   :  { %v756_v55 = vadd.f32 %v755_v46, %v746_v45 }
 0x8be   :  { %v757_v48 = vmul.f32 0.01, %v756_v55 }
 0x8c0   :  { %v758_v52 = vmax.f32 %v756_v55, %v757_v48 }
 0x8c2   :  { %v764_v49 = vmul.f32 %v758_v52, %v4384_v41  ;;  %v759_v50 = vmul.f32 %v758_v52, %v4381_v38 }
 0x8c4   :  { %v765_v51 = vsel %vm72_vm1, %v764_v49, 0.0  ;;  %v760_v53 = vsel %vm72_vm1, %v759_v50, 0.0 }
 0x8c5   :  { %766 = vadd.xlane.f32.xlu0 %v765_v51  ;;  %761 = vadd.xlane.f32.xlu1 %v760_v53 }
 0x952   :  { %v767_v54 = vpop.xlane.xlu0 %766  ;;  %v762_v56 = vpop.xlane.xlu1 %761 }
 0x953   :  { %v763_v57 = vadd.f32 %v4393_v12, %v762_v56  ;;  %v768_v58 = vadd.f32 %v4393_v12, %v767_v54 }
 0x955   :  { %v769_v59 = vmul.f32 0.05, %v763_v57  ;;  %v771_v61 = vmul.f32 0.05, %v768_v58 }
 0x957   :  { %v4508_v60 = vadd.f32 %v769_v59, %v4475_v23  ;;  %v4512_v62 = vadd.f32 %v771_v61, %v4472_v22 }
 0x959   :  { %775 = vperm.xlu1 %4134, %v4508_v60  }
 0x95d   :  { %4136 = vset.pattern.permute.xlu1 %v4259_v2 }
 0x95e   :  { %781 = vperm.xlu1 %4136, %v4512_v62  }
 0x9d8   :  { %v776_v63 = vpop.permute.xlu1 %775 }
 0x9d9   :  { %v778_v3 = vmul.f32 %v776_v63, %v4340_v17 }
 0x9dd   :  { %v782_v1 = vpop.permute.xlu1 %781 }
 0x9de   :  { %v784_v4 = vmul.f32 %v782_v1, %v4343_v18 }
 0x9e0   :  { %v785_v6 = vadd.f32 %v784_v4, %v778_v3 }
 0x9e2   :  { %v786_v23 = vsel %vm72_vm1, %v785_v6, 0.0  ;;  %v794_v7 = vmul.f32 %v785_v6, %v785_v6 }
 0x9e3   :  { %v787_v11 = vrot.slane %v786_v23, 4 }
 0x9e4   :  { %v795_v13 = vsel %vm72_vm1, %v794_v7, 0.0 }
 0x9e5   :  { %v788_v14 = vadd.f32 %v787_v11, %v786_v23  ;;  %v796_v22 = vrot.slane %v795_v13, 4 }
 0x9e7   :  { %v789_v16 = vrot.slane %v788_v14, 2  ;;  %v797_v19 = vadd.f32 %v796_v22, %v795_v13 }
 0x9e9   :  { %v790_v20 = vadd.f32 %v789_v16, %v788_v14  ;;  %v798_v21 = vrot.slane %v797_v19, 2 }
 0x9eb   :  { %v791_v24 = vrot.slane %v790_v20, 1  ;;  %v799_v25 = vadd.f32 %v798_v21, %v797_v19 }
 0x9ed   :  { %v792_v26 = vadd.f32 %v791_v24, %v790_v20  ;;  %v800_v28 = vrot.slane %v799_v25, 1 }
 0x9ef   :  { %v793_v29 = vmul.f32 0.125, %v792_v26  ;;  %v801_v30 = vadd.f32 %v800_v28, %v799_v25 }
 0x9f1   :  { %v802_v37 = vmul.f32 0.125, %v801_v30  ;;  %v803_v32 = vmul.f32 %v793_v29, %v793_v29 }
 0x9f3   :  { %v804_v39 = vsub.f32 %v802_v37, %v803_v32 }
 0x9f5   :  { %v805_v33 = vadd.f32 1e-05, %v804_v39 }
 0x9f7   :  { %4155 = vrsqrt.f32 %v805_v33 }
 0xa01   :  { %v4156_v34 = vpop.eup %4155 }
 0xa02   :  { %v807_v35 = vmul.f32 %v4156_v34, %v4337_v15 }
 0xa04   :  { %v813_v36 = vmul.f32 %v807_v35, %v793_v29  ;;  %v811_v40 = vrot.slane %v807_v35, %v4350_v44 }
 0xa06   :  { %v815_v42 = vrot.slane %v813_v36, 7  ;;  %v812_v43 = vmul.f32 %v811_v40, %v785_v6 }
 0xa08   :  { %v817_v0 = vsub.f32 %v4337_v15, %v815_v42 }
 0xa0a   :  { %v821_v45 = vrot.slane %v817_v0, %v4354_v47 }
 0xa0c   :  { %v822_v46 = vadd.f32 %v821_v45, %v812_v43 }
 0xa0e   :  { %v823_v55 = vmul.f32 0.01, %v822_v46 }
 0xa10   :  { %v824_v48 = vmax.f32 %v822_v46, %v823_v55 }
 0xa12   :  { %3832 = vmatmul.mubr.msk.f32.vlgmr.msra.gmra.mrb[4].mxu0 %vm72_vm1, %v824_v48 }
 0xa13   :  { %4037 = vmatpush3.bf16.msra.mxu0 %v4312_v5  ;;  %3853 = vmatprep.mubr.msk.f32.mxu0 %vm4261_vm0, %v4262_v10 }
 0xa14   :  { %4038 = vmatprep.subr.bf16.mxu0 %v4260_v8 }
 0xa17   :  { %4040 = vmatpush3.bf16.msra.mxu0 %v4316_v9 }
 0xa18   :  { %4047 = vmatprep.subr.bf16.mxu0 %v4260_v8 }
 0xae5   :  { %v894_v52 = vpop.f32.mrb[4].mxu0 }
 0xae6   :  { %v898_v49 = vsel %vm72_vm1, %v894_v52, 0.0  ;;  %v906_v50 = vmul.f32 %v894_v52, %v894_v52  ;;  %v3833_v51 = vpop.f32.mrb[5].mxu0 }
 0xae7   :  { %v899_v53 = vrot.slane %v898_v49, 4 }
 0xae8   :  { %v907_v54 = vsel %vm72_vm1, %v906_v50, 0.0 }
 0xae9   :  { %v900_v56 = vadd.f32 %v899_v53, %v898_v49  ;;  %v908_v57 = vrot.slane %v907_v54, 4 }
 0xaeb   :  { %v901_v58 = vrot.slane %v900_v56, 2  ;;  %v909_v59 = vadd.f32 %v908_v57, %v907_v54 }
 0xaed   :  { %v902_v61 = vadd.f32 %v901_v58, %v900_v56  ;;  %v910_v63 = vrot.slane %v909_v59, 2 }
 0xaef   :  { %v903_v1 = vrot.slane %v902_v61, 1  ;;  %v911_v3 = vadd.f32 %v910_v63, %v909_v59 }
 0xaf1   :  { %v904_v4 = vadd.f32 %v903_v1, %v902_v61  ;;  %v912_v6 = vrot.slane %v911_v3, 1 }
 0xaf3   :  { %v905_v23 = vmul.f32 0.125, %v904_v4  ;;  %v913_v7 = vadd.f32 %v912_v6, %v911_v3 }
 0xaf5   :  { %v914_v11 = vmul.f32 0.125, %v913_v7  ;;  %v915_v13 = vmul.f32 %v905_v23, %v905_v23 }
 0xaf7   :  { %v916_v14 = vsub.f32 %v914_v11, %v915_v13 }
 0xaf9   :  { %v917_v22 = vadd.f32 1e-05, %v916_v14 }
 0xafb   :  { %4157 = vrsqrt.f32 %v917_v22 }
 0xb05   :  { %v4158_v16 = vpop.eup %4157 }
 0xb06   :  { %v919_v19 = vmul.f32 %v4158_v16, %v4337_v15 }
 0xb08   :  { %v925_v20 = vmul.f32 %v919_v19, %v905_v23  ;;  %v923_v21 = vrot.slane %v919_v19, %v4370_v27 }
 0xb0a   :  { %v927_v24 = vrot.slane %v925_v20, 7  ;;  %v924_v26 = vmul.f32 %v923_v21, %v894_v52 }
 0xb0c   :  { %v929_v25 = vsub.f32 %v4337_v15, %v927_v24  ;;  %v4560_v24 = vld [vmem:[%s5094_s1] sm:$0xff] }
 0xb0e   :  { %v933_v28 = vrot.slane %v929_v25, %v4374_v31 }
 0xb10   :  { %v934_v29 = vadd.f32 %v933_v28, %v924_v26 }
 0xb12   :  { %v935_v30 = vmul.f32 0.01, %v934_v29 }
 0xb14   :  { %v936_v37 = vmax.f32 %v934_v29, %v935_v30 }
 0xb16   :  { %v942_v32 = vmul.f32 %v936_v37, %v4384_v41  ;;  %v937_v39 = vmul.f32 %v936_v37, %v4381_v38 }
 0xb18   :  { %v943_v33 = vsel %vm72_vm1, %v942_v32, 0.0  ;;  %v938_v34 = vsel %vm72_vm1, %v937_v39, 0.0 }
 0xb19   :  { %944 = vadd.xlane.f32.xlu0 %v943_v33  ;;  %939 = vadd.xlane.f32.xlu1 %v938_v34 }
 0xba6   :  { %v945_v35 = vpop.xlane.xlu0 %944  ;;  %v940_v36 = vpop.xlane.xlu1 %939 }
 0xba7   :  { %v946_v40 = vadd.f32 %v4393_v12, %v945_v35  ;;  %v941_v42 = vadd.f32 %v4393_v12, %v940_v36 }
 0xba9   :  { %v949_v0 = vmul.f32 0.05, %v946_v40  ;;  %v947_v43 = vmul.f32 0.05, %v941_v42 }
 0xbab   :  { %v4544_v45 = vadd.f32 %v949_v0, %v4512_v62  ;;  %v4547_v46 = vadd.f32 %v947_v43, %v4508_v60 }
 0xbad   :  { %959 = vperm.xlu1 %4136, %v4544_v45   ;;  %953 = vperm.xlu0 %4137, %v4547_v46  }
 0xc2c   :  { %v954_v55 = vpop.permute.xlu0 %953  ;;  %v960_v48 = vpop.permute.xlu1 %959 }
 0xc2d   :  { %v956_v52 = vmul.f32 %v954_v55, %v4340_v17  ;;  %v962_v49 = vmul.f32 %v960_v48, %v4343_v18 }
 0xc2f   :  { %v963_v50 = vadd.f32 %v962_v49, %v956_v52 }
 0xc31   :  { %v964_v51 = vsel %vm72_vm1, %v963_v50, 0.0  ;;  %v972_v53 = vmul.f32 %v963_v50, %v963_v50 }
 0xc32   :  { %v965_v54 = vrot.slane %v964_v51, 4 }
 0xc33   :  { %v973_v62 = vsel %vm72_vm1, %v972_v53, 0.0 }
 0xc34   :  { %v966_v56 = vadd.f32 %v965_v54, %v964_v51  ;;  %v974_v60 = vrot.slane %v973_v62, 4 }
 0xc36   :  { %v967_v57 = vrot.slane %v966_v56, 2  ;;  %v975_v58 = vadd.f32 %v974_v60, %v973_v62 }
 0xc38   :  { %v968_v59 = vadd.f32 %v967_v57, %v966_v56  ;;  %v976_v61 = vrot.slane %v975_v58, 2 }
 0xc3a   :  { %v969_v63 = vrot.slane %v968_v59, 1  ;;  %v977_v1 = vadd.f32 %v976_v61, %v975_v58 }
 0xc3c   :  { %v970_v3 = vadd.f32 %v969_v63, %v968_v59  ;;  %v978_v4 = vrot.slane %v977_v1, 1 }
 0xc3e   :  { %v971_v6 = vmul.f32 0.125, %v970_v3  ;;  %v979_v23 = vadd.f32 %v978_v4, %v977_v1 }
 0xc40   :  { %v980_v7 = vmul.f32 0.125, %v979_v23  ;;  %v981_v11 = vmul.f32 %v971_v6, %v971_v6 }
 0xc42   :  { %v982_v13 = vsub.f32 %v980_v7, %v981_v11 }
 0xc44   :  { %v983_v14 = vadd.f32 1e-05, %v982_v13 }
 0xc46   :  { %4159 = vrsqrt.f32 %v983_v14 }
 0xc50   :  { %v4160_v22 = vpop.eup %4159 }
 0xc51   :  { %v985_v16 = vmul.f32 %v4160_v22, %v4337_v15 }
 0xc53   :  { %v991_v19 = vmul.f32 %v985_v16, %v971_v6  ;;  %v989_v20 = vrot.slane %v985_v16, %v4350_v44 }
 0xc55   :  { %v993_v21 = vrot.slane %v991_v19, 7  ;;  %v990_v26 = vmul.f32 %v989_v20, %v963_v50 }
 0xc57   :  { %v995_v25 = vsub.f32 %v4560_v24, %v993_v21 }
 0xc59   :  { %v999_v28 = vrot.slane %v995_v25, %v4354_v47 }
 0xc5b   :  { %v1000_v29 = vadd.f32 %v999_v28, %v990_v26 }
 0xc5d   :  { %v1001_v30 = vmul.f32 0.01, %v1000_v29 }
 0xc5f   :  { %v1002_v37 = vmax.f32 %v1000_v29, %v1001_v30 }
 0xc61   :  { %3843 = vmatmul.mubr.msk.f32.vlgmr.msra.gmra.mrb[4].mxu1 %vm72_vm1, %v1002_v37 }
 0xc62   :  { %4043 = vmatpush3.bf16.msra.mxu1 %v4312_v5  ;;  %3864 = vmatprep.mubr.msk.f32.mxu1 %vm4261_vm0, %v4262_v10 }
 0xc63   :  { %4044 = vmatprep.subr.bf16.mxu1 %v4260_v8 }
 0xc66   :  { %4046 = vmatpush3.bf16.msra.mxu1 %v4316_v9 }
 0xc67   :  { %4053 = vmatprep.subr.bf16.mxu1 %v4260_v8 }
 0xd34   :  { %v1072_v15 = vpop.f32.mrb[4].mxu1 }
 0xd35   :  { %v1076_v32 = vsel %vm72_vm1, %v1072_v15, 0.0  ;;  %v1084_v39 = vmul.f32 %v1072_v15, %v1072_v15  ;;  %v3844_v33 = vpop.f32.mrb[5].mxu1 }
 0xd36   :  { %v1077_v34 = vrot.slane %v1076_v32, 4 }
 0xd37   :  { %v1085_v35 = vsel %vm72_vm1, %v1084_v39, 0.0 }
 0xd38   :  { %v1078_v36 = vadd.f32 %v1077_v34, %v1076_v32  ;;  %v1086_v40 = vrot.slane %v1085_v35, 4 }
 0xd3a   :  { %v1079_v42 = vrot.slane %v1078_v36, 2  ;;  %v1087_v0 = vadd.f32 %v1086_v40, %v1085_v35 }
 0xd3c   :  { %v1080_v43 = vadd.f32 %v1079_v42, %v1078_v36  ;;  %v1088_v55 = vrot.slane %v1087_v0, 2 }
 0xd3e   :  { %v1081_v48 = vrot.slane %v1080_v43, 1  ;;  %v1089_v52 = vadd.f32 %v1088_v55, %v1087_v0 }
 0xd40   :  { %v1082_v49 = vadd.f32 %v1081_v48, %v1080_v43  ;;  %v1090_v50 = vrot.slane %v1089_v52, 1 }
 0xd42   :  { %v1083_v51 = vmul.f32 0.125, %v1082_v49  ;;  %v1091_v53 = vadd.f32 %v1090_v50, %v1089_v52 }
 0xd44   :  { %v1092_v54 = vmul.f32 0.125, %v1091_v53  ;;  %v1093_v62 = vmul.f32 %v1083_v51, %v1083_v51 }
 0xd46   :  { %v1094_v56 = vsub.f32 %v1092_v54, %v1093_v62 }
 0xd48   :  { %v1095_v60 = vadd.f32 1e-05, %v1094_v56 }
 0xd4a   :  { %4161 = vrsqrt.f32 %v1095_v60 }
 0xd54   :  { %v4162_v57 = vpop.eup %4161 }
 0xd55   :  { %v1097_v58 = vmul.f32 %v4560_v24, %v4162_v57 }
 0xd57   :  { %v1103_v59 = vmul.f32 %v1097_v58, %v1083_v51  ;;  %v1101_v61 = vrot.slane %v1097_v58, %v4370_v27 }
 0xd59   :  { %v1105_v63 = vrot.slane %v1103_v59, 7  ;;  %v1102_v3 = vmul.f32 %v1101_v61, %v1072_v15 }
 0xd5b   :  { %v1107_v1 = vsub.f32 %v4560_v24, %v1105_v63 }
 0xd5d   :  { %v1111_v4 = vrot.slane %v1107_v1, %v4374_v31 }
 0xd5f   :  { %v1112_v6 = vadd.f32 %v1111_v4, %v1102_v3 }
 0xd61   :  { %v1113_v23 = vmul.f32 0.01, %v1112_v6 }
 0xd63   :  { %v1114_v7 = vmax.f32 %v1112_v6, %v1113_v23 }
 0xd65   :  { %v1120_v11 = vmul.f32 %v1114_v7, %v4384_v41  ;;  %v1115_v13 = vmul.f32 %v1114_v7, %v4381_v38 }
 0xd67   :  { %v1121_v14 = vsel %vm72_vm1, %v1120_v11, 0.0  ;;  %v1116_v22 = vsel %vm72_vm1, %v1115_v13, 0.0 }
 0xd68   :  { %1122 = vadd.xlane.f32.xlu0 %v1121_v14  ;;  %1117 = vadd.xlane.f32.xlu1 %v1116_v22 }
 0xdf5   :  { %v1123_v16 = vpop.xlane.xlu0 %1122  ;;  %v1118_v19 = vpop.xlane.xlu1 %1117 }
 0xdf6   :  { %v1124_v20 = vadd.f32 %v4393_v12, %v1123_v16  ;;  %v1119_v21 = vadd.f32 %v4393_v12, %v1118_v19 }
 0xdf8   :  { %v1127_v25 = vmul.f32 0.05, %v1124_v20  ;;  %v1125_v26 = vmul.f32 0.05, %v1119_v21 }
 0xdfa   :  { %v4584_v28 = vadd.f32 %v1127_v25, %v4544_v45  ;;  %v4587_v29 = vadd.f32 %v1125_v26, %v4547_v46 }
 0xdfc   :  { %1137 = vperm.xlu1 %4136, %v4584_v28   ;;  %1131 = vperm.xlu0 %4137, %v4587_v29  }
 0xe7b   :  { %v1132_v30 = vpop.permute.xlu0 %1131  ;;  %v1138_v37 = vpop.permute.xlu1 %1137 }
 0xe7c   :  { %v1134_v15 = vmul.f32 %v1132_v30, %v4340_v17  ;;  %v1140_v32 = vmul.f32 %v1138_v37, %v4343_v18 }
 0xe7e   :  { %v1141_v39 = vadd.f32 %v1140_v32, %v1134_v15 }
 0xe80   :  { %v1142_v12 = vsel %vm72_vm1, %v1141_v39, 0.0  ;;  %v1150_v33 = vmul.f32 %v1141_v39, %v1141_v39 }
 0xe81   :  { %v1143_v34 = vrot.slane %v1142_v12, 4 }
 0xe82   :  { %v1151_v45 = vsel %vm72_vm1, %v1150_v33, 0.0 }
 0xe83   :  { %v1144_v35 = vadd.f32 %v1143_v34, %v1142_v12  ;;  %v1152_v46 = vrot.slane %v1151_v45, 4 }
 0xe85   :  { %v1145_v36 = vrot.slane %v1144_v35, 2  ;;  %v1153_v40 = vadd.f32 %v1152_v46, %v1151_v45 }
 0xe87   :  { %v1146_v42 = vadd.f32 %v1145_v36, %v1144_v35  ;;  %v1154_v0 = vrot.slane %v1153_v40, 2 }
 0xe89   :  { %v1147_v43 = vrot.slane %v1146_v42, 1  ;;  %v1155_v55 = vadd.f32 %v1154_v0, %v1153_v40 }
 0xe8b   :  { %v1148_v48 = vadd.f32 %v1147_v43, %v1146_v42  ;;  %v1156_v52 = vrot.slane %v1155_v55, 1 }
 0xe8d   :  { %v1149_v49 = vmul.f32 0.125, %v1148_v48  ;;  %v1157_v50 = vadd.f32 %v1156_v52, %v1155_v55 }
 0xe8f   :  { %v1158_v51 = vmul.f32 0.125, %v1157_v50  ;;  %v1159_v53 = vmul.f32 %v1149_v49, %v1149_v49 }
 0xe91   :  { %v1160_v54 = vsub.f32 %v1158_v51, %v1159_v53 }
 0xe93   :  { %v1161_v62 = vadd.f32 1e-05, %v1160_v54 }
 0xe95   :  { %4163 = vrsqrt.f32 %v1161_v62 }
 0xe9f   :  { %v4164_v56 = vpop.eup %4163 }
 0xea0   :  { %v1163_v60 = vmul.f32 %v4560_v24, %v4164_v56 }
 0xea2   :  { %v1169_v57 = vmul.f32 %v1163_v60, %v1149_v49  ;;  %v1167_v58 = vrot.slane %v1163_v60, %v4350_v44 }
 0xea4   :  { %v1171_v59 = vrot.slane %v1169_v57, 7  ;;  %v1168_v63 = vmul.f32 %v1167_v58, %v1141_v39  ;;  %v4619_v57 = vld [vmem:[%s5096_s3] ss:$0 sm:$0xff] }
 0xea6   :  { %v1173_v61 = vsub.f32 %v4560_v24, %v1171_v59 }
 0xea8   :  { %v1177_v1 = vrot.slane %v1173_v61, %v4354_v47 }
 0xeaa   :  { %v1178_v3 = vadd.f32 %v1177_v1, %v1168_v63 }
 0xeac   :  { %v1179_v4 = vmul.f32 0.01, %v1178_v3 }
 0xeae   :  { %v1180_v6 = vmax.f32 %v1178_v3, %v1179_v4 }
 0xeb0   :  { %3854 = vmatmul.mubr.msk.f32.vlgmr.msra.gmra.mrb[6].mxu0 %vm72_vm1, %v1180_v6 }
 0xeb1   :  { %4049 = vmatpush3.bf16.msra.mxu0 %v4312_v5  ;;  %3875 = vmatprep.mubr.msk.f32.mxu0 %vm4261_vm0, %v4262_v10 }
 0xeb2   :  { %4050 = vmatprep.subr.bf16.mxu0 %v4260_v8 }
 0xeb5   :  { %4052 = vmatpush3.bf16.msra.mxu0 %v4316_v9 }
 0xeb6   :  { %4059 = vmatprep.subr.bf16.mxu0 %v4260_v8 }
 0xf83   :  { %v1250_v23 = vpop.f32.mrb[6].mxu0 }
 0xf84   :  { %v1254_v7 = vsel %vm72_vm1, %v1250_v23, 0.0  ;;  %v1262_v11 = vmul.f32 %v1250_v23, %v1250_v23  ;;  %v3855_v13 = vpop.f32.mrb[7].mxu0 }
 0xf85   :  { %v1255_v14 = vrot.slane %v1254_v7, 4 }
 0xf86   :  { %v1263_v22 = vsel %vm72_vm1, %v1262_v11, 0.0 }
 0xf87   :  { %v1256_v16 = vadd.f32 %v1255_v14, %v1254_v7  ;;  %v1264_v19 = vrot.slane %v1263_v22, 4 }
 0xf89   :  { %v1257_v20 = vrot.slane %v1256_v16, 2  ;;  %v1265_v21 = vadd.f32 %v1264_v19, %v1263_v22 }
 0xf8b   :  { %v1258_v25 = vadd.f32 %v1257_v20, %v1256_v16  ;;  %v1266_v26 = vrot.slane %v1265_v21, 2 }
 0xf8d   :  { %v1259_v30 = vrot.slane %v1258_v25, 1  ;;  %v1267_v37 = vadd.f32 %v1266_v26, %v1265_v21 }
 0xf8f   :  { %v1260_v15 = vadd.f32 %v1259_v30, %v1258_v25  ;;  %v1268_v32 = vrot.slane %v1267_v37, 1 }
 0xf91   :  { %v1261_v39 = vmul.f32 0.125, %v1260_v15  ;;  %v1269_v12 = vadd.f32 %v1268_v32, %v1267_v37 }
 0xf93   :  { %v1270_v33 = vmul.f32 0.125, %v1269_v12  ;;  %v1271_v34 = vmul.f32 %v1261_v39, %v1261_v39 }
 0xf95   :  { %v1272_v45 = vsub.f32 %v1270_v33, %v1271_v34 }
 0xf97   :  { %v1273_v35 = vadd.f32 1e-05, %v1272_v45 }
 0xf99   :  { %4165 = vrsqrt.f32 %v1273_v35 }
 0xfa3   :  { %v4166_v46 = vpop.eup %4165 }
 0xfa4   :  { %v1275_v36 = vmul.f32 %v4560_v24, %v4166_v46 }
 0xfa6   :  { %v1281_v40 = vmul.f32 %v1275_v36, %v1261_v39  ;;  %v1279_v42 = vrot.slane %v1275_v36, %v4370_v27 }
 0xfa8   :  { %v1283_v0 = vrot.slane %v1281_v40, 7  ;;  %v1280_v55 = vmul.f32 %v1279_v42, %v1250_v23 }
 0xfaa   :  { %v1285_v43 = vsub.f32 %v4560_v24, %v1283_v0 }
 0xfac   :  { %v1289_v48 = vrot.slane %v1285_v43, %v4374_v31 }
 0xfae   :  { %v1290_v52 = vadd.f32 %v1289_v48, %v1280_v55 }
 0xfb0   :  { %v1291_v49 = vmul.f32 0.01, %v1290_v52 }
 0xfb2   :  { %v1292_v50 = vmax.f32 %v1290_v52, %v1291_v49 }
 0xfb4   :  { %v1298_v51 = vmul.f32 %v1292_v50, %v4384_v41  ;;  %v1293_v53 = vmul.f32 %v1292_v50, %v4381_v38 }
 0xfb6   :  { %v1299_v54 = vsel %vm72_vm1, %v1298_v51, 0.0  ;;  %v1294_v62 = vsel %vm72_vm1, %v1293_v53, 0.0 }
 0xfb7   :  { %1300 = vadd.xlane.f32.xlu0 %v1299_v54  ;;  %1295 = vadd.xlane.f32.xlu1 %v1294_v62 }
0x1044   :  { %v1301_v56 = vpop.xlane.xlu0 %1300  ;;  %v1296_v60 = vpop.xlane.xlu1 %1295 }
0x1045   :  { %v1302_v58 = vadd.f32 %v4619_v57, %v1301_v56  ;;  %v1297_v59 = vadd.f32 %v4619_v57, %v1296_v60 }
0x1047   :  { %v1305_v61 = vmul.f32 0.05, %v1302_v58  ;;  %v1303_v63 = vmul.f32 0.05, %v1297_v59 }
0x1049   :  { %v4624_v1 = vadd.f32 %v1305_v61, %v4584_v28  ;;  %v4627_v3 = vadd.f32 %v1303_v63, %v4587_v29 }
0x104b   :  { %1315 = vperm.xlu1 %4136, %v4624_v1   ;;  %1309 = vperm.xlu0 %4137, %v4627_v3  }
0x10ca   :  { %v1310_v4 = vpop.permute.xlu0 %1309  ;;  %v1316_v6 = vpop.permute.xlu1 %1315 }
0x10cb   :  { %v1312_v23 = vmul.f32 %v1310_v4, %v4340_v17  ;;  %v1318_v7 = vmul.f32 %v1316_v6, %v4343_v18 }
0x10cd   :  { %v1319_v11 = vadd.f32 %v1318_v7, %v1312_v23 }
0x10cf   :  { %v1320_v13 = vsel %vm72_vm1, %v1319_v11, 0.0  ;;  %v1328_v14 = vmul.f32 %v1319_v11, %v1319_v11 }
0x10d0   :  { %v1321_v22 = vrot.slane %v1320_v13, 4 }
0x10d1   :  { %v1329_v28 = vsel %vm72_vm1, %v1328_v14, 0.0 }
0x10d2   :  { %v1322_v16 = vadd.f32 %v1321_v22, %v1320_v13  ;;  %v1330_v29 = vrot.slane %v1329_v28, 4 }
0x10d4   :  { %v1323_v19 = vrot.slane %v1322_v16, 2  ;;  %v1331_v20 = vadd.f32 %v1330_v29, %v1329_v28 }
0x10d6   :  { %v1324_v21 = vadd.f32 %v1323_v19, %v1322_v16  ;;  %v1332_v25 = vrot.slane %v1331_v20, 2 }
0x10d8   :  { %v1325_v26 = vrot.slane %v1324_v21, 1  ;;  %v1333_v30 = vadd.f32 %v1332_v25, %v1331_v20 }
0x10da   :  { %v1326_v37 = vadd.f32 %v1325_v26, %v1324_v21  ;;  %v1334_v15 = vrot.slane %v1333_v30, 1 }
0x10dc   :  { %v1327_v32 = vmul.f32 0.125, %v1326_v37  ;;  %v1335_v39 = vadd.f32 %v1334_v15, %v1333_v30 }
0x10de   :  { %v1336_v12 = vmul.f32 0.125, %v1335_v39  ;;  %v1337_v33 = vmul.f32 %v1327_v32, %v1327_v32 }
0x10e0   :  { %v1338_v34 = vsub.f32 %v1336_v12, %v1337_v33 }
0x10e2   :  { %v1339_v45 = vadd.f32 1e-05, %v1338_v34 }
0x10e4   :  { %4167 = vrsqrt.f32 %v1339_v45 }
0x10ee   :  { %v4168_v35 = vpop.eup %4167 }
0x10ef   :  { %v1341_v46 = vmul.f32 %v4560_v24, %v4168_v35 }
0x10f1   :  { %v1347_v36 = vmul.f32 %v1341_v46, %v1327_v32  ;;  %v1345_v40 = vrot.slane %v1341_v46, %v4350_v44 }
0x10f3   :  { %v1349_v42 = vrot.slane %v1347_v36, 7  ;;  %v1346_v43 = vmul.f32 %v1345_v40, %v1319_v11 }
0x10f5   :  { %v1351_v0 = vsub.f32 %v4560_v24, %v1349_v42 }
0x10f7   :  { %v1355_v55 = vrot.slane %v1351_v0, %v4354_v47 }
0x10f9   :  { %v1356_v48 = vadd.f32 %v1355_v55, %v1346_v43 }
0x10fb   :  { %v1357_v52 = vmul.f32 0.01, %v1356_v48 }
0x10fd   :  { %v1358_v49 = vmax.f32 %v1356_v48, %v1357_v52 }
0x10ff   :  { %3865 = vmatmul.mubr.msk.f32.vlgmr.msra.gmra.mrb[6].mxu1 %vm72_vm1, %v1358_v49 }
0x1100   :  { %4055 = vmatpush3.bf16.msra.mxu1 %v4312_v5  ;;  %3886 = vmatprep.mubr.msk.f32.mxu1 %vm4261_vm0, %v4262_v10 }
0x1101   :  { %4056 = vmatprep.subr.bf16.mxu1 %v4260_v8 }
0x1104   :  { %4058 = vmatpush3.bf16.msra.mxu1 %v4316_v9 }
0x1105   :  { %4065 = vmatprep.subr.bf16.mxu1 %v4260_v8 }
0x11d2   :  { %v1428_v50 = vpop.f32.mrb[6].mxu1 }
0x11d3   :  { %v1432_v51 = vsel %vm72_vm1, %v1428_v50, 0.0  ;;  %v1440_v53 = vmul.f32 %v1428_v50, %v1428_v50  ;;  %v3866_v54 = vpop.f32.mrb[7].mxu1 }
0x11d4   :  { %v1433_v62 = vrot.slane %v1432_v51, 4 }
0x11d5   :  { %v1441_v56 = vsel %vm72_vm1, %v1440_v53, 0.0 }
0x11d6   :  { %v1434_v60 = vadd.f32 %v1433_v62, %v1432_v51  ;;  %v1442_v58 = vrot.slane %v1441_v56, 4 }
0x11d8   :  { %v1435_v59 = vrot.slane %v1434_v60, 2  ;;  %v1443_v61 = vadd.f32 %v1442_v58, %v1441_v56 }
0x11da   :  { %v1436_v63 = vadd.f32 %v1435_v59, %v1434_v60  ;;  %v1444_v4 = vrot.slane %v1443_v61, 2 }
0x11dc   :  { %v1437_v6 = vrot.slane %v1436_v63, 1  ;;  %v1445_v23 = vadd.f32 %v1444_v4, %v1443_v61 }
0x11de   :  { %v1438_v7 = vadd.f32 %v1437_v6, %v1436_v63  ;;  %v1446_v11 = vrot.slane %v1445_v23, 1 }
0x11e0   :  { %v1439_v13 = vmul.f32 0.125, %v1438_v7  ;;  %v1447_v14 = vadd.f32 %v1446_v11, %v1445_v23 }
0x11e2   :  { %v1448_v22 = vmul.f32 0.125, %v1447_v14  ;;  %v1449_v28 = vmul.f32 %v1439_v13, %v1439_v13 }
0x11e4   :  { %v1450_v16 = vsub.f32 %v1448_v22, %v1449_v28 }
0x11e6   :  { %v1451_v29 = vadd.f32 1e-05, %v1450_v16 }
0x11e8   :  { %4169 = vrsqrt.f32 %v1451_v29 }
0x11f2   :  { %v4170_v19 = vpop.eup %4169 }
0x11f3   :  { %v1453_v20 = vmul.f32 %v4560_v24, %v4170_v19 }
0x11f5   :  { %v1459_v21 = vmul.f32 %v1453_v20, %v1439_v13  ;;  %v1457_v25 = vrot.slane %v1453_v20, %v4370_v27 }
0x11f7   :  { %v1461_v26 = vrot.slane %v1459_v21, 7  ;;  %v1458_v37 = vmul.f32 %v1457_v25, %v1428_v50 }
0x11f9   :  { %v1463_v30 = vsub.f32 %v4560_v24, %v1461_v26 }
0x11fb   :  { %v1467_v15 = vrot.slane %v1463_v30, %v4374_v31 }
0x11fd   :  { %v1468_v32 = vadd.f32 %v1467_v15, %v1458_v37 }
0x11ff   :  { %v1469_v39 = vmul.f32 0.01, %v1468_v32 }
0x1201   :  { %v1470_v12 = vmax.f32 %v1468_v32, %v1469_v39 }
0x1203   :  { %v1476_v33 = vmul.f32 %v1470_v12, %v4384_v41  ;;  %v1471_v34 = vmul.f32 %v1470_v12, %v4381_v38 }
0x1205   :  { %v1477_v45 = vsel %vm72_vm1, %v1476_v33, 0.0  ;;  %v1472_v35 = vsel %vm72_vm1, %v1471_v34, 0.0 }
0x1206   :  { %1478 = vadd.xlane.f32.xlu0 %v1477_v45  ;;  %1473 = vadd.xlane.f32.xlu1 %v1472_v35 }
0x1293   :  { %v1479_v46 = vpop.xlane.xlu0 %1478  ;;  %v1474_v36 = vpop.xlane.xlu1 %1473 }
0x1294   :  { %v1480_v40 = vadd.f32 %v4619_v57, %v1479_v46  ;;  %v1475_v42 = vadd.f32 %v4619_v57, %v1474_v36 }
0x1296   :  { %v1483_v0 = vmul.f32 0.05, %v1480_v40  ;;  %v1481_v43 = vmul.f32 0.05, %v1475_v42 }
0x1298   :  { %v4659_v55 = vadd.f32 %v1483_v0, %v4624_v1  ;;  %v4662_v48 = vadd.f32 %v1481_v43, %v4627_v3 }
0x129a   :  { %1493 = vperm.xlu1 %4136, %v4659_v55   ;;  %1487 = vperm.xlu0 %4137, %v4662_v48  }
0x1319   :  { %v1488_v52 = vpop.permute.xlu0 %1487  ;;  %v1494_v49 = vpop.permute.xlu1 %1493 }
0x131a   :  { %v1490_v50 = vmul.f32 %v1488_v52, %v4340_v17  ;;  %v1496_v51 = vmul.f32 %v1494_v49, %v4343_v18 }
0x131c   :  { %v1497_v53 = vadd.f32 %v1496_v51, %v1490_v50 }
0x131e   :  { %v1498_v54 = vsel %vm72_vm1, %v1497_v53, 0.0  ;;  %v1506_v62 = vmul.f32 %v1497_v53, %v1497_v53 }
0x131f   :  { %v1499_v56 = vrot.slane %v1498_v54, 4 }
0x1320   :  { %v1507_v1 = vsel %vm72_vm1, %v1506_v62, 0.0 }
0x1321   :  { %v1500_v60 = vadd.f32 %v1499_v56, %v1498_v54  ;;  %v1508_v3 = vrot.slane %v1507_v1, 4 }
0x1323   :  { %v1501_v58 = vrot.slane %v1500_v60, 2  ;;  %v1509_v59 = vadd.f32 %v1508_v3, %v1507_v1 }
0x1325   :  { %v1502_v61 = vadd.f32 %v1501_v58, %v1500_v60  ;;  %v1510_v63 = vrot.slane %v1509_v59, 2 }
0x1327   :  { %v1503_v4 = vrot.slane %v1502_v61, 1  ;;  %v1511_v6 = vadd.f32 %v1510_v63, %v1509_v59 }
0x1329   :  { %v1504_v23 = vadd.f32 %v1503_v4, %v1502_v61  ;;  %v1512_v7 = vrot.slane %v1511_v6, 1 }
0x132b   :  { %v1505_v11 = vmul.f32 0.125, %v1504_v23  ;;  %v1513_v13 = vadd.f32 %v1512_v7, %v1511_v6 }
0x132d   :  { %v1514_v14 = vmul.f32 0.125, %v1513_v13  ;;  %v1515_v22 = vmul.f32 %v1505_v11, %v1505_v11 }
0x132f   :  { %v1516_v28 = vsub.f32 %v1514_v14, %v1515_v22 }
0x1331   :  { %v1517_v16 = vadd.f32 1e-05, %v1516_v28 }
0x1333   :  { %4171 = vrsqrt.f32 %v1517_v16 }
0x133d   :  { %v4172_v29 = vpop.eup %4171 }
0x133e   :  { %v1519_v19 = vmul.f32 %v4560_v24, %v4172_v29 }
0x1340   :  { %v1525_v20 = vmul.f32 %v1519_v19, %v1505_v11  ;;  %v1523_v21 = vrot.slane %v1519_v19, %v4350_v44 }
0x1342   :  { %v1527_v25 = vrot.slane %v1525_v20, 7  ;;  %v1524_v30 = vmul.f32 %v1523_v21, %v1497_v53 }
0x1344   :  { %v1529_v26 = vsub.f32 %v4560_v24, %v1527_v25 }
0x1346   :  { %v1533_v37 = vrot.slane %v1529_v26, %v4354_v47 }
0x1348   :  { %v1534_v15 = vadd.f32 %v1533_v37, %v1524_v30 }
0x134a   :  { %v1535_v32 = vmul.f32 0.01, %v1534_v15 }
0x134c   :  { %v1536_v39 = vmax.f32 %v1534_v15, %v1535_v32 }
0x134e   :  { %3876 = vmatmul.mubr.msk.f32.vlgmr.msra.gmra.mrb[8].mxu0 %vm72_vm1, %v1536_v39 }
0x134f   :  { %4061 = vmatpush3.bf16.msra.mxu0 %v4312_v5  ;;  %3897 = vmatprep.mubr.msk.f32.mxu0 %vm4261_vm0, %v4262_v10 }
0x1350   :  { %4062 = vmatprep.subr.bf16.mxu0 %v4260_v8 }
0x1353   :  { %4064 = vmatpush3.bf16.msra.mxu0 %v4316_v9 }
0x1354   :  { %4071 = vmatprep.subr.bf16.mxu0 %v4260_v8 }
0x1421   :  { %v1606_v12 = vpop.f32.mrb[8].mxu0 }
0x1422   :  { %v1610_v33 = vsel %vm72_vm1, %v1606_v12, 0.0  ;;  %v1618_v34 = vmul.f32 %v1606_v12, %v1606_v12  ;;  %v3877_v45 = vpop.f32.mrb[9].mxu0 }
0x1423   :  { %v1611_v35 = vrot.slane %v1610_v33, 4 }
0x1424   :  { %v1619_v46 = vsel %vm72_vm1, %v1618_v34, 0.0 }
0x1425   :  { %v1612_v36 = vadd.f32 %v1611_v35, %v1610_v33  ;;  %v1620_v40 = vrot.slane %v1619_v46, 4 }
0x1427   :  { %v1613_v42 = vrot.slane %v1612_v36, 2  ;;  %v1621_v0 = vadd.f32 %v1620_v40, %v1619_v46 }
0x1429   :  { %v1614_v43 = vadd.f32 %v1613_v42, %v1612_v36  ;;  %v1622_v52 = vrot.slane %v1621_v0, 2 }
0x142b   :  { %v1615_v49 = vrot.slane %v1614_v43, 1  ;;  %v1623_v50 = vadd.f32 %v1622_v52, %v1621_v0 }
0x142d   :  { %v1616_v51 = vadd.f32 %v1615_v49, %v1614_v43  ;;  %v1624_v53 = vrot.slane %v1623_v50, 1 }
0x142f   :  { %v1617_v54 = vmul.f32 0.125, %v1616_v51  ;;  %v1625_v62 = vadd.f32 %v1624_v53, %v1623_v50 }
0x1431   :  { %v1626_v56 = vmul.f32 0.125, %v1625_v62  ;;  %v1627_v1 = vmul.f32 %v1617_v54, %v1617_v54 }
0x1433   :  { %v1628_v60 = vsub.f32 %v1626_v56, %v1627_v1 }
0x1435   :  { %v1629_v3 = vadd.f32 1e-05, %v1628_v60 }
0x1437   :  { %4173 = vrsqrt.f32 %v1629_v3 }
0x1441   :  { %v4174_v58 = vpop.eup %4173 }
0x1442   :  { %v1631_v59 = vmul.f32 %v4560_v24, %v4174_v58 }
0x1444   :  { %v1637_v61 = vmul.f32 %v1631_v59, %v1617_v54  ;;  %v1635_v63 = vrot.slane %v1631_v59, %v4370_v27 }
0x1446   :  { %v1639_v4 = vrot.slane %v1637_v61, 7  ;;  %v1636_v23 = vmul.f32 %v1635_v63, %v1606_v12 }
0x1448   :  { %v1641_v6 = vsub.f32 %v4560_v24, %v1639_v4 }
0x144a   :  { %v1645_v7 = vrot.slane %v1641_v6, %v4374_v31 }
0x144c   :  { %v1646_v11 = vadd.f32 %v1645_v7, %v1636_v23 }
0x144e   :  { %v1647_v13 = vmul.f32 0.01, %v1646_v11 }
0x1450   :  { %v1648_v14 = vmax.f32 %v1646_v11, %v1647_v13 }
0x1452   :  { %v1654_v22 = vmul.f32 %v1648_v14, %v4384_v41  ;;  %v1649_v28 = vmul.f32 %v1648_v14, %v4381_v38 }
0x1454   :  { %v1655_v16 = vsel %vm72_vm1, %v1654_v22, 0.0  ;;  %v1650_v29 = vsel %vm72_vm1, %v1649_v28, 0.0 }
0x1455   :  { %1656 = vadd.xlane.f32.xlu0 %v1655_v16  ;;  %1651 = vadd.xlane.f32.xlu1 %v1650_v29 }
0x14e2   :  { %v1657_v19 = vpop.xlane.xlu0 %1656  ;;  %v1652_v20 = vpop.xlane.xlu1 %1651 }
0x14e3   :  { %v1658_v21 = vadd.f32 %v4619_v57, %v1657_v19  ;;  %v1653_v25 = vadd.f32 %v4619_v57, %v1652_v20 }
0x14e5   :  { %v1661_v26 = vmul.f32 0.05, %v1658_v21  ;;  %v1659_v30 = vmul.f32 0.05, %v1653_v25 }
0x14e7   :  { %v4694_v37 = vadd.f32 %v1661_v26, %v4659_v55  ;;  %v4697_v15 = vadd.f32 %v1659_v30, %v4662_v48 }
0x14e9   :  { %1671 = vperm.xlu1 %4136, %v4694_v37   ;;  %1665 = vperm.xlu0 %4137, %v4697_v15  }
0x1568   :  { %v1666_v32 = vpop.permute.xlu0 %1665  ;;  %v1672_v39 = vpop.permute.xlu1 %1671 }
0x1569   :  { %v1668_v12 = vmul.f32 %v1666_v32, %v4340_v17  ;;  %v1674_v33 = vmul.f32 %v1672_v39, %v4343_v18 }
0x156b   :  { %v1675_v34 = vadd.f32 %v1674_v33, %v1668_v12 }
0x156d   :  { %v1676_v45 = vsel %vm72_vm1, %v1675_v34, 0.0  ;;  %v1684_v35 = vmul.f32 %v1675_v34, %v1675_v34 }
0x156e   :  { %v1677_v46 = vrot.slane %v1676_v45, 4 }
0x156f   :  { %v1685_v55 = vsel %vm72_vm1, %v1684_v35, 0.0 }
0x1570   :  { %v1678_v36 = vadd.f32 %v1677_v46, %v1676_v45  ;;  %v1686_v48 = vrot.slane %v1685_v55, 4 }
0x1572   :  { %v1679_v40 = vrot.slane %v1678_v36, 2  ;;  %v1687_v42 = vadd.f32 %v1686_v48, %v1685_v55 }
0x1574   :  { %v1680_v0 = vadd.f32 %v1679_v40, %v1678_v36  ;;  %v1688_v43 = vrot.slane %v1687_v42, 2 }
0x1576   :  { %v1681_v52 = vrot.slane %v1680_v0, 1  ;;  %v1689_v49 = vadd.f32 %v1688_v43, %v1687_v42 }
0x1578   :  { %v1682_v50 = vadd.f32 %v1681_v52, %v1680_v0  ;;  %v1690_v51 = vrot.slane %v1689_v49, 1 }
0x157a   :  { %v1683_v53 = vmul.f32 0.125, %v1682_v50  ;;  %v1691_v54 = vadd.f32 %v1690_v51, %v1689_v49 }
0x157c   :  { %v1692_v62 = vmul.f32 0.125, %v1691_v54  ;;  %v1693_v56 = vmul.f32 %v1683_v53, %v1683_v53 }
0x157e   :  { %v1694_v1 = vsub.f32 %v1692_v62, %v1693_v56 }
0x1580   :  { %v1695_v60 = vadd.f32 1e-05, %v1694_v1 }
0x1582   :  { %4175 = vrsqrt.f32 %v1695_v60 }
0x158c   :  { %v4176_v3 = vpop.eup %4175 }
0x158d   :  { %v1697_v58 = vmul.f32 %v4560_v24, %v4176_v3 }
0x158f   :  { %v1703_v59 = vmul.f32 %v1697_v58, %v1683_v53  ;;  %v1701_v61 = vrot.slane %v1697_v58, %v4350_v44 }
0x1591   :  { %v1705_v63 = vrot.slane %v1703_v59, 7  ;;  %v1702_v6 = vmul.f32 %v1701_v61, %v1675_v34 }
0x1593   :  { %v1707_v4 = vsub.f32 %v4560_v24, %v1705_v63 }
0x1595   :  { %v1711_v23 = vrot.slane %v1707_v4, %v4354_v47 }
0x1597   :  { %v1712_v7 = vadd.f32 %v1711_v23, %v1702_v6 }
0x1599   :  { %v1713_v11 = vmul.f32 0.01, %v1712_v7 }
0x159b   :  { %v1714_v13 = vmax.f32 %v1712_v7, %v1713_v11 }
0x159d   :  { %3887 = vmatmul.mubr.msk.f32.vlgmr.msra.gmra.mrb[8].mxu1 %vm72_vm1, %v1714_v13 }
0x159e   :  { %4067 = vmatpush3.bf16.msra.mxu1 %v4312_v5  ;;  %3908 = vmatprep.mubr.msk.f32.mxu1 %vm4261_vm0, %v4262_v10 }
0x159f   :  { %4068 = vmatprep.subr.bf16.mxu1 %v4260_v8 }
0x15a2   :  { %4070 = vmatpush3.bf16.msra.mxu1 %v4316_v9 }
0x15a3   :  { %4077 = vmatprep.subr.bf16.mxu1 %v4260_v8 }
0x1670   :  { %v1784_v14 = vpop.f32.mrb[8].mxu1 }
0x1671   :  { %v1788_v22 = vsel %vm72_vm1, %v1784_v14, 0.0  ;;  %v1796_v28 = vmul.f32 %v1784_v14, %v1784_v14  ;;  %v3888_v16 = vpop.f32.mrb[9].mxu1 }
0x1672   :  { %v1789_v29 = vrot.slane %v1788_v22, 4 }
0x1673   :  { %v1797_v19 = vsel %vm72_vm1, %v1796_v28, 0.0 }
0x1674   :  { %v1790_v20 = vadd.f32 %v1789_v29, %v1788_v22  ;;  %v1798_v21 = vrot.slane %v1797_v19, 4 }
0x1676   :  { %v1791_v25 = vrot.slane %v1790_v20, 2  ;;  %v1799_v26 = vadd.f32 %v1798_v21, %v1797_v19 }
0x1678   :  { %v1792_v30 = vadd.f32 %v1791_v25, %v1790_v20  ;;  %v1800_v32 = vrot.slane %v1799_v26, 2 }
0x167a   :  { %v1793_v39 = vrot.slane %v1792_v30, 1  ;;  %v1801_v12 = vadd.f32 %v1800_v32, %v1799_v26 }
0x167c   :  { %v1794_v33 = vadd.f32 %v1793_v39, %v1792_v30  ;;  %v1802_v34 = vrot.slane %v1801_v12, 1 }
0x167e   :  { %v1795_v45 = vmul.f32 0.125, %v1794_v33  ;;  %v1803_v35 = vadd.f32 %v1802_v34, %v1801_v12 }
0x1680   :  { %v1804_v46 = vmul.f32 0.125, %v1803_v35  ;;  %v1805_v55 = vmul.f32 %v1795_v45, %v1795_v45 }
0x1682   :  { %v1806_v36 = vsub.f32 %v1804_v46, %v1805_v55 }
0x1684   :  { %v1807_v48 = vadd.f32 1e-05, %v1806_v36 }
0x1686   :  { %4177 = vrsqrt.f32 %v1807_v48 }
0x1690   :  { %v4178_v40 = vpop.eup %4177 }
0x1691   :  { %v1809_v42 = vmul.f32 %v4560_v24, %v4178_v40 }
0x1693   :  { %v1815_v0 = vmul.f32 %v1809_v42, %v1795_v45  ;;  %v1813_v43 = vrot.slane %v1809_v42, %v4370_v27 }
0x1695   :  { %v1817_v52 = vrot.slane %v1815_v0, 7  ;;  %v1814_v50 = vmul.f32 %v1813_v43, %v1784_v14 }
0x1697   :  { %v1819_v49 = vsub.f32 %v4560_v24, %v1817_v52 }
0x1699   :  { %v1823_v51 = vrot.slane %v1819_v49, %v4374_v31 }
0x169b   :  { %v1824_v53 = vadd.f32 %v1823_v51, %v1814_v50 }
0x169d   :  { %v1825_v54 = vmul.f32 0.01, %v1824_v53 }
0x169f   :  { %v1826_v62 = vmax.f32 %v1824_v53, %v1825_v54 }
0x16a1   :  { %v1832_v56 = vmul.f32 %v1826_v62, %v4384_v41  ;;  %v1827_v1 = vmul.f32 %v1826_v62, %v4381_v38 }
0x16a3   :  { %v1833_v60 = vsel %vm72_vm1, %v1832_v56, 0.0  ;;  %v1828_v3 = vsel %vm72_vm1, %v1827_v1, 0.0 }
0x16a4   :  { %1834 = vadd.xlane.f32.xlu0 %v1833_v60  ;;  %1829 = vadd.xlane.f32.xlu1 %v1828_v3 }
0x1731   :  { %v1835_v58 = vpop.xlane.xlu0 %1834  ;;  %v1830_v59 = vpop.xlane.xlu1 %1829 }
0x1732   :  { %v1836_v61 = vadd.f32 %v4619_v57, %v1835_v58  ;;  %v1831_v63 = vadd.f32 %v4619_v57, %v1830_v59 }
0x1734   :  { %v1839_v4 = vmul.f32 0.05, %v1836_v61  ;;  %v1837_v6 = vmul.f32 0.05, %v1831_v63 }
0x1736   :  { %v4729_v23 = vadd.f32 %v1839_v4, %v4694_v37  ;;  %v4732_v7 = vadd.f32 %v1837_v6, %v4697_v15 }
0x1738   :  { %1849 = vperm.xlu1 %4136, %v4729_v23   ;;  %1843 = vperm.xlu0 %4137, %v4732_v7  }
0x17b7   :  { %v1844_v11 = vpop.permute.xlu0 %1843  ;;  %v1850_v13 = vpop.permute.xlu1 %1849 }
0x17b8   :  { %v1846_v14 = vmul.f32 %v1844_v11, %v4340_v17  ;;  %v1852_v22 = vmul.f32 %v1850_v13, %v4343_v18 }
0x17ba   :  { %v1853_v28 = vadd.f32 %v1852_v22, %v1846_v14 }
0x17bc   :  { %v1854_v16 = vsel %vm72_vm1, %v1853_v28, 0.0  ;;  %v1862_v29 = vmul.f32 %v1853_v28, %v1853_v28 }
0x17bd   :  { %v1855_v19 = vrot.slane %v1854_v16, 4 }
0x17be   :  { %v1863_v37 = vsel %vm72_vm1, %v1862_v29, 0.0 }
0x17bf   :  { %v1856_v20 = vadd.f32 %v1855_v19, %v1854_v16  ;;  %v1864_v15 = vrot.slane %v1863_v37, 4 }
0x17c1   :  { %v1857_v21 = vrot.slane %v1856_v20, 2  ;;  %v1865_v25 = vadd.f32 %v1864_v15, %v1863_v37 }
0x17c3   :  { %v1858_v26 = vadd.f32 %v1857_v21, %v1856_v20  ;;  %v1866_v30 = vrot.slane %v1865_v25, 2 }
0x17c5   :  { %v1859_v32 = vrot.slane %v1858_v26, 1  ;;  %v1867_v39 = vadd.f32 %v1866_v30, %v1865_v25 }
0x17c7   :  { %v1860_v12 = vadd.f32 %v1859_v32, %v1858_v26  ;;  %v1868_v33 = vrot.slane %v1867_v39, 1 }
0x17c9   :  { %v1861_v34 = vmul.f32 0.125, %v1860_v12  ;;  %v1869_v45 = vadd.f32 %v1868_v33, %v1867_v39 }
0x17cb   :  { %v1870_v35 = vmul.f32 0.125, %v1869_v45  ;;  %v1871_v46 = vmul.f32 %v1861_v34, %v1861_v34 }
0x17cd   :  { %v1872_v55 = vsub.f32 %v1870_v35, %v1871_v46 }
0x17cf   :  { %v1873_v36 = vadd.f32 1e-05, %v1872_v55 }
0x17d1   :  { %4179 = vrsqrt.f32 %v1873_v36 }
0x17db   :  { %v4180_v48 = vpop.eup %4179 }
0x17dc   :  { %v1875_v40 = vmul.f32 %v4560_v24, %v4180_v48 }
0x17de   :  { %v1881_v42 = vmul.f32 %v1875_v40, %v1861_v34  ;;  %v1879_v0 = vrot.slane %v1875_v40, %v4350_v44 }
0x17e0   :  { %v1883_v43 = vrot.slane %v1881_v42, 7  ;;  %v1880_v49 = vmul.f32 %v1879_v0, %v1853_v28 }
0x17e2   :  { %v1885_v52 = vsub.f32 %v4560_v24, %v1883_v43 }
0x17e4   :  { %v1889_v50 = vrot.slane %v1885_v52, %v4354_v47 }
0x17e6   :  { %v1890_v51 = vadd.f32 %v1889_v50, %v1880_v49 }
0x17e8   :  { %v1891_v53 = vmul.f32 0.01, %v1890_v51 }
0x17ea   :  { %v1892_v54 = vmax.f32 %v1890_v51, %v1891_v53 }
0x17ec   :  { %3898 = vmatmul.mubr.msk.f32.vlgmr.msra.gmra.mrb[10].mxu0 %vm72_vm1, %v1892_v54 }
0x17ed   :  { %4073 = vmatpush3.bf16.msra.mxu0 %v4312_v5  ;;  %3919 = vmatprep.mubr.msk.f32.mxu0 %vm4261_vm0, %v4262_v10 }
0x17ee   :  { %4074 = vmatprep.subr.bf16.mxu0 %v4260_v8 }
0x17f1   :  { %4076 = vmatpush3.bf16.msra.mxu0 %v4316_v9 }
0x17f2   :  { %4083 = vmatprep.subr.bf16.mxu0 %v4260_v8 }
0x18bf   :  { %v1962_v62 = vpop.f32.mrb[10].mxu0 }
0x18c0   :  { %v1966_v56 = vsel %vm72_vm1, %v1962_v62, 0.0  ;;  %v1974_v1 = vmul.f32 %v1962_v62, %v1962_v62  ;;  %v3899_v60 = vpop.f32.mrb[11].mxu0 }
0x18c1   :  { %v1967_v3 = vrot.slane %v1966_v56, 4 }
0x18c2   :  { %v1975_v58 = vsel %vm72_vm1, %v1974_v1, 0.0 }
0x18c3   :  { %v1968_v59 = vadd.f32 %v1967_v3, %v1966_v56  ;;  %v1976_v61 = vrot.slane %v1975_v58, 4 }
0x18c5   :  { %v1969_v63 = vrot.slane %v1968_v59, 2  ;;  %v1977_v4 = vadd.f32 %v1976_v61, %v1975_v58 }
0x18c7   :  { %v1970_v6 = vadd.f32 %v1969_v63, %v1968_v59  ;;  %v1978_v11 = vrot.slane %v1977_v4, 2 }
0x18c9   :  { %v1971_v13 = vrot.slane %v1970_v6, 1  ;;  %v1979_v14 = vadd.f32 %v1978_v11, %v1977_v4 }
0x18cb   :  { %v1972_v22 = vadd.f32 %v1971_v13, %v1970_v6  ;;  %v1980_v28 = vrot.slane %v1979_v14, 1 }
0x18cd   :  { %v1973_v16 = vmul.f32 0.125, %v1972_v22  ;;  %v1981_v29 = vadd.f32 %v1980_v28, %v1979_v14 }
0x18cf   :  { %v1982_v19 = vmul.f32 0.125, %v1981_v29  ;;  %v1983_v37 = vmul.f32 %v1973_v16, %v1973_v16 }
0x18d1   :  { %v1984_v20 = vsub.f32 %v1982_v19, %v1983_v37 }
0x18d3   :  { %v1985_v15 = vadd.f32 1e-05, %v1984_v20 }
0x18d5   :  { %4181 = vrsqrt.f32 %v1985_v15  ;;  %v4778_v15 = vld [vmem:[%s5094_s1] sm:$0xff] }
0x18df   :  { %v4182_v21 = vpop.eup %4181 }
0x18e0   :  { %v1987_v25 = vmul.f32 %v4560_v24, %v4182_v21 }
0x18e2   :  { %v1993_v26 = vmul.f32 %v1987_v25, %v1973_v16  ;;  %v1991_v30 = vrot.slane %v1987_v25, %v4370_v27 }
0x18e4   :  { %v1995_v32 = vrot.slane %v1993_v26, 7  ;;  %v1992_v12 = vmul.f32 %v1991_v30, %v1962_v62 }
0x18e6   :  { %v1997_v39 = vsub.f32 %v4560_v24, %v1995_v32 }
0x18e8   :  { %v2001_v33 = vrot.slane %v1997_v39, %v4374_v31 }
0x18ea   :  { %v2002_v34 = vadd.f32 %v2001_v33, %v1992_v12 }
0x18ec   :  { %v2003_v45 = vmul.f32 0.01, %v2002_v34 }
0x18ee   :  { %v2004_v35 = vmax.f32 %v2002_v34, %v2003_v45 }
0x18f0   :  { %v2010_v46 = vmul.f32 %v2004_v35, %v4384_v41  ;;  %v2005_v55 = vmul.f32 %v2004_v35, %v4381_v38 }
0x18f2   :  { %v2011_v36 = vsel %vm72_vm1, %v2010_v46, 0.0  ;;  %v2006_v48 = vsel %vm72_vm1, %v2005_v55, 0.0 }
0x18f3   :  { %2012 = vadd.xlane.f32.xlu0 %v2011_v36  ;;  %2007 = vadd.xlane.f32.xlu1 %v2006_v48 }
0x1980   :  { %v2013_v40 = vpop.xlane.xlu0 %2012  ;;  %v2008_v42 = vpop.xlane.xlu1 %2007 }
0x1981   :  { %v2014_v24 = vadd.f32 %v4619_v57, %v2013_v40  ;;  %v2009_v0 = vadd.f32 %v4619_v57, %v2008_v42 }
0x1983   :  { %v2017_v43 = vmul.f32 0.05, %v2014_v24  ;;  %v2015_v52 = vmul.f32 0.05, %v2009_v0 }
0x1985   :  { %v4764_v49 = vadd.f32 %v2017_v43, %v4729_v23  ;;  %v4767_v50 = vadd.f32 %v2015_v52, %v4732_v7 }
0x1987   :  { %2027 = vperm.xlu1 %4136, %v4764_v49   ;;  %2021 = vperm.xlu0 %4137, %v4767_v50  }
0x1a06   :  { %v2022_v51 = vpop.permute.xlu0 %2021  ;;  %v2028_v53 = vpop.permute.xlu1 %2027 }
0x1a07   :  { %v2024_v54 = vmul.f32 %v2022_v51, %v4340_v17  ;;  %v2030_v62 = vmul.f32 %v2028_v53, %v4343_v18 }
0x1a09   :  { %v2031_v56 = vadd.f32 %v2030_v62, %v2024_v54 }
0x1a0b   :  { %v2032_v1 = vsel %vm72_vm1, %v2031_v56, 0.0  ;;  %v2040_v60 = vmul.f32 %v2031_v56, %v2031_v56 }
0x1a0c   :  { %v2033_v3 = vrot.slane %v2032_v1, 4 }
0x1a0d   :  { %v2041_v23 = vsel %vm72_vm1, %v2040_v60, 0.0 }
0x1a0e   :  { %v2034_v58 = vadd.f32 %v2033_v3, %v2032_v1  ;;  %v2042_v7 = vrot.slane %v2041_v23, 4 }
0x1a10   :  { %v2035_v59 = vrot.slane %v2034_v58, 2  ;;  %v2043_v61 = vadd.f32 %v2042_v7, %v2041_v23 }
0x1a12   :  { %v2036_v63 = vadd.f32 %v2035_v59, %v2034_v58  ;;  %v2044_v4 = vrot.slane %v2043_v61, 2 }
0x1a14   :  { %v2037_v6 = vrot.slane %v2036_v63, 1  ;;  %v2045_v11 = vadd.f32 %v2044_v4, %v2043_v61 }
0x1a16   :  { %v2038_v13 = vadd.f32 %v2037_v6, %v2036_v63  ;;  %v2046_v14 = vrot.slane %v2045_v11, 1 }
0x1a18   :  { %v2039_v22 = vmul.f32 0.125, %v2038_v13  ;;  %v2047_v28 = vadd.f32 %v2046_v14, %v2045_v11 }
0x1a1a   :  { %v2048_v16 = vmul.f32 0.125, %v2047_v28  ;;  %v2049_v29 = vmul.f32 %v2039_v22, %v2039_v22 }
0x1a1c   :  { %v2050_v19 = vsub.f32 %v2048_v16, %v2049_v29 }
0x1a1e   :  { %v2051_v37 = vadd.f32 1e-05, %v2050_v19 }
0x1a20   :  { %4183 = vrsqrt.f32 %v2051_v37 }
0x1a2a   :  { %v4184_v20 = vpop.eup %4183 }
0x1a2b   :  { %v2053_v21 = vmul.f32 %v4778_v15, %v4184_v20 }
0x1a2d   :  { %v2059_v25 = vmul.f32 %v2053_v21, %v2039_v22  ;;  %v2057_v26 = vrot.slane %v2053_v21, %v4350_v44 }
0x1a2f   :  { %v2061_v30 = vrot.slane %v2059_v25, 7  ;;  %v2058_v39 = vmul.f32 %v2057_v26, %v2031_v56 }
0x1a31   :  { %v2063_v32 = vsub.f32 %v4778_v15, %v2061_v30 }
0x1a33   :  { %v2067_v12 = vrot.slane %v2063_v32, %v4354_v47 }
0x1a35   :  { %v2068_v33 = vadd.f32 %v2067_v12, %v2058_v39 }
0x1a37   :  { %v2069_v34 = vmul.f32 0.01, %v2068_v33 }
0x1a39   :  { %v2070_v45 = vmax.f32 %v2068_v33, %v2069_v34 }
0x1a3b   :  { %3909 = vmatmul.mubr.msk.f32.vlgmr.msra.gmra.mrb[10].mxu1 %vm72_vm1, %v2070_v45 }
0x1a3c   :  { %4079 = vmatpush3.bf16.msra.mxu1 %v4312_v5  ;;  %3930 = vmatprep.mubr.msk.f32.mxu1 %vm4261_vm0, %v4262_v10 }
0x1a3d   :  { %4080 = vmatprep.subr.bf16.mxu1 %v4260_v8 }
0x1a40   :  { %4082 = vmatpush3.bf16.msra.mxu1 %v4316_v9 }
0x1a41   :  { %4089 = vmatprep.subr.bf16.mxu1 %v4260_v8 }
0x1b0e   :  { %v2140_v35 = vpop.f32.mrb[10].mxu1 }
0x1b0f   :  { %v2144_v46 = vsel %vm72_vm1, %v2140_v35, 0.0  ;;  %v2152_v55 = vmul.f32 %v2140_v35, %v2140_v35  ;;  %v3910_v36 = vpop.f32.mrb[11].mxu1 }
0x1b10   :  { %v2145_v48 = vrot.slane %v2144_v46, 4 }
0x1b11   :  { %v2153_v40 = vsel %vm72_vm1, %v2152_v55, 0.0 }
0x1b12   :  { %v2146_v42 = vadd.f32 %v2145_v48, %v2144_v46  ;;  %v2154_v24 = vrot.slane %v2153_v40, 4 }
0x1b14   :  { %v2147_v0 = vrot.slane %v2146_v42, 2  ;;  %v2155_v43 = vadd.f32 %v2154_v24, %v2153_v40 }
0x1b16   :  { %v2148_v52 = vadd.f32 %v2147_v0, %v2146_v42  ;;  %v2156_v51 = vrot.slane %v2155_v43, 2 }
0x1b18   :  { %v2149_v53 = vrot.slane %v2148_v52, 1  ;;  %v2157_v54 = vadd.f32 %v2156_v51, %v2155_v43 }
0x1b1a   :  { %v2150_v62 = vadd.f32 %v2149_v53, %v2148_v52  ;;  %v2158_v56 = vrot.slane %v2157_v54, 1 }
0x1b1c   :  { %v2151_v1 = vmul.f32 0.125, %v2150_v62  ;;  %v2159_v60 = vadd.f32 %v2158_v56, %v2157_v54 }
0x1b1e   :  { %v2160_v3 = vmul.f32 0.125, %v2159_v60  ;;  %v2161_v23 = vmul.f32 %v2151_v1, %v2151_v1 }
0x1b20   :  { %v2162_v58 = vsub.f32 %v2160_v3, %v2161_v23 }
0x1b22   :  { %v2163_v7 = vadd.f32 1e-05, %v2162_v58 }
0x1b24   :  { %4185 = vrsqrt.f32 %v2163_v7 }
0x1b2e   :  { %v4186_v59 = vpop.eup %4185 }
0x1b2f   :  { %v2165_v61 = vmul.f32 %v4778_v15, %v4186_v59 }
0x1b31   :  { %v2171_v63 = vmul.f32 %v2165_v61, %v2151_v1  ;;  %v2169_v4 = vrot.slane %v2165_v61, %v4370_v27 }
0x1b33   :  { %v2173_v6 = vrot.slane %v2171_v63, 7  ;;  %v2170_v13 = vmul.f32 %v2169_v4, %v2140_v35 }
0x1b35   :  { %v2175_v11 = vsub.f32 %v4778_v15, %v2173_v6 }
0x1b37   :  { %v2179_v14 = vrot.slane %v2175_v11, %v4374_v31 }
0x1b39   :  { %v2180_v22 = vadd.f32 %v2179_v14, %v2170_v13 }
0x1b3b   :  { %v2181_v28 = vmul.f32 0.01, %v2180_v22 }
0x1b3d   :  { %v2182_v16 = vmax.f32 %v2180_v22, %v2181_v28 }
0x1b3f   :  { %v2188_v29 = vmul.f32 %v2182_v16, %v4384_v41  ;;  %v2183_v19 = vmul.f32 %v2182_v16, %v4381_v38 }
0x1b41   :  { %v2189_v37 = vsel %vm72_vm1, %v2188_v29, 0.0  ;;  %v2184_v20 = vsel %vm72_vm1, %v2183_v19, 0.0 }
0x1b42   :  { %2190 = vadd.xlane.f32.xlu0 %v2189_v37  ;;  %2185 = vadd.xlane.f32.xlu1 %v2184_v20 }
0x1bcf   :  { %v2191_v21 = vpop.xlane.xlu0 %2190  ;;  %v2186_v25 = vpop.xlane.xlu1 %2185 }
0x1bd0   :  { %v2192_v26 = vadd.f32 %v4619_v57, %v2191_v21  ;;  %v2187_v30 = vadd.f32 %v4619_v57, %v2186_v25 }
0x1bd2   :  { %v2195_v32 = vmul.f32 0.05, %v2192_v26  ;;  %v2193_v39 = vmul.f32 0.05, %v2187_v30 }
0x1bd4   :  { %v4804_v12 = vadd.f32 %v2195_v32, %v4764_v49  ;;  %v4807_v33 = vadd.f32 %v2193_v39, %v4767_v50 }
0x1bd6   :  { %2205 = vperm.xlu1 %4136, %v4804_v12   ;;  %2199 = vperm.xlu0 %4137, %v4807_v33  }
0x1c55   :  { %v2200_v34 = vpop.permute.xlu0 %2199  ;;  %v2206_v45 = vpop.permute.xlu1 %2205 }
0x1c56   :  { %v2202_v35 = vmul.f32 %v2200_v34, %v4340_v17  ;;  %v2208_v46 = vmul.f32 %v2206_v45, %v4343_v18 }
0x1c58   :  { %v2209_v55 = vadd.f32 %v2208_v46, %v2202_v35 }
0x1c5a   :  { %v2210_v57 = vsel %vm72_vm1, %v2209_v55, 0.0  ;;  %v2218_v36 = vmul.f32 %v2209_v55, %v2209_v55 }
0x1c5b   :  { %v2211_v48 = vrot.slane %v2210_v57, 4 }
0x1c5c   :  { %v2219_v49 = vsel %vm72_vm1, %v2218_v36, 0.0 }
0x1c5d   :  { %v2212_v40 = vadd.f32 %v2211_v48, %v2210_v57  ;;  %v2220_v50 = vrot.slane %v2219_v49, 4 }
0x1c5f   :  { %v2213_v42 = vrot.slane %v2212_v40, 2  ;;  %v2221_v24 = vadd.f32 %v2220_v50, %v2219_v49 }
0x1c61   :  { %v2214_v0 = vadd.f32 %v2213_v42, %v2212_v40  ;;  %v2222_v43 = vrot.slane %v2221_v24, 2 }
0x1c63   :  { %v2215_v52 = vrot.slane %v2214_v0, 1  ;;  %v2223_v51 = vadd.f32 %v2222_v43, %v2221_v24 }
0x1c65   :  { %v2216_v53 = vadd.f32 %v2215_v52, %v2214_v0  ;;  %v2224_v54 = vrot.slane %v2223_v51, 1 }
0x1c67   :  { %v2217_v62 = vmul.f32 0.125, %v2216_v53  ;;  %v2225_v56 = vadd.f32 %v2224_v54, %v2223_v51 }
0x1c69   :  { %v2226_v1 = vmul.f32 0.125, %v2225_v56  ;;  %v2227_v60 = vmul.f32 %v2217_v62, %v2217_v62 }
0x1c6b   :  { %v2228_v3 = vsub.f32 %v2226_v1, %v2227_v60 }
0x1c6d   :  { %v2229_v23 = vadd.f32 1e-05, %v2228_v3 }
0x1c6f   :  { %4187 = vrsqrt.f32 %v2229_v23 }
0x1c79   :  { %v4188_v58 = vpop.eup %4187 }
0x1c7a   :  { %v2231_v7 = vmul.f32 %v4778_v15, %v4188_v58 }
0x1c7c   :  { %v2237_v59 = vmul.f32 %v2231_v7, %v2217_v62  ;;  %v2235_v61 = vrot.slane %v2231_v7, %v4350_v44 }
0x1c7e   :  { %v2239_v63 = vrot.slane %v2237_v59, 7  ;;  %v2236_v6 = vmul.f32 %v2235_v61, %v2209_v55  ;;  %v4839_v59 = vld [vmem:[%s5096_s3] ss:$0 sm:$0xff] }
0x1c80   :  { %v2241_v4 = vsub.f32 %v4778_v15, %v2239_v63 }
0x1c82   :  { %v2245_v11 = vrot.slane %v2241_v4, %v4354_v47 }
0x1c84   :  { %v2246_v13 = vadd.f32 %v2245_v11, %v2236_v6 }
0x1c86   :  { %v2247_v14 = vmul.f32 0.01, %v2246_v13 }
0x1c88   :  { %v2248_v22 = vmax.f32 %v2246_v13, %v2247_v14 }
0x1c8a   :  { %3920 = vmatmul.mubr.msk.f32.vlgmr.msra.gmra.mrb[12].mxu0 %vm72_vm1, %v2248_v22 }
0x1c8b   :  { %4085 = vmatpush3.bf16.msra.mxu0 %v4312_v5  ;;  %3941 = vmatprep.mubr.msk.f32.mxu0 %vm4261_vm0, %v4262_v10 }
0x1c8c   :  { %4086 = vmatprep.subr.bf16.mxu0 %v4260_v8 }
0x1c8f   :  { %4088 = vmatpush3.bf16.msra.mxu0 %v4316_v9 }
0x1c90   :  { %4095 = vmatprep.subr.bf16.mxu0 %v4260_v8 }
0x1d5d   :  { %v2318_v28 = vpop.f32.mrb[12].mxu0 }
0x1d5e   :  { %v2322_v16 = vsel %vm72_vm1, %v2318_v28, 0.0  ;;  %v2330_v29 = vmul.f32 %v2318_v28, %v2318_v28  ;;  %v3921_v19 = vpop.f32.mrb[13].mxu0 }
0x1d5f   :  { %v2323_v37 = vrot.slane %v2322_v16, 4 }
0x1d60   :  { %v2331_v20 = vsel %vm72_vm1, %v2330_v29, 0.0 }
0x1d61   :  { %v2324_v21 = vadd.f32 %v2323_v37, %v2322_v16  ;;  %v2332_v25 = vrot.slane %v2331_v20, 4 }
0x1d63   :  { %v2325_v26 = vrot.slane %v2324_v21, 2  ;;  %v2333_v30 = vadd.f32 %v2332_v25, %v2331_v20 }
0x1d65   :  { %v2326_v32 = vadd.f32 %v2325_v26, %v2324_v21  ;;  %v2334_v39 = vrot.slane %v2333_v30, 2 }
0x1d67   :  { %v2327_v34 = vrot.slane %v2326_v32, 1  ;;  %v2335_v45 = vadd.f32 %v2334_v39, %v2333_v30 }
0x1d69   :  { %v2328_v35 = vadd.f32 %v2327_v34, %v2326_v32  ;;  %v2336_v46 = vrot.slane %v2335_v45, 1 }
0x1d6b   :  { %v2329_v55 = vmul.f32 0.125, %v2328_v35  ;;  %v2337_v57 = vadd.f32 %v2336_v46, %v2335_v45 }
0x1d6d   :  { %v2338_v36 = vmul.f32 0.125, %v2337_v57  ;;  %v2339_v48 = vmul.f32 %v2329_v55, %v2329_v55 }
0x1d6f   :  { %v2340_v49 = vsub.f32 %v2338_v36, %v2339_v48 }
0x1d71   :  { %v2341_v40 = vadd.f32 1e-05, %v2340_v49 }
0x1d73   :  { %4189 = vrsqrt.f32 %v2341_v40 }
0x1d7d   :  { %v4190_v50 = vpop.eup %4189 }
0x1d7e   :  { %v2343_v42 = vmul.f32 %v4778_v15, %v4190_v50 }
0x1d80   :  { %v2349_v24 = vmul.f32 %v2343_v42, %v2329_v55  ;;  %v2347_v0 = vrot.slane %v2343_v42, %v4370_v27 }
0x1d82   :  { %v2351_v43 = vrot.slane %v2349_v24, 7  ;;  %v2348_v51 = vmul.f32 %v2347_v0, %v2318_v28 }
0x1d84   :  { %v2353_v52 = vsub.f32 %v4778_v15, %v2351_v43 }
0x1d86   :  { %v2357_v53 = vrot.slane %v2353_v52, %v4374_v31 }
0x1d88   :  { %v2358_v54 = vadd.f32 %v2357_v53, %v2348_v51 }
0x1d8a   :  { %v2359_v62 = vmul.f32 0.01, %v2358_v54 }
0x1d8c   :  { %v2360_v56 = vmax.f32 %v2358_v54, %v2359_v62 }
0x1d8e   :  { %v2366_v1 = vmul.f32 %v2360_v56, %v4384_v41  ;;  %v2361_v60 = vmul.f32 %v2360_v56, %v4381_v38 }
0x1d90   :  { %v2367_v3 = vsel %vm72_vm1, %v2366_v1, 0.0  ;;  %v2362_v23 = vsel %vm72_vm1, %v2361_v60, 0.0 }
0x1d91   :  { %2368 = vadd.xlane.f32.xlu0 %v2367_v3  ;;  %2363 = vadd.xlane.f32.xlu1 %v2362_v23 }
0x1e1e   :  { %v2369_v58 = vpop.xlane.xlu0 %2368  ;;  %v2364_v7 = vpop.xlane.xlu1 %2363 }
0x1e1f   :  { %v2370_v61 = vadd.f32 %v4839_v59, %v2369_v58  ;;  %v2365_v63 = vadd.f32 %v4839_v59, %v2364_v7 }
0x1e21   :  { %v2373_v4 = vmul.f32 0.05, %v2370_v61  ;;  %v2371_v6 = vmul.f32 0.05, %v2365_v63 }
0x1e23   :  { %v4844_v11 = vadd.f32 %v2373_v4, %v4804_v12  ;;  %v4847_v13 = vadd.f32 %v2371_v6, %v4807_v33 }
0x1e25   :  { %2383 = vperm.xlu1 %4136, %v4844_v11   ;;  %2377 = vperm.xlu0 %4137, %v4847_v13  }
0x1ea4   :  { %v2378_v14 = vpop.permute.xlu0 %2377  ;;  %v2384_v22 = vpop.permute.xlu1 %2383 }
0x1ea5   :  { %v2380_v28 = vmul.f32 %v2378_v14, %v4340_v17  ;;  %v2386_v16 = vmul.f32 %v2384_v22, %v4343_v18 }
0x1ea7   :  { %v2387_v29 = vadd.f32 %v2386_v16, %v2380_v28 }
0x1ea9   :  { %v2388_v19 = vsel %vm72_vm1, %v2387_v29, 0.0  ;;  %v2396_v37 = vmul.f32 %v2387_v29, %v2387_v29 }
0x1eaa   :  { %v2389_v20 = vrot.slane %v2388_v19, 4 }
0x1eab   :  { %v2397_v12 = vsel %vm72_vm1, %v2396_v37, 0.0 }
0x1eac   :  { %v2390_v21 = vadd.f32 %v2389_v20, %v2388_v19  ;;  %v2398_v33 = vrot.slane %v2397_v12, 4 }
0x1eae   :  { %v2391_v25 = vrot.slane %v2390_v21, 2  ;;  %v2399_v26 = vadd.f32 %v2398_v33, %v2397_v12 }
0x1eb0   :  { %v2392_v30 = vadd.f32 %v2391_v25, %v2390_v21  ;;  %v2400_v32 = vrot.slane %v2399_v26, 2 }
0x1eb2   :  { %v2393_v39 = vrot.slane %v2392_v30, 1  ;;  %v2401_v34 = vadd.f32 %v2400_v32, %v2399_v26 }
0x1eb4   :  { %v2394_v45 = vadd.f32 %v2393_v39, %v2392_v30  ;;  %v2402_v35 = vrot.slane %v2401_v34, 1 }
0x1eb6   :  { %v2395_v46 = vmul.f32 0.125, %v2394_v45  ;;  %v2403_v55 = vadd.f32 %v2402_v35, %v2401_v34 }
0x1eb8   :  { %v2404_v57 = vmul.f32 0.125, %v2403_v55  ;;  %v2405_v36 = vmul.f32 %v2395_v46, %v2395_v46 }
0x1eba   :  { %v2406_v48 = vsub.f32 %v2404_v57, %v2405_v36 }
0x1ebc   :  { %v2407_v49 = vadd.f32 1e-05, %v2406_v48 }
0x1ebe   :  { %4191 = vrsqrt.f32 %v2407_v49 }
0x1ec8   :  { %v4192_v40 = vpop.eup %4191 }
0x1ec9   :  { %v2409_v50 = vmul.f32 %v4778_v15, %v4192_v40 }
0x1ecb   :  { %v2415_v42 = vmul.f32 %v2409_v50, %v2395_v46  ;;  %v2413_v24 = vrot.slane %v2409_v50, %v4350_v44 }
0x1ecd   :  { %v2417_v0 = vrot.slane %v2415_v42, 7  ;;  %v2414_v52 = vmul.f32 %v2413_v24, %v2387_v29 }
0x1ecf   :  { %v2419_v43 = vsub.f32 %v4778_v15, %v2417_v0 }
0x1ed1   :  { %v2423_v51 = vrot.slane %v2419_v43, %v4354_v47 }
0x1ed3   :  { %v2424_v53 = vadd.f32 %v2423_v51, %v2414_v52 }
0x1ed5   :  { %v2425_v54 = vmul.f32 0.01, %v2424_v53 }
0x1ed7   :  { %v2426_v62 = vmax.f32 %v2424_v53, %v2425_v54 }
0x1ed9   :  { %3931 = vmatmul.mubr.msk.f32.vlgmr.msra.gmra.mrb[12].mxu1 %vm72_vm1, %v2426_v62 }
0x1eda   :  { %4091 = vmatpush3.bf16.msra.mxu1 %v4312_v5  ;;  %3952 = vmatprep.mubr.msk.f32.mxu1 %vm4261_vm0, %v4262_v10 }
0x1edb   :  { %4092 = vmatprep.subr.bf16.mxu1 %v4260_v8 }
0x1ede   :  { %4094 = vmatpush3.bf16.msra.mxu1 %v4316_v9 }
0x1edf   :  { %4101 = vmatprep.subr.bf16.mxu1 %v4260_v8 }
0x1fac   :  { %v2496_v56 = vpop.f32.mrb[12].mxu1 }
0x1fad   :  { %v2500_v1 = vsel %vm72_vm1, %v2496_v56, 0.0  ;;  %v2508_v60 = vmul.f32 %v2496_v56, %v2496_v56  ;;  %v3932_v3 = vpop.f32.mrb[13].mxu1 }
0x1fae   :  { %v2501_v23 = vrot.slane %v2500_v1, 4 }
0x1faf   :  { %v2509_v58 = vsel %vm72_vm1, %v2508_v60, 0.0 }
0x1fb0   :  { %v2502_v7 = vadd.f32 %v2501_v23, %v2500_v1  ;;  %v2510_v61 = vrot.slane %v2509_v58, 4 }
0x1fb2   :  { %v2503_v63 = vrot.slane %v2502_v7, 2  ;;  %v2511_v4 = vadd.f32 %v2510_v61, %v2509_v58 }
0x1fb4   :  { %v2504_v6 = vadd.f32 %v2503_v63, %v2502_v7  ;;  %v2512_v14 = vrot.slane %v2511_v4, 2 }
0x1fb6   :  { %v2505_v22 = vrot.slane %v2504_v6, 1  ;;  %v2513_v28 = vadd.f32 %v2512_v14, %v2511_v4 }
0x1fb8   :  { %v2506_v16 = vadd.f32 %v2505_v22, %v2504_v6  ;;  %v2514_v29 = vrot.slane %v2513_v28, 1 }
0x1fba   :  { %v2507_v19 = vmul.f32 0.125, %v2506_v16  ;;  %v2515_v37 = vadd.f32 %v2514_v29, %v2513_v28 }
0x1fbc   :  { %v2516_v20 = vmul.f32 0.125, %v2515_v37  ;;  %v2517_v12 = vmul.f32 %v2507_v19, %v2507_v19 }
0x1fbe   :  { %v2518_v21 = vsub.f32 %v2516_v20, %v2517_v12 }
0x1fc0   :  { %v2519_v33 = vadd.f32 1e-05, %v2518_v21 }
0x1fc2   :  { %4193 = vrsqrt.f32 %v2519_v33 }
0x1fcc   :  { %v4194_v25 = vpop.eup %4193 }
0x1fcd   :  { %v2521_v26 = vmul.f32 %v4778_v15, %v4194_v25 }
0x1fcf   :  { %v2527_v30 = vmul.f32 %v2521_v26, %v2507_v19  ;;  %v2525_v32 = vrot.slane %v2521_v26, %v4370_v27 }
0x1fd1   :  { %v2529_v39 = vrot.slane %v2527_v30, 7  ;;  %v2526_v45 = vmul.f32 %v2525_v32, %v2496_v56 }
0x1fd3   :  { %v2531_v34 = vsub.f32 %v4778_v15, %v2529_v39 }
0x1fd5   :  { %v2535_v35 = vrot.slane %v2531_v34, %v4374_v31 }
0x1fd7   :  { %v2536_v46 = vadd.f32 %v2535_v35, %v2526_v45 }
0x1fd9   :  { %v2537_v55 = vmul.f32 0.01, %v2536_v46 }
0x1fdb   :  { %v2538_v57 = vmax.f32 %v2536_v46, %v2537_v55 }
0x1fdd   :  { %v2544_v36 = vmul.f32 %v2538_v57, %v4384_v41  ;;  %v2539_v48 = vmul.f32 %v2538_v57, %v4381_v38 }
0x1fdf   :  { %v2545_v49 = vsel %vm72_vm1, %v2544_v36, 0.0  ;;  %v2540_v40 = vsel %vm72_vm1, %v2539_v48, 0.0 }
0x1fe0   :  { %2546 = vadd.xlane.f32.xlu0 %v2545_v49  ;;  %2541 = vadd.xlane.f32.xlu1 %v2540_v40 }
0x206d   :  { %v2547_v50 = vpop.xlane.xlu0 %2546  ;;  %v2542_v42 = vpop.xlane.xlu1 %2541 }
0x206e   :  { %v2548_v24 = vadd.f32 %v4839_v59, %v2547_v50  ;;  %v2543_v0 = vadd.f32 %v4839_v59, %v2542_v42 }
0x2070   :  { %v2551_v43 = vmul.f32 0.05, %v2548_v24  ;;  %v2549_v52 = vmul.f32 0.05, %v2543_v0 }
0x2072   :  { %v4879_v51 = vadd.f32 %v2551_v43, %v4844_v11  ;;  %v4882_v53 = vadd.f32 %v2549_v52, %v4847_v13 }
0x2074   :  { %2561 = vperm.xlu1 %4136, %v4879_v51   ;;  %2555 = vperm.xlu0 %4137, %v4882_v53  }
0x20f3   :  { %v2556_v54 = vpop.permute.xlu0 %2555  ;;  %v2562_v62 = vpop.permute.xlu1 %2561 }
0x20f4   :  { %v2558_v56 = vmul.f32 %v2556_v54, %v4340_v17  ;;  %v2564_v1 = vmul.f32 %v2562_v62, %v4343_v18 }
0x20f6   :  { %v2565_v60 = vadd.f32 %v2564_v1, %v2558_v56 }
0x20f8   :  { %v2566_v3 = vsel %vm72_vm1, %v2565_v60, 0.0  ;;  %v2574_v23 = vmul.f32 %v2565_v60, %v2565_v60 }
0x20f9   :  { %v2567_v58 = vrot.slane %v2566_v3, 4 }
0x20fa   :  { %v2575_v11 = vsel %vm72_vm1, %v2574_v23, 0.0 }
0x20fb   :  { %v2568_v7 = vadd.f32 %v2567_v58, %v2566_v3  ;;  %v2576_v13 = vrot.slane %v2575_v11, 4 }
0x20fd   :  { %v2569_v61 = vrot.slane %v2568_v7, 2  ;;  %v2577_v63 = vadd.f32 %v2576_v13, %v2575_v11 }
0x20ff   :  { %v2570_v4 = vadd.f32 %v2569_v61, %v2568_v7  ;;  %v2578_v6 = vrot.slane %v2577_v63, 2 }
0x2101   :  { %v2571_v14 = vrot.slane %v2570_v4, 1  ;;  %v2579_v22 = vadd.f32 %v2578_v6, %v2577_v63 }
0x2103   :  { %v2572_v28 = vadd.f32 %v2571_v14, %v2570_v4  ;;  %v2580_v16 = vrot.slane %v2579_v22, 1 }
0x2105   :  { %v2573_v29 = vmul.f32 0.125, %v2572_v28  ;;  %v2581_v19 = vadd.f32 %v2580_v16, %v2579_v22 }
0x2107   :  { %v2582_v37 = vmul.f32 0.125, %v2581_v19  ;;  %v2583_v20 = vmul.f32 %v2573_v29, %v2573_v29 }
0x2109   :  { %v2584_v12 = vsub.f32 %v2582_v37, %v2583_v20 }
0x210b   :  { %v2585_v21 = vadd.f32 1e-05, %v2584_v12 }
0x210d   :  { %4195 = vrsqrt.f32 %v2585_v21 }
0x2117   :  { %v4196_v33 = vpop.eup %4195 }
0x2118   :  { %v2587_v25 = vmul.f32 %v4778_v15, %v4196_v33 }
0x211a   :  { %v2593_v26 = vmul.f32 %v2587_v25, %v2573_v29  ;;  %v2591_v30 = vrot.slane %v2587_v25, %v4350_v44 }
0x211c   :  { %v2595_v32 = vrot.slane %v2593_v26, 7  ;;  %v2592_v34 = vmul.f32 %v2591_v30, %v2565_v60 }
0x211e   :  { %v2597_v39 = vsub.f32 %v4778_v15, %v2595_v32 }
0x2120   :  { %v2601_v45 = vrot.slane %v2597_v39, %v4354_v47 }
0x2122   :  { %v2602_v35 = vadd.f32 %v2601_v45, %v2592_v34 }
0x2124   :  { %v2603_v46 = vmul.f32 0.01, %v2602_v35 }
0x2126   :  { %v2604_v55 = vmax.f32 %v2602_v35, %v2603_v46 }
0x2128   :  { %3942 = vmatmul.mubr.msk.f32.vlgmr.msra.gmra.mrb[14].mxu0 %vm72_vm1, %v2604_v55 }
0x2129   :  { %4097 = vmatpush3.bf16.msra.mxu0 %v4312_v5  ;;  %3963 = vmatprep.mubr.msk.f32.mxu0 %vm4261_vm0, %v4262_v10 }
0x212a   :  { %4098 = vmatprep.subr.bf16.mxu0 %v4260_v8 }
0x212d   :  { %4100 = vmatpush3.bf16.msra.mxu0 %v4316_v9 }
0x212e   :  { %4107 = vmatprep.subr.bf16.mxu0 %v4260_v8 }
0x21fb   :  { %v2674_v57 = vpop.f32.mrb[14].mxu0 }
0x21fc   :  { %v2678_v36 = vsel %vm72_vm1, %v2674_v57, 0.0  ;;  %v2686_v48 = vmul.f32 %v2674_v57, %v2674_v57  ;;  %v3943_v49 = vpop.f32.mrb[15].mxu0 }
0x21fd   :  { %v2679_v40 = vrot.slane %v2678_v36, 4 }
0x21fe   :  { %v2687_v50 = vsel %vm72_vm1, %v2686_v48, 0.0 }
0x21ff   :  { %v2680_v42 = vadd.f32 %v2679_v40, %v2678_v36  ;;  %v2688_v24 = vrot.slane %v2687_v50, 4 }
0x2201   :  { %v2681_v0 = vrot.slane %v2680_v42, 2  ;;  %v2689_v43 = vadd.f32 %v2688_v24, %v2687_v50 }
0x2203   :  { %v2682_v52 = vadd.f32 %v2681_v0, %v2680_v42  ;;  %v2690_v54 = vrot.slane %v2689_v43, 2 }
0x2205   :  { %v2683_v62 = vrot.slane %v2682_v52, 1  ;;  %v2691_v56 = vadd.f32 %v2690_v54, %v2689_v43 }
0x2207   :  { %v2684_v1 = vadd.f32 %v2683_v62, %v2682_v52  ;;  %v2692_v60 = vrot.slane %v2691_v56, 1 }
0x2209   :  { %v2685_v3 = vmul.f32 0.125, %v2684_v1  ;;  %v2693_v23 = vadd.f32 %v2692_v60, %v2691_v56 }
0x220b   :  { %v2694_v58 = vmul.f32 0.125, %v2693_v23  ;;  %v2695_v11 = vmul.f32 %v2685_v3, %v2685_v3 }
0x220d   :  { %v2696_v7 = vsub.f32 %v2694_v58, %v2695_v11 }
0x220f   :  { %v2697_v13 = vadd.f32 1e-05, %v2696_v7 }
0x2211   :  { %4197 = vrsqrt.f32 %v2697_v13 }
0x221b   :  { %v4198_v61 = vpop.eup %4197 }
0x221c   :  { %v2699_v63 = vmul.f32 %v4778_v15, %v4198_v61 }
0x221e   :  { %v2705_v4 = vmul.f32 %v2699_v63, %v2685_v3  ;;  %v2703_v6 = vrot.slane %v2699_v63, %v4370_v27 }
0x2220   :  { %v2707_v14 = vrot.slane %v2705_v4, 7  ;;  %v2704_v28 = vmul.f32 %v2703_v6, %v2674_v57 }
0x2222   :  { %v2709_v22 = vsub.f32 %v4778_v15, %v2707_v14 }
0x2224   :  { %v2713_v16 = vrot.slane %v2709_v22, %v4374_v31 }
0x2226   :  { %v2714_v29 = vadd.f32 %v2713_v16, %v2704_v28 }
0x2228   :  { %v2715_v19 = vmul.f32 0.01, %v2714_v29 }
0x222a   :  { %v2716_v37 = vmax.f32 %v2714_v29, %v2715_v19 }
0x222c   :  { %v2722_v20 = vmul.f32 %v2716_v37, %v4384_v41  ;;  %v2717_v12 = vmul.f32 %v2716_v37, %v4381_v38 }
0x222e   :  { %v2723_v21 = vsel %vm72_vm1, %v2722_v20, 0.0  ;;  %v2718_v33 = vsel %vm72_vm1, %v2717_v12, 0.0 }
0x222f   :  { %2724 = vadd.xlane.f32.xlu0 %v2723_v21  ;;  %2719 = vadd.xlane.f32.xlu1 %v2718_v33 }
0x22bc   :  { %v2725_v25 = vpop.xlane.xlu0 %2724  ;;  %v2720_v26 = vpop.xlane.xlu1 %2719 }
0x22bd   :  { %v2726_v30 = vadd.f32 %v4839_v59, %v2725_v25  ;;  %v2721_v32 = vadd.f32 %v4839_v59, %v2720_v26 }
0x22bf   :  { %v2729_v39 = vmul.f32 0.05, %v2726_v30  ;;  %v2727_v34 = vmul.f32 0.05, %v2721_v32 }
0x22c1   :  { %v4914_v45 = vadd.f32 %v2729_v39, %v4879_v51  ;;  %v4917_v35 = vadd.f32 %v2727_v34, %v4882_v53 }
0x22c3   :  { %2739 = vperm.xlu1 %4136, %v4914_v45   ;;  %2733 = vperm.xlu0 %4137, %v4917_v35  }
0x2342   :  { %v2734_v46 = vpop.permute.xlu0 %2733  ;;  %v2740_v55 = vpop.permute.xlu1 %2739 }
0x2343   :  { %v2736_v57 = vmul.f32 %v2734_v46, %v4340_v17  ;;  %v2742_v36 = vmul.f32 %v2740_v55, %v4343_v18 }
0x2345   :  { %v2743_v48 = vadd.f32 %v2742_v36, %v2736_v57 }
0x2347   :  { %v2744_v49 = vsel %vm72_vm1, %v2743_v48, 0.0  ;;  %v2752_v40 = vmul.f32 %v2743_v48, %v2743_v48 }
0x2348   :  { %v2745_v50 = vrot.slane %v2744_v49, 4 }
0x2349   :  { %v2753_v51 = vsel %vm72_vm1, %v2752_v40, 0.0 }
0x234a   :  { %v2746_v42 = vadd.f32 %v2745_v50, %v2744_v49  ;;  %v2754_v53 = vrot.slane %v2753_v51, 4 }
0x234c   :  { %v2747_v24 = vrot.slane %v2746_v42, 2  ;;  %v2755_v0 = vadd.f32 %v2754_v53, %v2753_v51 }
0x234e   :  { %v2748_v43 = vadd.f32 %v2747_v24, %v2746_v42  ;;  %v2756_v52 = vrot.slane %v2755_v0, 2 }
0x2350   :  { %v2749_v54 = vrot.slane %v2748_v43, 1  ;;  %v2757_v62 = vadd.f32 %v2756_v52, %v2755_v0 }
0x2352   :  { %v2750_v56 = vadd.f32 %v2749_v54, %v2748_v43  ;;  %v2758_v1 = vrot.slane %v2757_v62, 1 }
0x2354   :  { %v2751_v60 = vmul.f32 0.125, %v2750_v56  ;;  %v2759_v3 = vadd.f32 %v2758_v1, %v2757_v62 }
0x2356   :  { %v2760_v23 = vmul.f32 0.125, %v2759_v3  ;;  %v2761_v58 = vmul.f32 %v2751_v60, %v2751_v60 }
0x2358   :  { %v2762_v11 = vsub.f32 %v2760_v23, %v2761_v58 }
0x235a   :  { %v2763_v7 = vadd.f32 1e-05, %v2762_v11 }
0x235c   :  { %4199 = vrsqrt.f32 %v2763_v7 }
0x2366   :  { %v4200_v13 = vpop.eup %4199 }
0x2367   :  { %v2765_v61 = vmul.f32 %v4778_v15, %v4200_v13 }
0x2369   :  { %v2771_v63 = vmul.f32 %v2765_v61, %v2751_v60  ;;  %v2769_v4 = vrot.slane %v2765_v61, %v4350_v44 }
0x236b   :  { %v2773_v6 = vrot.slane %v2771_v63, 7  ;;  %v2770_v22 = vmul.f32 %v2769_v4, %v2743_v48 }
0x236d   :  { %v2775_v14 = vsub.f32 %v4778_v15, %v2773_v6 }
0x236f   :  { %v2779_v28 = vrot.slane %v2775_v14, %v4354_v47 }
0x2371   :  { %v2780_v16 = vadd.f32 %v2779_v28, %v2770_v22 }
0x2373   :  { %v2781_v29 = vmul.f32 0.01, %v2780_v16 }
0x2375   :  { %v2782_v19 = vmax.f32 %v2780_v16, %v2781_v29 }
0x2377   :  { %3953 = vmatmul.mubr.msk.f32.vlgmr.msra.gmra.mrb[14].mxu1 %vm72_vm1, %v2782_v19 }
0x2378   :  { %4103 = vmatpush3.bf16.msra.mxu1 %v4312_v5  ;;  %3974 = vmatprep.mubr.msk.f32.mxu1 %vm4261_vm0, %v4262_v10 }
0x2379   :  { %4104 = vmatprep.subr.bf16.mxu1 %v4260_v8 }
0x237c   :  { %4106 = vmatpush3.bf16.msra.mxu1 %v4316_v9 }
0x237d   :  { %4113 = vmatprep.subr.bf16.mxu1 %v4260_v8 }
0x244a   :  { %v2852_v37 = vpop.f32.mrb[14].mxu1 }
0x244b   :  { %v2856_v20 = vsel %vm72_vm1, %v2852_v37, 0.0  ;;  %v2864_v12 = vmul.f32 %v2852_v37, %v2852_v37  ;;  %v3954_v21 = vpop.f32.mrb[15].mxu1 }
0x244c   :  { %v2857_v33 = vrot.slane %v2856_v20, 4 }
0x244d   :  { %v2865_v25 = vsel %vm72_vm1, %v2864_v12, 0.0 }
0x244e   :  { %v2858_v26 = vadd.f32 %v2857_v33, %v2856_v20  ;;  %v2866_v30 = vrot.slane %v2865_v25, 4 }
0x2450   :  { %v2859_v32 = vrot.slane %v2858_v26, 2  ;;  %v2867_v39 = vadd.f32 %v2866_v30, %v2865_v25 }
0x2452   :  { %v2860_v34 = vadd.f32 %v2859_v32, %v2858_v26  ;;  %v2868_v46 = vrot.slane %v2867_v39, 2 }
0x2454   :  { %v2861_v55 = vrot.slane %v2860_v34, 1  ;;  %v2869_v57 = vadd.f32 %v2868_v46, %v2867_v39 }
0x2456   :  { %v2862_v36 = vadd.f32 %v2861_v55, %v2860_v34  ;;  %v2870_v48 = vrot.slane %v2869_v57, 1 }
0x2458   :  { %v2863_v49 = vmul.f32 0.125, %v2862_v36  ;;  %v2871_v40 = vadd.f32 %v2870_v48, %v2869_v57 }
0x245a   :  { %v2872_v50 = vmul.f32 0.125, %v2871_v40  ;;  %v2873_v51 = vmul.f32 %v2863_v49, %v2863_v49 }
0x245c   :  { %v2874_v42 = vsub.f32 %v2872_v50, %v2873_v51 }
0x245e   :  { %v2875_v53 = vadd.f32 1e-05, %v2874_v42 }
0x2460   :  { %4201 = vrsqrt.f32 %v2875_v53 }
0x246a   :  { %v4202_v24 = vpop.eup %4201 }
0x246b   :  { %v2877_v0 = vmul.f32 %v4778_v15, %v4202_v24 }
0x246d   :  { %v2883_v43 = vmul.f32 %v2877_v0, %v2863_v49  ;;  %v2881_v52 = vrot.slane %v2877_v0, %v4370_v27 }
0x246f   :  { %v2885_v54 = vrot.slane %v2883_v43, 7  ;;  %v2882_v56 = vmul.f32 %v2881_v52, %v2852_v37 }
0x2471   :  { %v2887_v62 = vsub.f32 %v4778_v15, %v2885_v54 }
0x2473   :  { %v2891_v1 = vrot.slane %v2887_v62, %v4374_v31 }
0x2475   :  { %v2892_v60 = vadd.f32 %v2891_v1, %v2882_v56 }
0x2477   :  { %v2893_v3 = vmul.f32 0.01, %v2892_v60 }
0x2479   :  { %v2894_v23 = vmax.f32 %v2892_v60, %v2893_v3 }
0x247b   :  { %v2900_v58 = vmul.f32 %v2894_v23, %v4384_v41  ;;  %v2895_v11 = vmul.f32 %v2894_v23, %v4381_v38 }
0x247d   :  { %v2901_v7 = vsel %vm72_vm1, %v2900_v58, 0.0  ;;  %v2896_v13 = vsel %vm72_vm1, %v2895_v11, 0.0 }
0x247e   :  { %2902 = vadd.xlane.f32.xlu0 %v2901_v7  ;;  %2897 = vadd.xlane.f32.xlu1 %v2896_v13 }
0x250b   :  { %v2903_v61 = vpop.xlane.xlu0 %2902  ;;  %v2898_v63 = vpop.xlane.xlu1 %2897 }
0x250c   :  { %v2904_v4 = vadd.f32 %v4839_v59, %v2903_v61  ;;  %v2899_v6 = vadd.f32 %v4839_v59, %v2898_v63 }
0x250e   :  { %v2907_v14 = vmul.f32 0.05, %v2904_v4  ;;  %v2905_v22 = vmul.f32 0.05, %v2899_v6 }
0x2510   :  { %v4949_v28 = vadd.f32 %v2907_v14, %v4914_v45  ;;  %v4952_v16 = vadd.f32 %v2905_v22, %v4917_v35 }
0x2512   :  { %2917 = vperm.xlu1 %4136, %v4949_v28   ;;  %2911 = vperm.xlu0 %4137, %v4952_v16  }
0x2591   :  { %v2912_v29 = vpop.permute.xlu0 %2911  ;;  %v2918_v19 = vpop.permute.xlu1 %2917 }
0x2592   :  { %v2914_v37 = vmul.f32 %v2912_v29, %v4340_v17  ;;  %v2920_v20 = vmul.f32 %v2918_v19, %v4343_v18 }
0x2594   :  { %v2921_v12 = vadd.f32 %v2920_v20, %v2914_v37 }
0x2596   :  { %v2922_v21 = vsel %vm72_vm1, %v2921_v12, 0.0  ;;  %v2930_v33 = vmul.f32 %v2921_v12, %v2921_v12 }
0x2597   :  { %v2923_v25 = vrot.slane %v2922_v21, 4 }
0x2598   :  { %v2931_v45 = vsel %vm72_vm1, %v2930_v33, 0.0 }
0x2599   :  { %v2924_v26 = vadd.f32 %v2923_v25, %v2922_v21  ;;  %v2932_v35 = vrot.slane %v2931_v45, 4 }
0x259b   :  { %v2925_v30 = vrot.slane %v2924_v26, 2  ;;  %v2933_v32 = vadd.f32 %v2932_v35, %v2931_v45 }
0x259d   :  { %v2926_v39 = vadd.f32 %v2925_v30, %v2924_v26  ;;  %v2934_v34 = vrot.slane %v2933_v32, 2 }
0x259f   :  { %v2927_v46 = vrot.slane %v2926_v39, 1  ;;  %v2935_v55 = vadd.f32 %v2934_v34, %v2933_v32 }
0x25a1   :  { %v2928_v57 = vadd.f32 %v2927_v46, %v2926_v39  ;;  %v2936_v36 = vrot.slane %v2935_v55, 1 }
0x25a3   :  { %v2929_v48 = vmul.f32 0.125, %v2928_v57  ;;  %v2937_v49 = vadd.f32 %v2936_v36, %v2935_v55 }
0x25a5   :  { %v2938_v40 = vmul.f32 0.125, %v2937_v49  ;;  %v2939_v50 = vmul.f32 %v2929_v48, %v2929_v48 }
0x25a7   :  { %v2940_v51 = vsub.f32 %v2938_v40, %v2939_v50 }
0x25a9   :  { %v2941_v42 = vadd.f32 1e-05, %v2940_v51 }
0x25ab   :  { %4203 = vrsqrt.f32 %v2941_v42 }
0x25b5   :  { %v4204_v53 = vpop.eup %4203 }
0x25b6   :  { %v2943_v24 = vmul.f32 %v4778_v15, %v4204_v53 }
0x25b8   :  { %v2949_v0 = vmul.f32 %v2943_v24, %v2929_v48  ;;  %v2947_v43 = vrot.slane %v2943_v24, %v4350_v44 }
0x25ba   :  { %v2951_v52 = vrot.slane %v2949_v0, 7  ;;  %v2948_v62 = vmul.f32 %v2947_v43, %v2921_v12 }
0x25bc   :  { %v2953_v54 = vsub.f32 %v4778_v15, %v2951_v52 }
0x25be   :  { %v2957_v56 = vrot.slane %v2953_v54, %v4354_v47 }
0x25c0   :  { %v2958_v1 = vadd.f32 %v2957_v56, %v2948_v62 }
0x25c2   :  { %v2959_v60 = vmul.f32 0.01, %v2958_v1 }
0x25c4   :  { %v2960_v3 = vmax.f32 %v2958_v1, %v2959_v60 }
0x25c6   :  { %3964 = vmatmul.mubr.msk.f32.vlgmr.msra.gmra.mrb[16].mxu0 %vm72_vm1, %v2960_v3 }
0x25c7   :  { %4109 = vmatpush3.bf16.msra.mxu0 %v4312_v5  ;;  %3985 = vmatprep.mubr.msk.f32.mxu0 %vm4261_vm0, %v4262_v10 }
0x25c8   :  { %4110 = vmatprep.subr.bf16.mxu0 %v4260_v8 }
0x25cb   :  { %4112 = vmatpush3.bf16.msra.mxu0 %v4316_v9 }
0x2699   :  { %v3030_v23 = vpop.f32.mrb[16].mxu0 }
0x269a   :  { %v3034_v58 = vsel %vm72_vm1, %v3030_v23, 0.0  ;;  %v3042_v11 = vmul.f32 %v3030_v23, %v3030_v23  ;;  %v3965_v7 = vpop.f32.mrb[17].mxu0 }
0x269b   :  { %v3035_v13 = vrot.slane %v3034_v58, 4 }
0x269c   :  { %v3043_v61 = vsel %vm72_vm1, %v3042_v11, 0.0 }
0x269d   :  { %v3036_v63 = vadd.f32 %v3035_v13, %v3034_v58  ;;  %v3044_v4 = vrot.slane %v3043_v61, 4 }
0x269f   :  { %v3037_v6 = vrot.slane %v3036_v63, 2  ;;  %v3045_v14 = vadd.f32 %v3044_v4, %v3043_v61 }
0x26a1   :  { %v3038_v22 = vadd.f32 %v3037_v6, %v3036_v63  ;;  %v3046_v29 = vrot.slane %v3045_v14, 2 }
0x26a3   :  { %v3039_v19 = vrot.slane %v3038_v22, 1  ;;  %v3047_v37 = vadd.f32 %v3046_v29, %v3045_v14 }
0x26a5   :  { %v3040_v20 = vadd.f32 %v3039_v19, %v3038_v22  ;;  %v3048_v12 = vrot.slane %v3047_v37, 1 }
0x26a7   :  { %v3041_v21 = vmul.f32 0.125, %v3040_v20  ;;  %v3049_v33 = vadd.f32 %v3048_v12, %v3047_v37 }
0x26a9   :  { %v3050_v25 = vmul.f32 0.125, %v3049_v33  ;;  %v3051_v45 = vmul.f32 %v3041_v21, %v3041_v21 }
0x26ab   :  { %v3052_v26 = vsub.f32 %v3050_v25, %v3051_v45 }
0x26ad   :  { %v3053_v35 = vadd.f32 1e-05, %v3052_v26 }
0x26af   :  { %4205 = vrsqrt.f32 %v3053_v35  ;;  %v4997_v35 = vld [vmem:[%s5094_s1] sm:$0xff] }
0x26b9   :  { %v4206_v30 = vpop.eup %4205 }
0x26ba   :  { %v3055_v32 = vmul.f32 %v4778_v15, %v4206_v30 }
0x26bc   :  { %v3061_v39 = vmul.f32 %v3055_v32, %v3041_v21  ;;  %v3059_v34 = vrot.slane %v3055_v32, %v4370_v27 }
0x26be   :  { %v3063_v46 = vrot.slane %v3061_v39, 7  ;;  %v3060_v57 = vmul.f32 %v3059_v34, %v3030_v23 }
0x26c0   :  { %v3065_v55 = vsub.f32 %v4778_v15, %v3063_v46 }
0x26c2   :  { %v3069_v36 = vrot.slane %v3065_v55, %v4374_v31 }
0x26c4   :  { %v3070_v48 = vadd.f32 %v3069_v36, %v3060_v57 }
0x26c6   :  { %v3071_v49 = vmul.f32 0.01, %v3070_v48 }
0x26c8   :  { %v3072_v40 = vmax.f32 %v3070_v48, %v3071_v49 }
0x26ca   :  { %v3078_v50 = vmul.f32 %v3072_v40, %v4384_v41  ;;  %v3073_v51 = vmul.f32 %v3072_v40, %v4381_v38 }
0x26cc   :  { %v3079_v42 = vsel %vm72_vm1, %v3078_v50, 0.0  ;;  %v3074_v53 = vsel %vm72_vm1, %v3073_v51, 0.0 }
0x26cd   :  { %3080 = vadd.xlane.f32.xlu0 %v3079_v42  ;;  %3075 = vadd.xlane.f32.xlu1 %v3074_v53 }
0x275a   :  { %v3081_v24 = vpop.xlane.xlu0 %3080  ;;  %v3076_v0 = vpop.xlane.xlu1 %3075 }
0x275b   :  { %v3082_v15 = vadd.f32 %v4839_v59, %v3081_v24  ;;  %v3077_v43 = vadd.f32 %v4839_v59, %v3076_v0 }
0x275d   :  { %v3085_v52 = vmul.f32 0.05, %v3082_v15  ;;  %v3083_v54 = vmul.f32 0.05, %v3077_v43 }
0x275f   :  { %v4983_v62 = vadd.f32 %v3085_v52, %v4949_v28  ;;  %v4986_v56 = vadd.f32 %v3083_v54, %v4952_v16 }
0x2761   :  { %3095 = vperm.xlu1 %4136, %v4983_v62   ;;  %3089 = vperm.xlu0 %4137, %v4986_v56  }
0x27e0   :  { %v3090_v1 = vpop.permute.xlu0 %3089  ;;  %v3096_v60 = vpop.permute.xlu1 %3095 }
0x27e1   :  { %v3092_v3 = vmul.f32 %v3090_v1, %v4340_v17  ;;  %v3098_v23 = vmul.f32 %v3096_v60, %v4343_v18 }
0x27e3   :  { %v3099_v58 = vadd.f32 %v3098_v23, %v3092_v3 }
0x27e5   :  { %v3100_v11 = vsel %vm72_vm1, %v3099_v58, 0.0  ;;  %v3108_v7 = vmul.f32 %v3099_v58, %v3099_v58 }
0x27e6   :  { %v3101_v13 = vrot.slane %v3100_v11, 4 }
0x27e7   :  { %v3109_v28 = vsel %vm72_vm1, %v3108_v7, 0.0 }
0x27e8   :  { %v3102_v61 = vadd.f32 %v3101_v13, %v3100_v11  ;;  %v3110_v16 = vrot.slane %v3109_v28, 4 }
0x27ea   :  { %v3103_v63 = vrot.slane %v3102_v61, 2  ;;  %v3111_v4 = vadd.f32 %v3110_v16, %v3109_v28 }
0x27ec   :  { %v3104_v6 = vadd.f32 %v3103_v63, %v3102_v61  ;;  %v3112_v14 = vrot.slane %v3111_v4, 2 }
0x27ee   :  { %v3105_v22 = vrot.slane %v3104_v6, 1  ;;  %v3113_v29 = vadd.f32 %v3112_v14, %v3111_v4 }
0x27f0   :  { %v3106_v19 = vadd.f32 %v3105_v22, %v3104_v6  ;;  %v3114_v37 = vrot.slane %v3113_v29, 1 }
0x27f2   :  { %v3107_v20 = vmul.f32 0.125, %v3106_v19  ;;  %v3115_v12 = vadd.f32 %v3114_v37, %v3113_v29 }
0x27f4   :  { %v3116_v21 = vmul.f32 0.125, %v3115_v12  ;;  %v3117_v33 = vmul.f32 %v3107_v20, %v3107_v20 }
0x27f6   :  { %v3118_v25 = vsub.f32 %v3116_v21, %v3117_v33 }
0x27f8   :  { %v3119_v45 = vadd.f32 1e-05, %v3118_v25 }
0x27fa   :  { %4207 = vrsqrt.f32 %v3119_v45 }
0x2804   :  { %v4208_v26 = vpop.eup %4207 }
0x2805   :  { %v3121_v30 = vmul.f32 %v4997_v35, %v4208_v26 }
0x2807   :  { %v3127_v32 = vmul.f32 %v3121_v30, %v3107_v20  ;;  %v3125_v39 = vrot.slane %v3121_v30, %v4350_v44 }
0x2809   :  { %v3129_v34 = vrot.slane %v3127_v32, 7  ;;  %v3126_v55 = vmul.f32 %v3125_v39, %v3099_v58 }
0x280b   :  { %v3131_v46 = vsub.f32 %v4997_v35, %v3129_v34 }
0x280d   :  { %v3135_v57 = vrot.slane %v3131_v46, %v4354_v47 }
0x280f   :  { %v3136_v36 = vadd.f32 %v3135_v57, %v3126_v55 }
0x2811   :  { %v3137_v48 = vmul.f32 0.01, %v3136_v36 }
0x2813   :  { %v3138_v49 = vmax.f32 %v3136_v36, %v3137_v48 }
0x2815   :  { %3975 = vmatmul.mubr.msk.f32.vlgmr.msra.gmra.mrb[16].mxu1 %vm72_vm1, %v3138_v49 }
0x2816   :  { %4115 = vmatpush3.bf16.msra.mxu1 %v4312_v5  ;;  %3996 = vmatprep.mubr.msk.f32.mxu1 %vm4261_vm0, %v4262_v10 }
0x2817   :  { %4116 = vmatprep.subr.bf16.mxu1 %v4260_v8 }
0x281a   :  { %4118 = vmatpush3.bf16.msra.mxu1 %v4316_v9 }
0x28e8   :  { %v3208_v40 = vpop.f32.mrb[16].mxu1 }
0x28e9   :  { %v3212_v50 = vsel %vm72_vm1, %v3208_v40, 0.0  ;;  %v3220_v51 = vmul.f32 %v3208_v40, %v3208_v40  ;;  %v3976_v42 = vpop.f32.mrb[17].mxu1 }
0x28ea   :  { %v3213_v53 = vrot.slane %v3212_v50, 4 }
0x28eb   :  { %v3221_v24 = vsel %vm72_vm1, %v3220_v51, 0.0 }
0x28ec   :  { %v3214_v0 = vadd.f32 %v3213_v53, %v3212_v50  ;;  %v3222_v15 = vrot.slane %v3221_v24, 4 }
0x28ee   :  { %v3215_v43 = vrot.slane %v3214_v0, 2  ;;  %v3223_v52 = vadd.f32 %v3222_v15, %v3221_v24 }
0x28f0   :  { %v3216_v5 = vadd.f32 %v3215_v43, %v3214_v0  ;;  %v3224_v54 = vrot.slane %v3223_v52, 2 }
0x28f2   :  { %v3217_v1 = vrot.slane %v3216_v5, 1  ;;  %v3225_v10 = vadd.f32 %v3224_v54, %v3223_v52 }
0x28f4   :  { %v3218_v60 = vadd.f32 %v3217_v1, %v3216_v5  ;;  %v3226_v8 = vrot.slane %v3225_v10, 1 }
0x28f6   :  { %v3219_v3 = vmul.f32 0.125, %v3218_v60  ;;  %v3227_v9 = vadd.f32 %v3226_v8, %v3225_v10 }
0x28f8   :  { %v3228_v23 = vmul.f32 0.125, %v3227_v9  ;;  %v3229_v58 = vmul.f32 %v3219_v3, %v3219_v3 }
0x28fa   :  { %v3230_v11 = vsub.f32 %v3228_v23, %v3229_v58 }
0x28fc   :  { %v3231_v7 = vadd.f32 1e-05, %v3230_v11 }
0x28fe   :  { %4209 = vrsqrt.f32 %v3231_v7 }
0x2908   :  { %v4210_v13 = vpop.eup %4209 }
0x2909   :  { %v3233_v28 = vmul.f32 %v4997_v35, %v4210_v13 }
0x290b   :  { %v3239_v61 = vmul.f32 %v3233_v28, %v3219_v3  ;;  %v3237_v16 = vrot.slane %v3233_v28, %v4370_v27 }
0x290d   :  { %v3241_v63 = vrot.slane %v3239_v61, 7  ;;  %v3238_v6 = vmul.f32 %v3237_v16, %v3208_v40 }
0x290f   :  { %v3243_v4 = vsub.f32 %v4997_v35, %v3241_v63 }
0x2911   :  { %v3247_v14 = vrot.slane %v3243_v4, %v4374_v31 }
0x2913   :  { %v3248_v22 = vadd.f32 %v3247_v14, %v3238_v6 }
0x2915   :  { %v3249_v29 = vmul.f32 0.01, %v3248_v22 }
0x2917   :  { %v3250_v19 = vmax.f32 %v3248_v22, %v3249_v29 }
0x2919   :  { %v3256_v37 = vmul.f32 %v3250_v19, %v4384_v41  ;;  %v3251_v20 = vmul.f32 %v3250_v19, %v4381_v38 }
0x291b   :  { %v3257_v12 = vsel %vm72_vm1, %v3256_v37, 0.0  ;;  %v3252_v21 = vsel %vm72_vm1, %v3251_v20, 0.0 }
0x291c   :  { %3258 = vadd.xlane.f32.xlu0 %v3257_v12  ;;  %3253 = vadd.xlane.f32.xlu1 %v3252_v21 }
0x29a9   :  { %v3259_v33 = vpop.xlane.xlu0 %3258  ;;  %v3254_v25 = vpop.xlane.xlu1 %3253 }
0x29aa   :  { %v3260_v45 = vadd.f32 %v4839_v59, %v3259_v33  ;;  %v3255_v26 = vadd.f32 %v4839_v59, %v3254_v25 }
0x29ac   :  { %v3263_v30 = vmul.f32 0.05, %v3260_v45  ;;  %v3261_v32 = vmul.f32 0.05, %v3255_v26 }
0x29ae   :  { %v5022_v39 = vadd.f32 %v3263_v30, %v4983_v62  ;;  %v5025_v34 = vadd.f32 %v3261_v32, %v4986_v56 }
0x29b0   :  { %3273 = vperm.xlu1 %4136, %v5022_v39   ;;  %3267 = vperm.xlu0 %4137, %v5025_v34  }
0x2a2f   :  { %v3268_v46 = vpop.permute.xlu0 %3267  ;;  %v3274_v55 = vpop.permute.xlu1 %3273 }
0x2a30   :  { %v3270_v57 = vmul.f32 %v3268_v46, %v4340_v17  ;;  %v3276_v36 = vmul.f32 %v3274_v55, %v4343_v18 }
0x2a32   :  { %v3277_v48 = vadd.f32 %v3276_v36, %v3270_v57 }
0x2a34   :  { %v3278_v59 = vsel %vm72_vm1, %v3277_v48, 0.0  ;;  %v3286_v49 = vmul.f32 %v3277_v48, %v3277_v48 }
0x2a35   :  { %v3279_v40 = vrot.slane %v3278_v59, 4 }
0x2a36   :  { %v3287_v62 = vsel %vm72_vm1, %v3286_v49, 0.0 }
0x2a37   :  { %v3280_v50 = vadd.f32 %v3279_v40, %v3278_v59  ;;  %v3288_v56 = vrot.slane %v3287_v62, 4 }
0x2a39   :  { %v3281_v51 = vrot.slane %v3280_v50, 2  ;;  %v3289_v42 = vadd.f32 %v3288_v56, %v3287_v62 }
0x2a3b   :  { %v3282_v53 = vadd.f32 %v3281_v51, %v3280_v50  ;;  %v3290_v24 = vrot.slane %v3289_v42, 2 }
0x2a3d   :  { %v3283_v0 = vrot.slane %v3282_v53, 1  ;;  %v3291_v15 = vadd.f32 %v3290_v24, %v3289_v42 }
0x2a3f   :  { %v3284_v43 = vadd.f32 %v3283_v0, %v3282_v53  ;;  %v3292_v52 = vrot.slane %v3291_v15, 1 }
0x2a41   :  { %v3285_v5 = vmul.f32 0.125, %v3284_v43  ;;  %v3293_v54 = vadd.f32 %v3292_v52, %v3291_v15 }
0x2a43   :  { %v3294_v1 = vmul.f32 0.125, %v3293_v54  ;;  %v3295_v10 = vmul.f32 %v3285_v5, %v3285_v5 }
0x2a45   :  { %v3296_v60 = vsub.f32 %v3294_v1, %v3295_v10 }
0x2a47   :  { %v3297_v8 = vadd.f32 1e-05, %v3296_v60  ;;  %v5051_v60 = vld [vmem:[%s5096_s3] ss:$0 sm:$0xff]  ;;  %s4263_s3 = smov 127  }
0x2a49   :  { %4211 = vrsqrt.f32 %v3297_v8 }
0x2a53   :  { %v4212_v3 = vpop.eup %4211 }
0x2a54   :  { %v3299_v9 = vmul.f32 %v4997_v35, %v4212_v3 }
0x2a56   :  { %v3305_v23 = vmul.f32 %v3299_v9, %v3285_v5  ;;  %v3303_v58 = vrot.slane %v3299_v9, %v4350_v44 }
0x2a58   :  { %v3307_v11 = vrot.slane %v3305_v23, 7  ;;  %v3304_v13 = vmul.f32 %v3303_v58, %v3277_v48 }
0x2a5a   :  { %v3309_v7 = vsub.f32 %v4997_v35, %v3307_v11 }
0x2a5c   :  { %v3313_v28 = vrot.slane %v3309_v7, %v4354_v47 }
0x2a5e   :  { %v3314_v61 = vadd.f32 %v3313_v28, %v3304_v13 }
0x2a60   :  { %v3315_v16 = vmul.f32 0.01, %v3314_v61 }
0x2a62   :  { %v3316_v63 = vmax.f32 %v3314_v61, %v3315_v16 }
0x2a64   :  { %3986 = vmatmul.mubr.msk.f32.vlgmr.msra.gmra.mrb[18].mxu0 %vm72_vm1, %v3316_v63 }
0x2b37   :  { %v3386_v4 = vpop.f32.mrb[18].mxu0 }
0x2b38   :  { %v3390_v6 = vsel %vm72_vm1, %v3386_v4, 0.0  ;;  %v3398_v14 = vmul.f32 %v3386_v4, %v3386_v4  ;;  %v3987_v22 = vpop.f32.mrb[19].mxu0 }
0x2b39   :  { %v3391_v29 = vrot.slane %v3390_v6, 4 }
0x2b3a   :  { %v3399_v19 = vsel %vm72_vm1, %v3398_v14, 0.0 }
0x2b3b   :  { %v3392_v37 = vadd.f32 %v3391_v29, %v3390_v6  ;;  %v3400_v20 = vrot.slane %v3399_v19, 4 }
0x2b3d   :  { %v3393_v12 = vrot.slane %v3392_v37, 2  ;;  %v3401_v21 = vadd.f32 %v3400_v20, %v3399_v19 }
0x2b3f   :  { %v3394_v33 = vadd.f32 %v3393_v12, %v3392_v37  ;;  %v3402_v25 = vrot.slane %v3401_v21, 2 }
0x2b41   :  { %v3395_v45 = vrot.slane %v3394_v33, 1  ;;  %v3403_v26 = vadd.f32 %v3402_v25, %v3401_v21 }
0x2b43   :  { %v3396_v30 = vadd.f32 %v3395_v45, %v3394_v33  ;;  %v3404_v32 = vrot.slane %v3403_v26, 1 }
0x2b45   :  { %v3397_v46 = vmul.f32 0.125, %v3396_v30  ;;  %v3405_v55 = vadd.f32 %v3404_v32, %v3403_v26 }
0x2b47   :  { %v3406_v57 = vmul.f32 0.125, %v3405_v55  ;;  %v3407_v36 = vmul.f32 %v3397_v46, %v3397_v46 }
0x2b49   :  { %v3408_v48 = vsub.f32 %v3406_v57, %v3407_v36 }
0x2b4b   :  { %v3409_v59 = vadd.f32 1e-05, %v3408_v48 }
0x2b4d   :  { %4213 = vrsqrt.f32 %v3409_v59 }
0x2b57   :  { %v4214_v49 = vpop.eup %4213 }
0x2b58   :  { %v3411_v40 = vmul.f32 %v4997_v35, %v4214_v49 }
0x2b5a   :  { %v3417_v62 = vmul.f32 %v3411_v40, %v3397_v46  ;;  %v3415_v50 = vrot.slane %v3411_v40, %v4370_v27 }
0x2b5c   :  { %v3419_v56 = vrot.slane %v3417_v62, 7  ;;  %v3416_v42 = vmul.f32 %v3415_v50, %v3386_v4 }
0x2b5e   :  { %v3421_v51 = vsub.f32 %v4997_v35, %v3419_v56 }
0x2b60   :  { %v3425_v53 = vrot.slane %v3421_v51, %v4374_v31 }
0x2b62   :  { %v3426_v24 = vadd.f32 %v3425_v53, %v3416_v42 }
0x2b64   :  { %v3427_v0 = vmul.f32 0.01, %v3426_v24 }
0x2b66   :  { %v3428_v15 = vmax.f32 %v3426_v24, %v3427_v0 }
0x2b68   :  { %v3434_v43 = vmul.f32 %v3428_v15, %v4384_v41  ;;  %v3429_v52 = vmul.f32 %v3428_v15, %v4381_v38 }
0x2b6a   :  { %v3435_v5 = vsel %vm72_vm1, %v3434_v43, 0.0  ;;  %v3430_v54 = vsel %vm72_vm1, %v3429_v52, 0.0 }
0x2b6b   :  { %3436 = vadd.xlane.f32.xlu0 %v3435_v5  ;;  %3431 = vadd.xlane.f32.xlu1 %v3430_v54 }
0x2bf8   :  { %v3437_v1 = vpop.xlane.xlu0 %3436  ;;  %v3432_v10 = vpop.xlane.xlu1 %3431 }
0x2bf9   :  { %v3438_v8 = vadd.f32 %v5051_v60, %v3437_v1  ;;  %v3433_v3 = vadd.f32 %v5051_v60, %v3432_v10 }
0x2bfb   :  { %v3441_v9 = vmul.f32 0.05, %v3438_v8  ;;  %v3439_v23 = vmul.f32 0.05, %v3433_v3 }
0x2bfd   :  { %v5056_v58 = vadd.f32 %v3441_v9, %v5022_v39  ;;  %v5059_v11 = vadd.f32 %v3439_v23, %v5025_v34 }
0x2bff   :  { %3451 = vperm.xlu1 %4136, %v5056_v58   ;;  %3445 = vperm.xlu0 %4137, %v5059_v11  }
0x2c03   :  { %4138 = vset.pattern.permute.xlu0 %v4259_v2 }
0x2c7e   :  { %v3446_v7 = vpop.permute.xlu0 %3445  ;;  %v3452_v13 = vpop.permute.xlu1 %3451 }
0x2c7f   :  { %v3448_v28 = vmul.f32 %v3446_v7, %v4340_v17  ;;  %v3454_v61 = vmul.f32 %v3452_v13, %v4343_v18 }
0x2c81   :  { %v3455_v16 = vadd.f32 %v3454_v61, %v3448_v28 }
0x2c83   :  { %v3456_v63 = vsel %vm72_vm1, %v3455_v16, 0.0  ;;  %v3464_v39 = vmul.f32 %v3455_v16, %v3455_v16 }
0x2c84   :  { %v3457_v4 = vrot.slane %v3456_v63, 4 }
0x2c85   :  { %v3465_v34 = vsel %vm72_vm1, %v3464_v39, 0.0 }
0x2c86   :  { %v3458_v6 = vadd.f32 %v3457_v4, %v3456_v63  ;;  %v3466_v14 = vrot.slane %v3465_v34, 4 }
0x2c88   :  { %v3459_v22 = vrot.slane %v3458_v6, 2  ;;  %v3467_v29 = vadd.f32 %v3466_v14, %v3465_v34 }
0x2c8a   :  { %v3460_v19 = vadd.f32 %v3459_v22, %v3458_v6  ;;  %v3468_v37 = vrot.slane %v3467_v29, 2 }
0x2c8c   :  { %v3461_v2 = vrot.slane %v3460_v19, 1  ;;  %v3469_v20 = vadd.f32 %v3468_v37, %v3467_v29 }
0x2c8e   :  { %v3462_v12 = vadd.f32 %v3461_v2, %v3460_v19  ;;  %v3470_v21 = vrot.slane %v3469_v20, 1 }
0x2c90   :  { %v3463_v17 = vmul.f32 0.125, %v3462_v12  ;;  %v3471_v33 = vadd.f32 %v3470_v21, %v3469_v20 }
0x2c92   :  { %v3472_v18 = vmul.f32 0.125, %v3471_v33  ;;  %v3473_v25 = vmul.f32 %v3463_v17, %v3463_v17 }
0x2c94   :  { %v3474_v45 = vsub.f32 %v3472_v18, %v3473_v25 }
0x2c96   :  { %v3475_v26 = vadd.f32 1e-05, %v3474_v45 }
0x2c98   :  { %4215 = vrsqrt.f32 %v3475_v26 }
0x2ca2   :  { %v4216_v30 = vpop.eup %4215 }
0x2ca3   :  { %v3477_v32 = vmul.f32 %v4997_v35, %v4216_v30 }
0x2ca5   :  { %v3483_v46 = vmul.f32 %v3477_v32, %v3463_v17  ;;  %v3481_v55 = vrot.slane %v3477_v32, %v4350_v44 }
0x2ca7   :  { %v3485_v57 = vrot.slane %v3483_v46, 7  ;;  %v3482_v48 = vmul.f32 %v3481_v55, %v3455_v16 }
0x2ca9   :  { %v3487_v36 = vsub.f32 %v4997_v35, %v3485_v57 }
0x2cab   :  { %v3491_v59 = vrot.slane %v3487_v36, %v4354_v47 }
0x2cad   :  { %v3492_v49 = vadd.f32 %v3491_v59, %v3482_v48 }
0x2caf   :  { %v3493_v40 = vmul.f32 0.01, %v3492_v49 }
0x2cb1   :  { %v3494_v62 = vmax.f32 %v3492_v49, %v3493_v40 }
0x2cb3   :  { %3997 = vmatmul.mubr.msk.f32.vlgmr.msra.gmra.mrb[18].mxu1 %vm72_vm1, %v3494_v62 }
0x2d86   :  { %v3564_v50 = vpop.f32.mrb[18].mxu1 }
0x2d87   :  { %v3568_v56 = vsel %vm72_vm1, %v3564_v50, 0.0  ;;  %v3576_v51 = vmul.f32 %v3564_v50, %v3564_v50  ;;  %v3998_v42 = vpop.f32.mrb[19].mxu1 }
0x2d88   :  { %v3569_v53 = vrot.slane %v3568_v56, 4 }
0x2d89   :  { %v3577_v24 = vsel %vm72_vm1, %v3576_v51, 0.0 }
0x2d8a   :  { %v3570_v44 = vadd.f32 %v3569_v53, %v3568_v56  ;;  %v3578_v0 = vrot.slane %v3577_v24, 4 }
0x2d8c   :  { %v3571_v15 = vrot.slane %v3570_v44, 2  ;;  %v3579_v43 = vadd.f32 %v3578_v0, %v3577_v24 }
0x2d8e   :  { %v3572_v52 = vadd.f32 %v3571_v15, %v3570_v44  ;;  %v3580_v5 = vrot.slane %v3579_v43, 2 }
0x2d90   :  { %v3573_v47 = vrot.slane %v3572_v52, 1  ;;  %v3581_v54 = vadd.f32 %v3580_v5, %v3579_v43 }
0x2d92   :  { %v3574_v1 = vadd.f32 %v3573_v47, %v3572_v52  ;;  %v3582_v10 = vrot.slane %v3581_v54, 1 }
0x2d94   :  { %v3575_v8 = vmul.f32 0.125, %v3574_v1  ;;  %v3583_v3 = vadd.f32 %v3582_v10, %v3581_v54 }
0x2d96   :  { %v3584_v9 = vmul.f32 0.125, %v3583_v3  ;;  %v3585_v23 = vmul.f32 %v3575_v8, %v3575_v8 }
0x2d98   :  { %v3586_v7 = vsub.f32 %v3584_v9, %v3585_v23 }
0x2d9a   :  { %v3587_v13 = vadd.f32 1e-05, %v3586_v7 }
0x2d9c   :  { %4217 = vrsqrt.f32 %v3587_v13 }
0x2da6   :  { %v4218_v28 = vpop.eup %4217 }
0x2da7   :  { %v3589_v61 = vmul.f32 %v4997_v35, %v4218_v28 }
0x2da9   :  { %v3595_v16 = vmul.f32 %v3589_v61, %v3575_v8  ;;  %v3593_v63 = vrot.slane %v3589_v61, %v4370_v27 }
0x2dab   :  { %v3597_v39 = vrot.slane %v3595_v16, 7  ;;  %v3594_v34 = vmul.f32 %v3593_v63, %v3564_v50 }
0x2dad   :  { %v3599_v4 = vsub.f32 %v4997_v35, %v3597_v39 }
0x2daf   :  { %v3603_v6 = vrot.slane %v3599_v4, %v4374_v31 }
0x2db1   :  { %v3604_v14 = vadd.f32 %v3603_v6, %v3594_v34 }
0x2db3   :  { %v3605_v22 = vmul.f32 0.01, %v3604_v14 }
0x2db5   :  { %v3606_v29 = vmax.f32 %v3604_v14, %v3605_v22 }
0x2db7   :  { %v3612_v19 = vmul.f32 %v3606_v29, %v4384_v41  ;;  %v3607_v37 = vmul.f32 %v3606_v29, %v4381_v38 }
0x2db9   :  { %v3613_v2 = vsel %vm72_vm1, %v3612_v19, 0.0  ;;  %v3608_v20 = vsel %vm72_vm1, %v3607_v37, 0.0 }
0x2dba   :  { %3614 = vadd.xlane.f32.xlu1 %v3613_v2  ;;  %3609 = vadd.xlane.f32.xlu0 %v3608_v20 }
0x2e47   :  { %v3615_v27 = vpop.xlane.xlu1 %3614  ;;  %v3610_v31 = vpop.xlane.xlu0 %3609 }
0x2e48   :  { %v3616_v12 = vadd.f32 %v5051_v60, %v3615_v27  ;;  %v3611_v17 = vadd.f32 %v5051_v60, %v3610_v31 }
0x2e4a   :  { %v3619_v35 = vmul.f32 0.05, %v3616_v12  ;;  %v3617_v41 = vmul.f32 0.05, %v3611_v17 }
0x2e4c   :  { %v3620_v21 = vadd.f32 %v3619_v35, %v5056_v58  ;;  %v3618_v38 = vadd.f32 %v3617_v41, %v5059_v11 }
0x2e4e   :  { %3622 = vrot.lane.b32.xlu0 %v3620_v21, %s4263_s3 }
0x2ec0   :  { %v3623_v33 = vpop.permute.xlu0 %3622 }
0x2ec1   :  { %v3625_v18 = vmax.f32 %v3618_v38, %v3623_v33 }
0x2ec3   :  { %v3626_v25 = vsub.f32 %v3618_v38, %v3625_v18  ;;  %3630 = vrot.lane.b32.xlu1 %v3625_v18, %s4264_s18 }
0x2ec5   :  { %v3627_v58 = vmul.f32 1.442695, %v3626_v25 }
0x2f35   :  { %v3631_v45 = vpop.permute.xlu1 %3630 }
0x2f36   :  { %v3633_v26 = vsub.f32 %v3620_v21, %v3631_v45 }
0x2f38   :  { %v3634_v30 = vmul.f32 1.442695, %v3633_v26 }
0x2f3a   :  { %4219 = vpow2.f32 %v3634_v30 }
0x2f3b   :  { %4221 = vpow2.f32 %v3627_v58 }
0x2f44   :  { %v4220_v32 = vpop.eup %4219 }
0x2f45   :  { %3637 = vrot.lane.b32.xlu1 %v4220_v32, %s4263_s3  ;;  %v4222_v46 = vpop.eup %4221 }
0x2fb7   :  { %v3638_v55 = vpop.permute.xlu1 %3637 }
0x2fb8   :  { %v3640_v57 = vadd.f32 %v4222_v46, %v3638_v55 }
0x2fba   :  { %4223 = vrcp.f32 %v3640_v57 }
0x2fc4   :  { %v4224_v60 = vpop.eup %4223 }
0x2fc5   :  { %v3643_v11 = vmul.f32 %v4224_v60, %v4222_v46  ;;  %3647 = vrot.lane.b32.xlu0 %v4224_v60, %s4264_s18 }
0x2fc7   :  { %3645 = vst.msk [vmem:[%s5097_s4] sm:$0xff] %vm3644_vm2, %v3643_v11 }
0x3037   :  { %v3648_v36 = vpop.permute.xlu0 %3647 }
0x3038   :  { %v3650_v48 = vmul.f32 %v4220_v32, %v3648_v36 }
0x303a   :  { %3652 = vst.msk [vmem:[%s5097_s4] sm:$0xff] %vm3651_vm3, %v3650_v48 }
0x303b   :  { %3657 = vsyncpa [#allocation3], 1 }

</bundles_post_ra>
